<compile_context>
chip_gen: v7x
topology: tpu7x:2x2x1
jax: 0.10.0
libtpu: 0.0.40
codegen_flags: <defaults>
</compile_context>

<pallas_src>
import functools
import math

import jax
import jax.numpy as jnp
from jax.experimental import pallas as pl
from jax.experimental.pallas import tpu as pltpu


def _round_up(x, m):
    return -(-x // m) * m


def _sigmoid_via_tanh(x):
    # sigmoid(x) == 0.5 * (1 + tanh(0.5 * x)); tanh is a single EUP op.
    return 0.5 * (1.0 + jnp.tanh(0.5 * x))


# --------------------------- fused GRU + FC kernel ----------------------------

def _gru_fused_kernel(x_ref, wih_ref, whh_ref, bih_ref, bhn_ref,
                      fcw_ref, fcb_ref, out_ref,
                      seq_ref, gi_ref,
                      *, T, Bp, P, n_layers, unroll):
    """Single grid step; static Python loop over layers.

    seq_ref : (T*Bp, P)   current layer's input sequence; overwritten in place
                          with its hidden-state sequence (next layer's input).
    gi_ref  : (T*Bp, 3P)  hoisted input projection for all time steps.
    """
    seq_ref[...] = x_ref[...]                 # layer 0 reads the padded input slab

    h_last = jnp.zeros((Bp, P), jnp.float32)
    for l in range(n_layers):                 # static, tiny L
        # Hoisted input projection: one big matmul instead of T tiny ones.
        # TODO(synk): for large T, chunk this matmul over time blocks and
        # interleave with the recurrence to hide it under MXU idle time.
        gi_ref[...] = (
            jnp.dot(seq_ref[...], wih_ref[l], preferred_element_type=jnp.float32)
            + bih_ref[l]
        )

        whh = whh_ref[l]                                   # (P, 3P), loop-resident
        bhn_b = jnp.broadcast_to(bhn_ref[l], (Bp, P))      # hoisted broadcast

        def step(t, h, whh=whh, bhn_b=bhn_b):
            row = pl.multiple_of(t * Bp, Bp)
            gi_t = gi_ref[pl.ds(row, Bp), :]                               # (Bp, 3P)
            gh = jnp.dot(h, whh, preferred_element_type=jnp.float32)       # (Bp, 3P)
            # Gate slices sit at 128-lane-aligned boundaries (free splits).
            r = _sigmoid_via_tanh(gi_t[:, 0:P] + gh[:, 0:P])
            z = _sigmoid_via_tanh(gi_t[:, P:2 * P] + gh[:, P:2 * P])
            n = jnp.tanh(gi_t[:, 2 * P:3 * P] + r * (gh[:, 2 * P:3 * P] + bhn_b))
            h_new = (1.0 - z) * n + z * h
            seq_ref[pl.ds(row, Bp), :] = h_new      # becomes next layer's input
            return h_new

        h_last = jax.lax.fori_loop(0, T, step, jnp.zeros((Bp, P), jnp.float32),
                                   unroll=unroll)

    # Final Linear fused; lane-dense (Bp, Op) output.
    out_ref[...] = (
        jnp.dot(h_last, fcw_ref[...], preferred_element_type=jnp.float32)
        + fcb_ref[...]
    )


# -------------------------- parameter preparation -----------------------------

def init_gru_params(key, input_dim, hidden_dim, num_layers, output_dim):
    """PyTorch-shaped parameters, uniform(-1/sqrt(H), 1/sqrt(H)) like nn.GRU."""
    bound = 1.0 / math.sqrt(hidden_dim)
    params = {"hidden_dim": hidden_dim, "num_layers": num_layers,
              "output_dim": output_dim, "layers": []}
    for layer_idx in range(num_layers):
        d_in = input_dim if layer_idx == 0 else hidden_dim
        key, k1, k2, k3, k4 = jax.random.split(key, 5)
        params["layers"].append({
            "w_ih": jax.random.uniform(k1, (3 * hidden_dim, d_in), jnp.float32, -bound, bound),
            "w_hh": jax.random.uniform(k2, (3 * hidden_dim, hidden_dim), jnp.float32, -bound, bound),
            "b_ih": jax.random.uniform(k3, (3 * hidden_dim,), jnp.float32, -bound, bound),
            "b_hh": jax.random.uniform(k4, (3 * hidden_dim,), jnp.float32, -bound, bound),
        })
    key, k5, k6 = jax.random.split(key, 3)
    params["fc_w"] = jax.random.uniform(k5, (output_dim, hidden_dim), jnp.float32, -bound, bound)
    params["fc_b"] = jax.random.uniform(k6, (output_dim,), jnp.float32, -bound, bound)
    return params


def _place_gates(w_t, H, P):
    """(rows, 3H) gate-concatenated (r|z|n) -> (rows, 3P) with each gate placed
    at a 128-lane-aligned slot, zero padded."""
    rows = w_t.shape[0]
    out = jnp.zeros((rows, 3 * P), jnp.float32)
    for g in range(3):
        out = out.at[:, g * P:g * P + H].set(w_t[:, g * H:(g + 1) * H])
    return out


def _prepare_padded_params(params, P, Op):
    H = params["hidden_dim"]
    O = params["output_dim"]
    wih_l, whh_l, bih_l, bhn_l = [], [], [], []
    for layer in params["layers"]:
        w_ih, w_hh = layer["w_ih"], layer["w_hh"]        # (3H, Din), (3H, H)
        b_ih, b_hh = layer["b_ih"], layer["b_hh"]        # (3H,)
        d_in = w_ih.shape[1]

        wih_t = _place_gates(w_ih.T, H, P)                               # (Din, 3P)
        wih_t = jnp.zeros((P, 3 * P), jnp.float32).at[:d_in].set(wih_t)  # (P, 3P)
        whh_t = _place_gates(w_hh.T, H, P)                               # (H, 3P)
        whh_t = jnp.zeros((P, 3 * P), jnp.float32).at[:H].set(whh_t)     # (P, 3P)

        # Fold b_hr, b_hz into the input bias; b_hn stays inside r * ( . ).
        b_fold = jnp.concatenate([b_ih[0:H] + b_hh[0:H],
                                  b_ih[H:2 * H] + b_hh[H:2 * H],
                                  b_ih[2 * H:3 * H]])
        bih_p = _place_gates(b_fold[None, :], H, P)                      # (1, 3P)
        bhn_p = jnp.zeros((1, P), jnp.float32).at[0, :H].set(b_hh[2 * H:3 * H])

        wih_l.append(wih_t); whh_l.append(whh_t)
        bih_l.append(bih_p); bhn_l.append(bhn_p)

    fcw_p = jnp.zeros((P, Op), jnp.float32).at[:H, :O].set(params["fc_w"].T)
    fcb_p = jnp.zeros((1, Op), jnp.float32).at[0, :O].set(params["fc_b"])

    return (jnp.stack(wih_l), jnp.stack(whh_l),
            jnp.stack(bih_l), jnp.stack(bhn_l), fcw_p, fcb_p)


# --------------------------------- forward ------------------------------------

def gru_forward(params, x):
    """x: (B, T, input_dim), batch_first — same contract as the PyTorch module."""
    B, T, D = x.shape
    H = params["hidden_dim"]
    O = params["output_dim"]
    L = params["num_layers"]

    Bp = _round_up(B, 8)                    # sublane-aligned batch
    P = _round_up(max(D, H), 128)           # shared lane-aligned width (input & hidden)
    Op = _round_up(O, 128)                  # lane-dense output

    wih_all, whh_all, bih_all, bhn_all, fcw_p, fcb_p = _prepare_padded_params(
        params, P, Op)

    # (B, T, D) -> time-major, padded, flattened to a lane-dense (T*Bp, P) slab.
    x_t = jnp.transpose(x.astype(jnp.float32), (1, 0, 2))                # (T, B, D)
    x_p = jnp.zeros((T, Bp, P), jnp.float32).at[:, :B, :D].set(x_t)
    x_p = x_p.reshape(T * Bp, P)

    # Full unroll only when T is small; partial unroll keeps LLO visibility
    # without blowing up instruction memory / vreg live ranges at large T.
    unroll = True if T <= 16 else 8

    # VMEM budget from actual buffer sizes (f32), with headroom.
    f32 = 4
    vmem_bytes = f32 * (
        T * Bp * P                     # x input slab
        + 2 * L * P * 3 * P            # W_ih^T + W_hh^T stacks
        + L * 3 * P + L * P            # biases
        + P * Op + Op                  # fc weight + bias
        + Bp * Op                      # output
        + T * Bp * P + T * Bp * 3 * P  # seq + gi scratch
    )
    vmem_limit = min(32 * 1024 * 1024, max(4 * 1024 * 1024, 2 * vmem_bytes))

    cost = pl.CostEstimate(
        flops=L * (4 * T * Bp * P * 3 * P) + 2 * Bp * P * Op,
        transcendentals=L * T * Bp * 3 * P,
        bytes_accessed=vmem_bytes,
    )

    kernel = functools.partial(_gru_fused_kernel, T=T, Bp=Bp, P=P,
                               n_layers=L, unroll=unroll)
    out_p = pl.pallas_call(
        kernel,
        out_shape=jax.ShapeDtypeStruct((Bp, Op), jnp.float32),
        in_specs=[
            pl.BlockSpec((T * Bp, P), lambda: (0, 0)),          # x slab
            pl.BlockSpec((L, P, 3 * P), lambda: (0, 0, 0)),     # W_ih^T (padded)
            pl.BlockSpec((L, P, 3 * P), lambda: (0, 0, 0)),     # W_hh^T (padded)
            pl.BlockSpec((L, 1, 3 * P), lambda: (0, 0, 0)),     # b_ih (+b_hr,b_hz)
            pl.BlockSpec((L, 1, P), lambda: (0, 0, 0)),         # b_hn
            pl.BlockSpec((P, Op), lambda: (0, 0)),              # fc W^T
            pl.BlockSpec((1, Op), lambda: (0, 0)),              # fc b
        ],
        out_specs=pl.BlockSpec((Bp, Op), lambda: (0, 0)),
        scratch_shapes=[
            pltpu.VMEM((T * Bp, P), jnp.float32),        # layer in/out sequence
            pltpu.VMEM((T * Bp, 3 * P), jnp.float32),    # hoisted input projection
        ],
        compiler_params=pltpu.CompilerParams(vmem_limit_bytes=int(vmem_limit)),
        cost_estimate=cost,
    )(x_p, wih_all, whh_all, bih_all, bhn_all, fcw_p, fcb_p)

    return out_p[:B, :O]


# ------------------------------ pure-JAX reference ----------------------------

def _ref_forward(params, x):
    B, T, _ = x.shape
    H = params["hidden_dim"]
    seq = x.astype(jnp.float32)
    for layer in params["layers"]:
        h = jnp.zeros((B, H), jnp.float32)
        outs = []
        for t in range(T):
            gi = seq[:, t, :] @ layer["w_ih"].T + layer["b_ih"]
            gh = h @ layer["w_hh"].T + layer["b_hh"]
            i_r, i_z, i_n = jnp.split(gi, 3, axis=1)
            h_r, h_z, h_n = jnp.split(gh, 3, axis=1)
            r = jax.nn.sigmoid(i_r + h_r)
            z = jax.nn.sigmoid(i_z + h_z)
            n = jnp.tanh(i_n + r * h_n)
            h = (1.0 - z) * n + z * h
            outs.append(h)
        seq = jnp.stack(outs, axis=1)
    return seq[:, -1, :] @ params["fc_w"].T + params["fc_b"]


# ----------------------------------- main --------------------------------------

if __name__ == "__main__":
    input_dim, hidden_dim, num_layers, output_dim = 4, 32, 2, 1
    B, T = 2, 8

    key = jax.random.PRNGKey(0)
    kx, kp = jax.random.split(key)
    x = jax.random.normal(kx, (B, T, input_dim), dtype=jnp.float32)
    params = init_gru_params(kp, input_dim, hidden_dim, num_layers, output_dim)

    out = gru_forward(params, x)
    jax.block_until_ready(out)
    assert out.shape == (B, output_dim)

    ref = _ref_forward(params, x)
    assert bool(jnp.allclose(out, ref, rtol=1e-3, atol=1e-3))

    print("KERNEL_OK")
</pallas_src>

<mosaic_0001>
module attributes {stable_mosaic.version = 11 : i64} {
  func.func @_gru_fused_kernel(%arg0: memref<64x128xf32, #tpu.memory_space<vmem>>, %arg1: memref<2x128x384xf32, #tpu.memory_space<vmem>>, %arg2: memref<2x128x384xf32, #tpu.memory_space<vmem>>, %arg3: memref<2x1x384xf32, #tpu.memory_space<vmem>>, %arg4: memref<2x1x128xf32, #tpu.memory_space<vmem>>, %arg5: memref<128x128xf32, #tpu.memory_space<vmem>>, %arg6: memref<1x128xf32, #tpu.memory_space<vmem>>, %arg7: memref<8x128xf32, #tpu.memory_space<vmem>>, %arg8: memref<64x128xf32, #tpu.memory_space<vmem>>, %arg9: memref<64x384xf32, #tpu.memory_space<vmem>>) attributes {dimension_semantics = [], scalar_prefetch = 0 : i64, scratch_operands = 2 : i64, tpu.core_type = #tpu.core_type<tc>} {
    %c0 = arith.constant 0 : index
    %c0_0 = arith.constant 0 : index
    %0 = vector.load %arg0[%c0, %c0_0] : memref<64x128xf32, #tpu.memory_space<vmem>>, vector<64x128xf32>
    %c0_1 = arith.constant 0 : index
    %c0_2 = arith.constant 0 : index
    %1 = vector.load %arg8[%c0_1, %c0_2] : memref<64x128xf32, #tpu.memory_space<vmem>>, vector<64x128xf32>
    tpu.vector_store %arg8[%c0_1, %c0_2], %0 {strides = array<i32>} : memref<64x128xf32, #tpu.memory_space<vmem>>, vector<64x128xf32>,
    %c0_3 = arith.constant 0 : index
    %c0_4 = arith.constant 0 : index
    %2 = vector.load %arg8[%c0_3, %c0_4] : memref<64x128xf32, #tpu.memory_space<vmem>>, vector<64x128xf32>
    %c0_5 = arith.constant 0 : index
    %c0_6 = arith.constant 0 : index
    %c0_7 = arith.constant 0 : index
    %3 = vector.load %arg1[%c0_5, %c0_6, %c0_7] : memref<2x128x384xf32, #tpu.memory_space<vmem>>, vector<1x128x384xf32>
    %4 = vector.shape_cast %3 : vector<1x128x384xf32> to vector<128x384xf32>
    %cst = arith.constant dense<0.000000e+00> : vector<64x384xf32>
    %5 = tpu.matmul %2, %4, %cst {dimension_numbers = #tpu.dot_dimension_numbers<[1], [0], [0], [1], [0, 0, 1, 1], [], []>} : vector<64x128xf32>, vector<128x384xf32>, vector<64x384xf32> -> vector<64x384xf32>
    %c0_8 = arith.constant 0 : index
    %c0_9 = arith.constant 0 : index
    %c0_10 = arith.constant 0 : index
    %6 = vector.load %arg3[%c0_8, %c0_9, %c0_10] : memref<2x1x384xf32, #tpu.memory_space<vmem>>, vector<1x1x384xf32>
    %7 = vector.shape_cast %6 : vector<1x1x384xf32> to vector<1x384xf32>
    %8 = vector.broadcast %7 : vector<1x384xf32> to vector<64x384xf32>
    %9 = arith.addf %5, %8 : vector<64x384xf32>
    %c0_11 = arith.constant 0 : index
    %c0_12 = arith.constant 0 : index
    %10 = vector.load %arg9[%c0_11, %c0_12] : memref<64x384xf32, #tpu.memory_space<vmem>>, vector<64x384xf32>
    tpu.vector_store %arg9[%c0_11, %c0_12], %9 {strides = array<i32>} : memref<64x384xf32, #tpu.memory_space<vmem>>, vector<64x384xf32>,
    %c0_13 = arith.constant 0 : index
    %c0_14 = arith.constant 0 : index
    %c0_15 = arith.constant 0 : index
    %11 = vector.load %arg2[%c0_13, %c0_14, %c0_15] : memref<2x128x384xf32, #tpu.memory_space<vmem>>, vector<1x128x384xf32>
    %12 = vector.shape_cast %11 : vector<1x128x384xf32> to vector<128x384xf32>
    %c0_16 = arith.constant 0 : index
    %c0_17 = arith.constant 0 : index
    %c0_18 = arith.constant 0 : index
    %13 = vector.load %arg4[%c0_16, %c0_17, %c0_18] : memref<2x1x128xf32, #tpu.memory_space<vmem>>, vector<1x1x128xf32>
    %14 = vector.shape_cast %13 : vector<1x1x128xf32> to vector<1x128xf32>
    %15 = vector.shape_cast %14 : vector<1x128xf32> to vector<1x128xf32>
    %16 = vector.broadcast %15 : vector<1x128xf32> to vector<8x128xf32>
    %cst_19 = arith.constant 0.000000e+00 : f32
    %17 = vector.broadcast %cst_19 : f32 to vector<8x128xf32>
    %c0_i32 = arith.constant 0 : i32
    %c8_i32 = arith.constant 8 : i32
    %18 = arith.muli %c0_i32, %c8_i32 : i32
    %19 = tpu.assume_multiple %18, 8 : i32
    %20 = arith.index_cast %19 : i32 to index
    %c0_20 = arith.constant 0 : index
    %21 = vector.load %arg9[%20, %c0_20] : memref<64x384xf32, #tpu.memory_space<vmem>>, vector<8x384xf32>
    %cst_21 = arith.constant dense<0.000000e+00> : vector<8x384xf32>
    %22 = tpu.matmul %17, %12, %cst_21 {dimension_numbers = #tpu.dot_dimension_numbers<[1], [0], [0], [1], [0, 0, 1, 1], [], []>} : vector<8x128xf32>, vector<128x384xf32>, vector<8x384xf32> -> vector<8x384xf32>
    %23 = vector.extract_strided_slice %21 {offsets = [0, 0], sizes = [8, 128], strides = [1, 1]} : vector<8x384xf32> to vector<8x128xf32>
    %24 = vector.extract_strided_slice %22 {offsets = [0, 0], sizes = [8, 128], strides = [1, 1]} : vector<8x384xf32> to vector<8x128xf32>
    %25 = arith.addf %23, %24 : vector<8x128xf32>
    %cst_22 = arith.constant 5.000000e-01 : f32
    %26 = vector.broadcast %cst_22 : f32 to vector<8x128xf32>
    %27 = arith.mulf %26, %25 : vector<8x128xf32>
    %28 = math.tanh %27 : vector<8x128xf32>
    %cst_23 = arith.constant 1.000000e+00 : f32
    %29 = vector.broadcast %cst_23 : f32 to vector<8x128xf32>
    %30 = arith.addf %29, %28 : vector<8x128xf32>
    %cst_24 = arith.constant 5.000000e-01 : f32
    %31 = vector.broadcast %cst_24 : f32 to vector<8x128xf32>
    %32 = arith.mulf %31, %30 : vector<8x128xf32>
    %33 = vector.extract_strided_slice %21 {offsets = [0, 128], sizes = [8, 128], strides = [1, 1]} : vector<8x384xf32> to vector<8x128xf32>
    %34 = vector.extract_strided_slice %22 {offsets = [0, 128], sizes = [8, 128], strides = [1, 1]} : vector<8x384xf32> to vector<8x128xf32>
    %35 = arith.addf %33, %34 : vector<8x128xf32>
    %cst_25 = arith.constant 5.000000e-01 : f32
    %36 = vector.broadcast %cst_25 : f32 to vector<8x128xf32>
    %37 = arith.mulf %36, %35 : vector<8x128xf32>
    %38 = math.tanh %37 : vector<8x128xf32>
    %cst_26 = arith.constant 1.000000e+00 : f32
    %39 = vector.broadcast %cst_26 : f32 to vector<8x128xf32>
    %40 = arith.addf %39, %38 : vector<8x128xf32>
    %cst_27 = arith.constant 5.000000e-01 : f32
    %41 = vector.broadcast %cst_27 : f32 to vector<8x128xf32>
    %42 = arith.mulf %41, %40 : vector<8x128xf32>
    %43 = vector.extract_strided_slice %21 {offsets = [0, 256], sizes = [8, 128], strides = [1, 1]} : vector<8x384xf32> to vector<8x128xf32>
    %44 = vector.extract_strided_slice %22 {offsets = [0, 256], sizes = [8, 128], strides = [1, 1]} : vector<8x384xf32> to vector<8x128xf32>
    %45 = arith.addf %44, %16 : vector<8x128xf32>
    %46 = arith.mulf %32, %45 : vector<8x128xf32>
    %47 = arith.addf %43, %46 : vector<8x128xf32>
    %48 = math.tanh %47 : vector<8x128xf32>
    %cst_28 = arith.constant 1.000000e+00 : f32
    %49 = vector.broadcast %cst_28 : f32 to vector<8x128xf32>
    %50 = arith.subf %49, %42 : vector<8x128xf32>
    %51 = arith.mulf %50, %48 : vector<8x128xf32>
    %52 = arith.mulf %42, %17 : vector<8x128xf32>
    %53 = arith.addf %51, %52 : vector<8x128xf32>
    %54 = arith.index_cast %19 : i32 to index
    %c0_29 = arith.constant 0 : index
    %55 = vector.load %arg8[%54, %c0_29] : memref<64x128xf32, #tpu.memory_space<vmem>>, vector<8x128xf32>
    tpu.vector_store %arg8[%54, %c0_29], %53 {strides = array<i32>} : memref<64x128xf32, #tpu.memory_space<vmem>>, vector<8x128xf32>,
    %c1_i32 = arith.constant 1 : i32
    %c8_i32_30 = arith.constant 8 : i32
    %56 = arith.muli %c1_i32, %c8_i32_30 : i32
    %57 = tpu.assume_multiple %56, 8 : i32
    %58 = arith.index_cast %57 : i32 to index
    %c0_31 = arith.constant 0 : index
    %59 = vector.load %arg9[%58, %c0_31] : memref<64x384xf32, #tpu.memory_space<vmem>>, vector<8x384xf32>
    %cst_32 = arith.constant dense<0.000000e+00> : vector<8x384xf32>
    %60 = tpu.matmul %53, %12, %cst_32 {dimension_numbers = #tpu.dot_dimension_numbers<[1], [0], [0], [1], [0, 0, 1, 1], [], []>} : vector<8x128xf32>, vector<128x384xf32>, vector<8x384xf32> -> vector<8x384xf32>
    %61 = vector.extract_strided_slice %59 {offsets = [0, 0], sizes = [8, 128], strides = [1, 1]} : vector<8x384xf32> to vector<8x128xf32>
    %62 = vector.extract_strided_slice %60 {offsets = [0, 0], sizes = [8, 128], strides = [1, 1]} : vector<8x384xf32> to vector<8x128xf32>
    %63 = arith.addf %61, %62 : vector<8x128xf32>
    %cst_33 = arith.constant 5.000000e-01 : f32
    %64 = vector.broadcast %cst_33 : f32 to vector<8x128xf32>
    %65 = arith.mulf %64, %63 : vector<8x128xf32>
    %66 = math.tanh %65 : vector<8x128xf32>
    %cst_34 = arith.constant 1.000000e+00 : f32
    %67 = vector.broadcast %cst_34 : f32 to vector<8x128xf32>
    %68 = arith.addf %67, %66 : vector<8x128xf32>
    %cst_35 = arith.constant 5.000000e-01 : f32
    %69 = vector.broadcast %cst_35 : f32 to vector<8x128xf32>
    %70 = arith.mulf %69, %68 : vector<8x128xf32>
    %71 = vector.extract_strided_slice %59 {offsets = [0, 128], sizes = [8, 128], strides = [1, 1]} : vector<8x384xf32> to vector<8x128xf32>
    %72 = vector.extract_strided_slice %60 {offsets = [0, 128], sizes = [8, 128], strides = [1, 1]} : vector<8x384xf32> to vector<8x128xf32>
    %73 = arith.addf %71, %72 : vector<8x128xf32>
    %cst_36 = arith.constant 5.000000e-01 : f32
    %74 = vector.broadcast %cst_36 : f32 to vector<8x128xf32>
    %75 = arith.mulf %74, %73 : vector<8x128xf32>
    %76 = math.tanh %75 : vector<8x128xf32>
    %cst_37 = arith.constant 1.000000e+00 : f32
    %77 = vector.broadcast %cst_37 : f32 to vector<8x128xf32>
    %78 = arith.addf %77, %76 : vector<8x128xf32>
    %cst_38 = arith.constant 5.000000e-01 : f32
    %79 = vector.broadcast %cst_38 : f32 to vector<8x128xf32>
    %80 = arith.mulf %79, %78 : vector<8x128xf32>
    %81 = vector.extract_strided_slice %59 {offsets = [0, 256], sizes = [8, 128], strides = [1, 1]} : vector<8x384xf32> to vector<8x128xf32>
    %82 = vector.extract_strided_slice %60 {offsets = [0, 256], sizes = [8, 128], strides = [1, 1]} : vector<8x384xf32> to vector<8x128xf32>
    %83 = arith.addf %82, %16 : vector<8x128xf32>
    %84 = arith.mulf %70, %83 : vector<8x128xf32>
    %85 = arith.addf %81, %84 : vector<8x128xf32>
    %86 = math.tanh %85 : vector<8x128xf32>
    %cst_39 = arith.constant 1.000000e+00 : f32
    %87 = vector.broadcast %cst_39 : f32 to vector<8x128xf32>
    %88 = arith.subf %87, %80 : vector<8x128xf32>
    %89 = arith.mulf %88, %86 : vector<8x128xf32>
    %90 = arith.mulf %80, %53 : vector<8x128xf32>
    %91 = arith.addf %89, %90 : vector<8x128xf32>
    %92 = arith.index_cast %57 : i32 to index
    %c0_40 = arith.constant 0 : index
    %93 = vector.load %arg8[%92, %c0_40] : memref<64x128xf32, #tpu.memory_space<vmem>>, vector<8x128xf32>
    tpu.vector_store %arg8[%92, %c0_40], %91 {strides = array<i32>} : memref<64x128xf32, #tpu.memory_space<vmem>>, vector<8x128xf32>,
    %c2_i32 = arith.constant 2 : i32
    %c8_i32_41 = arith.constant 8 : i32
    %94 = arith.muli %c2_i32, %c8_i32_41 : i32
    %95 = tpu.assume_multiple %94, 8 : i32
    %96 = arith.index_cast %95 : i32 to index
    %c0_42 = arith.constant 0 : index
    %97 = vector.load %arg9[%96, %c0_42] : memref<64x384xf32, #tpu.memory_space<vmem>>, vector<8x384xf32>
    %cst_43 = arith.constant dense<0.000000e+00> : vector<8x384xf32>
    %98 = tpu.matmul %91, %12, %cst_43 {dimension_numbers = #tpu.dot_dimension_numbers<[1], [0], [0], [1], [0, 0, 1, 1], [], []>} : vector<8x128xf32>, vector<128x384xf32>, vector<8x384xf32> -> vector<8x384xf32>
    %99 = vector.extract_strided_slice %97 {offsets = [0, 0], sizes = [8, 128], strides = [1, 1]} : vector<8x384xf32> to vector<8x128xf32>
    %100 = vector.extract_strided_slice %98 {offsets = [0, 0], sizes = [8, 128], strides = [1, 1]} : vector<8x384xf32> to vector<8x128xf32>
    %101 = arith.addf %99, %100 : vector<8x128xf32>
    %cst_44 = arith.constant 5.000000e-01 : f32
    %102 = vector.broadcast %cst_44 : f32 to vector<8x128xf32>
    %103 = arith.mulf %102, %101 : vector<8x128xf32>
    %104 = math.tanh %103 : vector<8x128xf32>
    %cst_45 = arith.constant 1.000000e+00 : f32
    %105 = vector.broadcast %cst_45 : f32 to vector<8x128xf32>
    %106 = arith.addf %105, %104 : vector<8x128xf32>
    %cst_46 = arith.constant 5.000000e-01 : f32
    %107 = vector.broadcast %cst_46 : f32 to vector<8x128xf32>
    %108 = arith.mulf %107, %106 : vector<8x128xf32>
    %109 = vector.extract_strided_slice %97 {offsets = [0, 128], sizes = [8, 128], strides = [1, 1]} : vector<8x384xf32> to vector<8x128xf32>
    %110 = vector.extract_strided_slice %98 {offsets = [0, 128], sizes = [8, 128], strides = [1, 1]} : vector<8x384xf32> to vector<8x128xf32>
    %111 = arith.addf %109, %110 : vector<8x128xf32>
    %cst_47 = arith.constant 5.000000e-01 : f32
    %112 = vector.broadcast %cst_47 : f32 to vector<8x128xf32>
    %113 = arith.mulf %112, %111 : vector<8x128xf32>
    %114 = math.tanh %113 : vector<8x128xf32>
    %cst_48 = arith.constant 1.000000e+00 : f32
    %115 = vector.broadcast %cst_48 : f32 to vector<8x128xf32>
    %116 = arith.addf %115, %114 : vector<8x128xf32>
    %cst_49 = arith.constant 5.000000e-01 : f32
    %117 = vector.broadcast %cst_49 : f32 to vector<8x128xf32>
    %118 = arith.mulf %117, %116 : vector<8x128xf32>
    %119 = vector.extract_strided_slice %97 {offsets = [0, 256], sizes = [8, 128], strides = [1, 1]} : vector<8x384xf32> to vector<8x128xf32>
    %120 = vector.extract_strided_slice %98 {offsets = [0, 256], sizes = [8, 128], strides = [1, 1]} : vector<8x384xf32> to vector<8x128xf32>
    %121 = arith.addf %120, %16 : vector<8x128xf32>
    %122 = arith.mulf %108, %121 : vector<8x128xf32>
    %123 = arith.addf %119, %122 : vector<8x128xf32>
    %124 = math.tanh %123 : vector<8x128xf32>
    %cst_50 = arith.constant 1.000000e+00 : f32
    %125 = vector.broadcast %cst_50 : f32 to vector<8x128xf32>
    %126 = arith.subf %125, %118 : vector<8x128xf32>
    %127 = arith.mulf %126, %124 : vector<8x128xf32>
    %128 = arith.mulf %118, %91 : vector<8x128xf32>
    %129 = arith.addf %127, %128 : vector<8x128xf32>
    %130 = arith.index_cast %95 : i32 to index
    %c0_51 = arith.constant 0 : index
    %131 = vector.load %arg8[%130, %c0_51] : memref<64x128xf32, #tpu.memory_space<vmem>>, vector<8x128xf32>
    tpu.vector_store %arg8[%130, %c0_51], %129 {strides = array<i32>} : memref<64x128xf32, #tpu.memory_space<vmem>>, vector<8x128xf32>,
    %c3_i32 = arith.constant 3 : i32
    %c8_i32_52 = arith.constant 8 : i32
    %132 = arith.muli %c3_i32, %c8_i32_52 : i32
    %133 = tpu.assume_multiple %132, 8 : i32
    %134 = arith.index_cast %133 : i32 to index
    %c0_53 = arith.constant 0 : index
    %135 = vector.load %arg9[%134, %c0_53] : memref<64x384xf32, #tpu.memory_space<vmem>>, vector<8x384xf32>
    %cst_54 = arith.constant dense<0.000000e+00> : vector<8x384xf32>
    %136 = tpu.matmul %129, %12, %cst_54 {dimension_numbers = #tpu.dot_dimension_numbers<[1], [0], [0], [1], [0, 0, 1, 1], [], []>} : vector<8x128xf32>, vector<128x384xf32>, vector<8x384xf32> -> vector<8x384xf32>
    %137 = vector.extract_strided_slice %135 {offsets = [0, 0], sizes = [8, 128], strides = [1, 1]} : vector<8x384xf32> to vector<8x128xf32>
    %138 = vector.extract_strided_slice %136 {offsets = [0, 0], sizes = [8, 128], strides = [1, 1]} : vector<8x384xf32> to vector<8x128xf32>
    %139 = arith.addf %137, %138 : vector<8x128xf32>
    %cst_55 = arith.constant 5.000000e-01 : f32
    %140 = vector.broadcast %cst_55 : f32 to vector<8x128xf32>
    %141 = arith.mulf %140, %139 : vector<8x128xf32>
    %142 = math.tanh %141 : vector<8x128xf32>
    %cst_56 = arith.constant 1.000000e+00 : f32
    %143 = vector.broadcast %cst_56 : f32 to vector<8x128xf32>
    %144 = arith.addf %143, %142 : vector<8x128xf32>
    %cst_57 = arith.constant 5.000000e-01 : f32
    %145 = vector.broadcast %cst_57 : f32 to vector<8x128xf32>
    %146 = arith.mulf %145, %144 : vector<8x128xf32>
    %147 = vector.extract_strided_slice %135 {offsets = [0, 128], sizes = [8, 128], strides = [1, 1]} : vector<8x384xf32> to vector<8x128xf32>
    %148 = vector.extract_strided_slice %136 {offsets = [0, 128], sizes = [8, 128], strides = [1, 1]} : vector<8x384xf32> to vector<8x128xf32>
    %149 = arith.addf %147, %148 : vector<8x128xf32>
    %cst_58 = arith.constant 5.000000e-01 : f32
    %150 = vector.broadcast %cst_58 : f32 to vector<8x128xf32>
    %151 = arith.mulf %150, %149 : vector<8x128xf32>
    %152 = math.tanh %151 : vector<8x128xf32>
    %cst_59 = arith.constant 1.000000e+00 : f32
    %153 = vector.broadcast %cst_59 : f32 to vector<8x128xf32>
    %154 = arith.addf %153, %152 : vector<8x128xf32>
    %cst_60 = arith.constant 5.000000e-01 : f32
    %155 = vector.broadcast %cst_60 : f32 to vector<8x128xf32>
    %156 = arith.mulf %155, %154 : vector<8x128xf32>
    %157 = vector.extract_strided_slice %135 {offsets = [0, 256], sizes = [8, 128], strides = [1, 1]} : vector<8x384xf32> to vector<8x128xf32>
    %158 = vector.extract_strided_slice %136 {offsets = [0, 256], sizes = [8, 128], strides = [1, 1]} : vector<8x384xf32> to vector<8x128xf32>
    %159 = arith.addf %158, %16 : vector<8x128xf32>
    %160 = arith.mulf %146, %159 : vector<8x128xf32>
    %161 = arith.addf %157, %160 : vector<8x128xf32>
    %162 = math.tanh %161 : vector<8x128xf32>
    %cst_61 = arith.constant 1.000000e+00 : f32
    %163 = vector.broadcast %cst_61 : f32 to vector<8x128xf32>
    %164 = arith.subf %163, %156 : vector<8x128xf32>
    %165 = arith.mulf %164, %162 : vector<8x128xf32>
    %166 = arith.mulf %156, %129 : vector<8x128xf32>
    %167 = arith.addf %165, %166 : vector<8x128xf32>
    %168 = arith.index_cast %133 : i32 to index
    %c0_62 = arith.constant 0 : index
    %169 = vector.load %arg8[%168, %c0_62] : memref<64x128xf32, #tpu.memory_space<vmem>>, vector<8x128xf32>
    tpu.vector_store %arg8[%168, %c0_62], %167 {strides = array<i32>} : memref<64x128xf32, #tpu.memory_space<vmem>>, vector<8x128xf32>,
    %c4_i32 = arith.constant 4 : i32
    %c8_i32_63 = arith.constant 8 : i32
    %170 = arith.muli %c4_i32, %c8_i32_63 : i32
    %171 = tpu.assume_multiple %170, 8 : i32
    %172 = arith.index_cast %171 : i32 to index
    %c0_64 = arith.constant 0 : index
    %173 = vector.load %arg9[%172, %c0_64] : memref<64x384xf32, #tpu.memory_space<vmem>>, vector<8x384xf32>
    %cst_65 = arith.constant dense<0.000000e+00> : vector<8x384xf32>
    %174 = tpu.matmul %167, %12, %cst_65 {dimension_numbers = #tpu.dot_dimension_numbers<[1], [0], [0], [1], [0, 0, 1, 1], [], []>} : vector<8x128xf32>, vector<128x384xf32>, vector<8x384xf32> -> vector<8x384xf32>
    %175 = vector.extract_strided_slice %173 {offsets = [0, 0], sizes = [8, 128], strides = [1, 1]} : vector<8x384xf32> to vector<8x128xf32>
    %176 = vector.extract_strided_slice %174 {offsets = [0, 0], sizes = [8, 128], strides = [1, 1]} : vector<8x384xf32> to vector<8x128xf32>
    %177 = arith.addf %175, %176 : vector<8x128xf32>
    %cst_66 = arith.constant 5.000000e-01 : f32
    %178 = vector.broadcast %cst_66 : f32 to vector<8x128xf32>
    %179 = arith.mulf %178, %177 : vector<8x128xf32>
    %180 = math.tanh %179 : vector<8x128xf32>
    %cst_67 = arith.constant 1.000000e+00 : f32
    %181 = vector.broadcast %cst_67 : f32 to vector<8x128xf32>
    %182 = arith.addf %181, %180 : vector<8x128xf32>
    %cst_68 = arith.constant 5.000000e-01 : f32
    %183 = vector.broadcast %cst_68 : f32 to vector<8x128xf32>
    %184 = arith.mulf %183, %182 : vector<8x128xf32>
    %185 = vector.extract_strided_slice %173 {offsets = [0, 128], sizes = [8, 128], strides = [1, 1]} : vector<8x384xf32> to vector<8x128xf32>
    %186 = vector.extract_strided_slice %174 {offsets = [0, 128], sizes = [8, 128], strides = [1, 1]} : vector<8x384xf32> to vector<8x128xf32>
    %187 = arith.addf %185, %186 : vector<8x128xf32>
    %cst_69 = arith.constant 5.000000e-01 : f32
    %188 = vector.broadcast %cst_69 : f32 to vector<8x128xf32>
    %189 = arith.mulf %188, %187 : vector<8x128xf32>
    %190 = math.tanh %189 : vector<8x128xf32>
    %cst_70 = arith.constant 1.000000e+00 : f32
    %191 = vector.broadcast %cst_70 : f32 to vector<8x128xf32>
    %192 = arith.addf %191, %190 : vector<8x128xf32>
    %cst_71 = arith.constant 5.000000e-01 : f32
    %193 = vector.broadcast %cst_71 : f32 to vector<8x128xf32>
    %194 = arith.mulf %193, %192 : vector<8x128xf32>
    %195 = vector.extract_strided_slice %173 {offsets = [0, 256], sizes = [8, 128], strides = [1, 1]} : vector<8x384xf32> to vector<8x128xf32>
    %196 = vector.extract_strided_slice %174 {offsets = [0, 256], sizes = [8, 128], strides = [1, 1]} : vector<8x384xf32> to vector<8x128xf32>
    %197 = arith.addf %196, %16 : vector<8x128xf32>
    %198 = arith.mulf %184, %197 : vector<8x128xf32>
    %199 = arith.addf %195, %198 : vector<8x128xf32>
    %200 = math.tanh %199 : vector<8x128xf32>
    %cst_72 = arith.constant 1.000000e+00 : f32
    %201 = vector.broadcast %cst_72 : f32 to vector<8x128xf32>
    %202 = arith.subf %201, %194 : vector<8x128xf32>
    %203 = arith.mulf %202, %200 : vector<8x128xf32>
    %204 = arith.mulf %194, %167 : vector<8x128xf32>
    %205 = arith.addf %203, %204 : vector<8x128xf32>
    %206 = arith.index_cast %171 : i32 to index
    %c0_73 = arith.constant 0 : index
    %207 = vector.load %arg8[%206, %c0_73] : memref<64x128xf32, #tpu.memory_space<vmem>>, vector<8x128xf32>
    tpu.vector_store %arg8[%206, %c0_73], %205 {strides = array<i32>} : memref<64x128xf32, #tpu.memory_space<vmem>>, vector<8x128xf32>,
    %c5_i32 = arith.constant 5 : i32
    %c8_i32_74 = arith.constant 8 : i32
    %208 = arith.muli %c5_i32, %c8_i32_74 : i32
    %209 = tpu.assume_multiple %208, 8 : i32
    %210 = arith.index_cast %209 : i32 to index
    %c0_75 = arith.constant 0 : index
    %211 = vector.load %arg9[%210, %c0_75] : memref<64x384xf32, #tpu.memory_space<vmem>>, vector<8x384xf32>
    %cst_76 = arith.constant dense<0.000000e+00> : vector<8x384xf32>
    %212 = tpu.matmul %205, %12, %cst_76 {dimension_numbers = #tpu.dot_dimension_numbers<[1], [0], [0], [1], [0, 0, 1, 1], [], []>} : vector<8x128xf32>, vector<128x384xf32>, vector<8x384xf32> -> vector<8x384xf32>
    %213 = vector.extract_strided_slice %211 {offsets = [0, 0], sizes = [8, 128], strides = [1, 1]} : vector<8x384xf32> to vector<8x128xf32>
    %214 = vector.extract_strided_slice %212 {offsets = [0, 0], sizes = [8, 128], strides = [1, 1]} : vector<8x384xf32> to vector<8x128xf32>
    %215 = arith.addf %213, %214 : vector<8x128xf32>
    %cst_77 = arith.constant 5.000000e-01 : f32
    %216 = vector.broadcast %cst_77 : f32 to vector<8x128xf32>
    %217 = arith.mulf %216, %215 : vector<8x128xf32>
    %218 = math.tanh %217 : vector<8x128xf32>
    %cst_78 = arith.constant 1.000000e+00 : f32
    %219 = vector.broadcast %cst_78 : f32 to vector<8x128xf32>
    %220 = arith.addf %219, %218 : vector<8x128xf32>
    %cst_79 = arith.constant 5.000000e-01 : f32
    %221 = vector.broadcast %cst_79 : f32 to vector<8x128xf32>
    %222 = arith.mulf %221, %220 : vector<8x128xf32>
    %223 = vector.extract_strided_slice %211 {offsets = [0, 128], sizes = [8, 128], strides = [1, 1]} : vector<8x384xf32> to vector<8x128xf32>
    %224 = vector.extract_strided_slice %212 {offsets = [0, 128], sizes = [8, 128], strides = [1, 1]} : vector<8x384xf32> to vector<8x128xf32>
    %225 = arith.addf %223, %224 : vector<8x128xf32>
    %cst_80 = arith.constant 5.000000e-01 : f32
    %226 = vector.broadcast %cst_80 : f32 to vector<8x128xf32>
    %227 = arith.mulf %226, %225 : vector<8x128xf32>
    %228 = math.tanh %227 : vector<8x128xf32>
    %cst_81 = arith.constant 1.000000e+00 : f32
    %229 = vector.broadcast %cst_81 : f32 to vector<8x128xf32>
    %230 = arith.addf %229, %228 : vector<8x128xf32>
    %cst_82 = arith.constant 5.000000e-01 : f32
    %231 = vector.broadcast %cst_82 : f32 to vector<8x128xf32>
    %232 = arith.mulf %231, %230 : vector<8x128xf32>
    %233 = vector.extract_strided_slice %211 {offsets = [0, 256], sizes = [8, 128], strides = [1, 1]} : vector<8x384xf32> to vector<8x128xf32>
    %234 = vector.extract_strided_slice %212 {offsets = [0, 256], sizes = [8, 128], strides = [1, 1]} : vector<8x384xf32> to vector<8x128xf32>
    %235 = arith.addf %234, %16 : vector<8x128xf32>
    %236 = arith.mulf %222, %235 : vector<8x128xf32>
    %237 = arith.addf %233, %236 : vector<8x128xf32>
    %238 = math.tanh %237 : vector<8x128xf32>
    %cst_83 = arith.constant 1.000000e+00 : f32
    %239 = vector.broadcast %cst_83 : f32 to vector<8x128xf32>
    %240 = arith.subf %239, %232 : vector<8x128xf32>
    %241 = arith.mulf %240, %238 : vector<8x128xf32>
    %242 = arith.mulf %232, %205 : vector<8x128xf32>
    %243 = arith.addf %241, %242 : vector<8x128xf32>
    %244 = arith.index_cast %209 : i32 to index
    %c0_84 = arith.constant 0 : index
    %245 = vector.load %arg8[%244, %c0_84] : memref<64x128xf32, #tpu.memory_space<vmem>>, vector<8x128xf32>
    tpu.vector_store %arg8[%244, %c0_84], %243 {strides = array<i32>} : memref<64x128xf32, #tpu.memory_space<vmem>>, vector<8x128xf32>,
    %c6_i32 = arith.constant 6 : i32
    %c8_i32_85 = arith.constant 8 : i32
    %246 = arith.muli %c6_i32, %c8_i32_85 : i32
    %247 = tpu.assume_multiple %246, 8 : i32
    %248 = arith.index_cast %247 : i32 to index
    %c0_86 = arith.constant 0 : index
    %249 = vector.load %arg9[%248, %c0_86] : memref<64x384xf32, #tpu.memory_space<vmem>>, vector<8x384xf32>
    %cst_87 = arith.constant dense<0.000000e+00> : vector<8x384xf32>
    %250 = tpu.matmul %243, %12, %cst_87 {dimension_numbers = #tpu.dot_dimension_numbers<[1], [0], [0], [1], [0, 0, 1, 1], [], []>} : vector<8x128xf32>, vector<128x384xf32>, vector<8x384xf32> -> vector<8x384xf32>
    %251 = vector.extract_strided_slice %249 {offsets = [0, 0], sizes = [8, 128], strides = [1, 1]} : vector<8x384xf32> to vector<8x128xf32>
    %252 = vector.extract_strided_slice %250 {offsets = [0, 0], sizes = [8, 128], strides = [1, 1]} : vector<8x384xf32> to vector<8x128xf32>
    %253 = arith.addf %251, %252 : vector<8x128xf32>
    %cst_88 = arith.constant 5.000000e-01 : f32
    %254 = vector.broadcast %cst_88 : f32 to vector<8x128xf32>
    %255 = arith.mulf %254, %253 : vector<8x128xf32>
    %256 = math.tanh %255 : vector<8x128xf32>
    %cst_89 = arith.constant 1.000000e+00 : f32
    %257 = vector.broadcast %cst_89 : f32 to vector<8x128xf32>
    %258 = arith.addf %257, %256 : vector<8x128xf32>
    %cst_90 = arith.constant 5.000000e-01 : f32
    %259 = vector.broadcast %cst_90 : f32 to vector<8x128xf32>
    %260 = arith.mulf %259, %258 : vector<8x128xf32>
    %261 = vector.extract_strided_slice %249 {offsets = [0, 128], sizes = [8, 128], strides = [1, 1]} : vector<8x384xf32> to vector<8x128xf32>
    %262 = vector.extract_strided_slice %250 {offsets = [0, 128], sizes = [8, 128], strides = [1, 1]} : vector<8x384xf32> to vector<8x128xf32>
    %263 = arith.addf %261, %262 : vector<8x128xf32>
    %cst_91 = arith.constant 5.000000e-01 : f32
    %264 = vector.broadcast %cst_91 : f32 to vector<8x128xf32>
    %265 = arith.mulf %264, %263 : vector<8x128xf32>
    %266 = math.tanh %265 : vector<8x128xf32>
    %cst_92 = arith.constant 1.000000e+00 : f32
    %267 = vector.broadcast %cst_92 : f32 to vector<8x128xf32>
    %268 = arith.addf %267, %266 : vector<8x128xf32>
    %cst_93 = arith.constant 5.000000e-01 : f32
    %269 = vector.broadcast %cst_93 : f32 to vector<8x128xf32>
    %270 = arith.mulf %269, %268 : vector<8x128xf32>
    %271 = vector.extract_strided_slice %249 {offsets = [0, 256], sizes = [8, 128], strides = [1, 1]} : vector<8x384xf32> to vector<8x128xf32>
    %272 = vector.extract_strided_slice %250 {offsets = [0, 256], sizes = [8, 128], strides = [1, 1]} : vector<8x384xf32> to vector<8x128xf32>
    %273 = arith.addf %272, %16 : vector<8x128xf32>
    %274 = arith.mulf %260, %273 : vector<8x128xf32>
    %275 = arith.addf %271, %274 : vector<8x128xf32>
    %276 = math.tanh %275 : vector<8x128xf32>
    %cst_94 = arith.constant 1.000000e+00 : f32
    %277 = vector.broadcast %cst_94 : f32 to vector<8x128xf32>
    %278 = arith.subf %277, %270 : vector<8x128xf32>
    %279 = arith.mulf %278, %276 : vector<8x128xf32>
    %280 = arith.mulf %270, %243 : vector<8x128xf32>
    %281 = arith.addf %279, %280 : vector<8x128xf32>
    %282 = arith.index_cast %247 : i32 to index
    %c0_95 = arith.constant 0 : index
    %283 = vector.load %arg8[%282, %c0_95] : memref<64x128xf32, #tpu.memory_space<vmem>>, vector<8x128xf32>
    tpu.vector_store %arg8[%282, %c0_95], %281 {strides = array<i32>} : memref<64x128xf32, #tpu.memory_space<vmem>>, vector<8x128xf32>,
    %c7_i32 = arith.constant 7 : i32
    %c8_i32_96 = arith.constant 8 : i32
    %284 = arith.muli %c7_i32, %c8_i32_96 : i32
    %285 = tpu.assume_multiple %284, 8 : i32
    %286 = arith.index_cast %285 : i32 to index
    %c0_97 = arith.constant 0 : index
    %287 = vector.load %arg9[%286, %c0_97] : memref<64x384xf32, #tpu.memory_space<vmem>>, vector<8x384xf32>
    %cst_98 = arith.constant dense<0.000000e+00> : vector<8x384xf32>
    %288 = tpu.matmul %281, %12, %cst_98 {dimension_numbers = #tpu.dot_dimension_numbers<[1], [0], [0], [1], [0, 0, 1, 1], [], []>} : vector<8x128xf32>, vector<128x384xf32>, vector<8x384xf32> -> vector<8x384xf32>
    %289 = vector.extract_strided_slice %287 {offsets = [0, 0], sizes = [8, 128], strides = [1, 1]} : vector<8x384xf32> to vector<8x128xf32>
    %290 = vector.extract_strided_slice %288 {offsets = [0, 0], sizes = [8, 128], strides = [1, 1]} : vector<8x384xf32> to vector<8x128xf32>
    %291 = arith.addf %289, %290 : vector<8x128xf32>
    %cst_99 = arith.constant 5.000000e-01 : f32
    %292 = vector.broadcast %cst_99 : f32 to vector<8x128xf32>
    %293 = arith.mulf %292, %291 : vector<8x128xf32>
    %294 = math.tanh %293 : vector<8x128xf32>
    %cst_100 = arith.constant 1.000000e+00 : f32
    %295 = vector.broadcast %cst_100 : f32 to vector<8x128xf32>
    %296 = arith.addf %295, %294 : vector<8x128xf32>
    %cst_101 = arith.constant 5.000000e-01 : f32
    %297 = vector.broadcast %cst_101 : f32 to vector<8x128xf32>
    %298 = arith.mulf %297, %296 : vector<8x128xf32>
    %299 = vector.extract_strided_slice %287 {offsets = [0, 128], sizes = [8, 128], strides = [1, 1]} : vector<8x384xf32> to vector<8x128xf32>
    %300 = vector.extract_strided_slice %288 {offsets = [0, 128], sizes = [8, 128], strides = [1, 1]} : vector<8x384xf32> to vector<8x128xf32>
    %301 = arith.addf %299, %300 : vector<8x128xf32>
    %cst_102 = arith.constant 5.000000e-01 : f32
    %302 = vector.broadcast %cst_102 : f32 to vector<8x128xf32>
    %303 = arith.mulf %302, %301 : vector<8x128xf32>
    %304 = math.tanh %303 : vector<8x128xf32>
    %cst_103 = arith.constant 1.000000e+00 : f32
    %305 = vector.broadcast %cst_103 : f32 to vector<8x128xf32>
    %306 = arith.addf %305, %304 : vector<8x128xf32>
    %cst_104 = arith.constant 5.000000e-01 : f32
    %307 = vector.broadcast %cst_104 : f32 to vector<8x128xf32>
    %308 = arith.mulf %307, %306 : vector<8x128xf32>
    %309 = vector.extract_strided_slice %287 {offsets = [0, 256], sizes = [8, 128], strides = [1, 1]} : vector<8x384xf32> to vector<8x128xf32>
    %310 = vector.extract_strided_slice %288 {offsets = [0, 256], sizes = [8, 128], strides = [1, 1]} : vector<8x384xf32> to vector<8x128xf32>
    %311 = arith.addf %310, %16 : vector<8x128xf32>
    %312 = arith.mulf %298, %311 : vector<8x128xf32>
    %313 = arith.addf %309, %312 : vector<8x128xf32>
    %314 = math.tanh %313 : vector<8x128xf32>
    %cst_105 = arith.constant 1.000000e+00 : f32
    %315 = vector.broadcast %cst_105 : f32 to vector<8x128xf32>
    %316 = arith.subf %315, %308 : vector<8x128xf32>
    %317 = arith.mulf %316, %314 : vector<8x128xf32>
    %318 = arith.mulf %308, %281 : vector<8x128xf32>
    %319 = arith.addf %317, %318 : vector<8x128xf32>
    %320 = arith.index_cast %285 : i32 to index
    %c0_106 = arith.constant 0 : index
    %321 = vector.load %arg8[%320, %c0_106] : memref<64x128xf32, #tpu.memory_space<vmem>>, vector<8x128xf32>
    tpu.vector_store %arg8[%320, %c0_106], %319 {strides = array<i32>} : memref<64x128xf32, #tpu.memory_space<vmem>>, vector<8x128xf32>,
    %c8_i32_107 = arith.constant 8 : i32
    %c0_108 = arith.constant 0 : index
    %c0_109 = arith.constant 0 : index
    %322 = vector.load %arg8[%c0_108, %c0_109] : memref<64x128xf32, #tpu.memory_space<vmem>>, vector<64x128xf32>
    %c1 = arith.constant 1 : index
    %c0_110 = arith.constant 0 : index
    %c0_111 = arith.constant 0 : index
    %323 = vector.load %arg1[%c1, %c0_110, %c0_111] : memref<2x128x384xf32, #tpu.memory_space<vmem>>, vector<1x128x384xf32>
    %324 = vector.shape_cast %323 : vector<1x128x384xf32> to vector<128x384xf32>
    %cst_112 = arith.constant dense<0.000000e+00> : vector<64x384xf32>
    %325 = tpu.matmul %322, %324, %cst_112 {dimension_numbers = #tpu.dot_dimension_numbers<[1], [0], [0], [1], [0, 0, 1, 1], [], []>} : vector<64x128xf32>, vector<128x384xf32>, vector<64x384xf32> -> vector<64x384xf32>
    %c1_113 = arith.constant 1 : index
    %c0_114 = arith.constant 0 : index
    %c0_115 = arith.constant 0 : index
    %326 = vector.load %arg3[%c1_113, %c0_114, %c0_115] : memref<2x1x384xf32, #tpu.memory_space<vmem>>, vector<1x1x384xf32>
    %327 = vector.shape_cast %326 : vector<1x1x384xf32> to vector<1x384xf32>
    %328 = vector.broadcast %327 : vector<1x384xf32> to vector<64x384xf32>
    %329 = arith.addf %325, %328 : vector<64x384xf32>
    %c0_116 = arith.constant 0 : index
    %c0_117 = arith.constant 0 : index
    %330 = vector.load %arg9[%c0_116, %c0_117] : memref<64x384xf32, #tpu.memory_space<vmem>>, vector<64x384xf32>
    tpu.vector_store %arg9[%c0_116, %c0_117], %329 {strides = array<i32>} : memref<64x384xf32, #tpu.memory_space<vmem>>, vector<64x384xf32>,
    %c1_118 = arith.constant 1 : index
    %c0_119 = arith.constant 0 : index
    %c0_120 = arith.constant 0 : index
    %331 = vector.load %arg2[%c1_118, %c0_119, %c0_120] : memref<2x128x384xf32, #tpu.memory_space<vmem>>, vector<1x128x384xf32>
    %332 = vector.shape_cast %331 : vector<1x128x384xf32> to vector<128x384xf32>
    %c1_121 = arith.constant 1 : index
    %c0_122 = arith.constant 0 : index
    %c0_123 = arith.constant 0 : index
    %333 = vector.load %arg4[%c1_121, %c0_122, %c0_123] : memref<2x1x128xf32, #tpu.memory_space<vmem>>, vector<1x1x128xf32>
    %334 = vector.shape_cast %333 : vector<1x1x128xf32> to vector<1x128xf32>
    %335 = vector.shape_cast %334 : vector<1x128xf32> to vector<1x128xf32>
    %336 = vector.broadcast %335 : vector<1x128xf32> to vector<8x128xf32>
    %cst_124 = arith.constant 0.000000e+00 : f32
    %337 = vector.broadcast %cst_124 : f32 to vector<8x128xf32>
    %c0_i32_125 = arith.constant 0 : i32
    %c8_i32_126 = arith.constant 8 : i32
    %338 = arith.muli %c0_i32_125, %c8_i32_126 : i32
    %339 = tpu.assume_multiple %338, 8 : i32
    %340 = arith.index_cast %339 : i32 to index
    %c0_127 = arith.constant 0 : index
    %341 = vector.load %arg9[%340, %c0_127] : memref<64x384xf32, #tpu.memory_space<vmem>>, vector<8x384xf32>
    %cst_128 = arith.constant dense<0.000000e+00> : vector<8x384xf32>
    %342 = tpu.matmul %337, %332, %cst_128 {dimension_numbers = #tpu.dot_dimension_numbers<[1], [0], [0], [1], [0, 0, 1, 1], [], []>} : vector<8x128xf32>, vector<128x384xf32>, vector<8x384xf32> -> vector<8x384xf32>
    %343 = vector.extract_strided_slice %341 {offsets = [0, 0], sizes = [8, 128], strides = [1, 1]} : vector<8x384xf32> to vector<8x128xf32>
    %344 = vector.extract_strided_slice %342 {offsets = [0, 0], sizes = [8, 128], strides = [1, 1]} : vector<8x384xf32> to vector<8x128xf32>
    %345 = arith.addf %343, %344 : vector<8x128xf32>
    %cst_129 = arith.constant 5.000000e-01 : f32
    %346 = vector.broadcast %cst_129 : f32 to vector<8x128xf32>
    %347 = arith.mulf %346, %345 : vector<8x128xf32>
    %348 = math.tanh %347 : vector<8x128xf32>
    %cst_130 = arith.constant 1.000000e+00 : f32
    %349 = vector.broadcast %cst_130 : f32 to vector<8x128xf32>
    %350 = arith.addf %349, %348 : vector<8x128xf32>
    %cst_131 = arith.constant 5.000000e-01 : f32
    %351 = vector.broadcast %cst_131 : f32 to vector<8x128xf32>
    %352 = arith.mulf %351, %350 : vector<8x128xf32>
    %353 = vector.extract_strided_slice %341 {offsets = [0, 128], sizes = [8, 128], strides = [1, 1]} : vector<8x384xf32> to vector<8x128xf32>
    %354 = vector.extract_strided_slice %342 {offsets = [0, 128], sizes = [8, 128], strides = [1, 1]} : vector<8x384xf32> to vector<8x128xf32>
    %355 = arith.addf %353, %354 : vector<8x128xf32>
    %cst_132 = arith.constant 5.000000e-01 : f32
    %356 = vector.broadcast %cst_132 : f32 to vector<8x128xf32>
    %357 = arith.mulf %356, %355 : vector<8x128xf32>
    %358 = math.tanh %357 : vector<8x128xf32>
    %cst_133 = arith.constant 1.000000e+00 : f32
    %359 = vector.broadcast %cst_133 : f32 to vector<8x128xf32>
    %360 = arith.addf %359, %358 : vector<8x128xf32>
    %cst_134 = arith.constant 5.000000e-01 : f32
    %361 = vector.broadcast %cst_134 : f32 to vector<8x128xf32>
    %362 = arith.mulf %361, %360 : vector<8x128xf32>
    %363 = vector.extract_strided_slice %341 {offsets = [0, 256], sizes = [8, 128], strides = [1, 1]} : vector<8x384xf32> to vector<8x128xf32>
    %364 = vector.extract_strided_slice %342 {offsets = [0, 256], sizes = [8, 128], strides = [1, 1]} : vector<8x384xf32> to vector<8x128xf32>
    %365 = arith.addf %364, %336 : vector<8x128xf32>
    %366 = arith.mulf %352, %365 : vector<8x128xf32>
    %367 = arith.addf %363, %366 : vector<8x128xf32>
    %368 = math.tanh %367 : vector<8x128xf32>
    %cst_135 = arith.constant 1.000000e+00 : f32
    %369 = vector.broadcast %cst_135 : f32 to vector<8x128xf32>
    %370 = arith.subf %369, %362 : vector<8x128xf32>
    %371 = arith.mulf %370, %368 : vector<8x128xf32>
    %372 = arith.mulf %362, %337 : vector<8x128xf32>
    %373 = arith.addf %371, %372 : vector<8x128xf32>
    %374 = arith.index_cast %339 : i32 to index
    %c0_136 = arith.constant 0 : index
    %375 = vector.load %arg8[%374, %c0_136] : memref<64x128xf32, #tpu.memory_space<vmem>>, vector<8x128xf32>
    tpu.vector_store %arg8[%374, %c0_136], %373 {strides = array<i32>} : memref<64x128xf32, #tpu.memory_space<vmem>>, vector<8x128xf32>,
    %c1_i32_137 = arith.constant 1 : i32
    %c8_i32_138 = arith.constant 8 : i32
    %376 = arith.muli %c1_i32_137, %c8_i32_138 : i32
    %377 = tpu.assume_multiple %376, 8 : i32
    %378 = arith.index_cast %377 : i32 to index
    %c0_139 = arith.constant 0 : index
    %379 = vector.load %arg9[%378, %c0_139] : memref<64x384xf32, #tpu.memory_space<vmem>>, vector<8x384xf32>
    %cst_140 = arith.constant dense<0.000000e+00> : vector<8x384xf32>
    %380 = tpu.matmul %373, %332, %cst_140 {dimension_numbers = #tpu.dot_dimension_numbers<[1], [0], [0], [1], [0, 0, 1, 1], [], []>} : vector<8x128xf32>, vector<128x384xf32>, vector<8x384xf32> -> vector<8x384xf32>
    %381 = vector.extract_strided_slice %379 {offsets = [0, 0], sizes = [8, 128], strides = [1, 1]} : vector<8x384xf32> to vector<8x128xf32>
    %382 = vector.extract_strided_slice %380 {offsets = [0, 0], sizes = [8, 128], strides = [1, 1]} : vector<8x384xf32> to vector<8x128xf32>
    %383 = arith.addf %381, %382 : vector<8x128xf32>
    %cst_141 = arith.constant 5.000000e-01 : f32
    %384 = vector.broadcast %cst_141 : f32 to vector<8x128xf32>
    %385 = arith.mulf %384, %383 : vector<8x128xf32>
    %386 = math.tanh %385 : vector<8x128xf32>
    %cst_142 = arith.constant 1.000000e+00 : f32
    %387 = vector.broadcast %cst_142 : f32 to vector<8x128xf32>
    %388 = arith.addf %387, %386 : vector<8x128xf32>
    %cst_143 = arith.constant 5.000000e-01 : f32
    %389 = vector.broadcast %cst_143 : f32 to vector<8x128xf32>
    %390 = arith.mulf %389, %388 : vector<8x128xf32>
    %391 = vector.extract_strided_slice %379 {offsets = [0, 128], sizes = [8, 128], strides = [1, 1]} : vector<8x384xf32> to vector<8x128xf32>
    %392 = vector.extract_strided_slice %380 {offsets = [0, 128], sizes = [8, 128], strides = [1, 1]} : vector<8x384xf32> to vector<8x128xf32>
    %393 = arith.addf %391, %392 : vector<8x128xf32>
    %cst_144 = arith.constant 5.000000e-01 : f32
    %394 = vector.broadcast %cst_144 : f32 to vector<8x128xf32>
    %395 = arith.mulf %394, %393 : vector<8x128xf32>
    %396 = math.tanh %395 : vector<8x128xf32>
    %cst_145 = arith.constant 1.000000e+00 : f32
    %397 = vector.broadcast %cst_145 : f32 to vector<8x128xf32>
    %398 = arith.addf %397, %396 : vector<8x128xf32>
    %cst_146 = arith.constant 5.000000e-01 : f32
    %399 = vector.broadcast %cst_146 : f32 to vector<8x128xf32>
    %400 = arith.mulf %399, %398 : vector<8x128xf32>
    %401 = vector.extract_strided_slice %379 {offsets = [0, 256], sizes = [8, 128], strides = [1, 1]} : vector<8x384xf32> to vector<8x128xf32>
    %402 = vector.extract_strided_slice %380 {offsets = [0, 256], sizes = [8, 128], strides = [1, 1]} : vector<8x384xf32> to vector<8x128xf32>
    %403 = arith.addf %402, %336 : vector<8x128xf32>
    %404 = arith.mulf %390, %403 : vector<8x128xf32>
    %405 = arith.addf %401, %404 : vector<8x128xf32>
    %406 = math.tanh %405 : vector<8x128xf32>
    %cst_147 = arith.constant 1.000000e+00 : f32
    %407 = vector.broadcast %cst_147 : f32 to vector<8x128xf32>
    %408 = arith.subf %407, %400 : vector<8x128xf32>
    %409 = arith.mulf %408, %406 : vector<8x128xf32>
    %410 = arith.mulf %400, %373 : vector<8x128xf32>
    %411 = arith.addf %409, %410 : vector<8x128xf32>
    %412 = arith.index_cast %377 : i32 to index
    %c0_148 = arith.constant 0 : index
    %413 = vector.load %arg8[%412, %c0_148] : memref<64x128xf32, #tpu.memory_space<vmem>>, vector<8x128xf32>
    tpu.vector_store %arg8[%412, %c0_148], %411 {strides = array<i32>} : memref<64x128xf32, #tpu.memory_space<vmem>>, vector<8x128xf32>,
    %c2_i32_149 = arith.constant 2 : i32
    %c8_i32_150 = arith.constant 8 : i32
    %414 = arith.muli %c2_i32_149, %c8_i32_150 : i32
    %415 = tpu.assume_multiple %414, 8 : i32
    %416 = arith.index_cast %415 : i32 to index
    %c0_151 = arith.constant 0 : index
    %417 = vector.load %arg9[%416, %c0_151] : memref<64x384xf32, #tpu.memory_space<vmem>>, vector<8x384xf32>
    %cst_152 = arith.constant dense<0.000000e+00> : vector<8x384xf32>
    %418 = tpu.matmul %411, %332, %cst_152 {dimension_numbers = #tpu.dot_dimension_numbers<[1], [0], [0], [1], [0, 0, 1, 1], [], []>} : vector<8x128xf32>, vector<128x384xf32>, vector<8x384xf32> -> vector<8x384xf32>
    %419 = vector.extract_strided_slice %417 {offsets = [0, 0], sizes = [8, 128], strides = [1, 1]} : vector<8x384xf32> to vector<8x128xf32>
    %420 = vector.extract_strided_slice %418 {offsets = [0, 0], sizes = [8, 128], strides = [1, 1]} : vector<8x384xf32> to vector<8x128xf32>
    %421 = arith.addf %419, %420 : vector<8x128xf32>
    %cst_153 = arith.constant 5.000000e-01 : f32
    %422 = vector.broadcast %cst_153 : f32 to vector<8x128xf32>
    %423 = arith.mulf %422, %421 : vector<8x128xf32>
    %424 = math.tanh %423 : vector<8x128xf32>
    %cst_154 = arith.constant 1.000000e+00 : f32
    %425 = vector.broadcast %cst_154 : f32 to vector<8x128xf32>
    %426 = arith.addf %425, %424 : vector<8x128xf32>
    %cst_155 = arith.constant 5.000000e-01 : f32
    %427 = vector.broadcast %cst_155 : f32 to vector<8x128xf32>
    %428 = arith.mulf %427, %426 : vector<8x128xf32>
    %429 = vector.extract_strided_slice %417 {offsets = [0, 128], sizes = [8, 128], strides = [1, 1]} : vector<8x384xf32> to vector<8x128xf32>
    %430 = vector.extract_strided_slice %418 {offsets = [0, 128], sizes = [8, 128], strides = [1, 1]} : vector<8x384xf32> to vector<8x128xf32>
    %431 = arith.addf %429, %430 : vector<8x128xf32>
    %cst_156 = arith.constant 5.000000e-01 : f32
    %432 = vector.broadcast %cst_156 : f32 to vector<8x128xf32>
    %433 = arith.mulf %432, %431 : vector<8x128xf32>
    %434 = math.tanh %433 : vector<8x128xf32>
    %cst_157 = arith.constant 1.000000e+00 : f32
    %435 = vector.broadcast %cst_157 : f32 to vector<8x128xf32>
    %436 = arith.addf %435, %434 : vector<8x128xf32>
    %cst_158 = arith.constant 5.000000e-01 : f32
    %437 = vector.broadcast %cst_158 : f32 to vector<8x128xf32>
    %438 = arith.mulf %437, %436 : vector<8x128xf32>
    %439 = vector.extract_strided_slice %417 {offsets = [0, 256], sizes = [8, 128], strides = [1, 1]} : vector<8x384xf32> to vector<8x128xf32>
    %440 = vector.extract_strided_slice %418 {offsets = [0, 256], sizes = [8, 128], strides = [1, 1]} : vector<8x384xf32> to vector<8x128xf32>
    %441 = arith.addf %440, %336 : vector<8x128xf32>
    %442 = arith.mulf %428, %441 : vector<8x128xf32>
    %443 = arith.addf %439, %442 : vector<8x128xf32>
    %444 = math.tanh %443 : vector<8x128xf32>
    %cst_159 = arith.constant 1.000000e+00 : f32
    %445 = vector.broadcast %cst_159 : f32 to vector<8x128xf32>
    %446 = arith.subf %445, %438 : vector<8x128xf32>
    %447 = arith.mulf %446, %444 : vector<8x128xf32>
    %448 = arith.mulf %438, %411 : vector<8x128xf32>
    %449 = arith.addf %447, %448 : vector<8x128xf32>
    %450 = arith.index_cast %415 : i32 to index
    %c0_160 = arith.constant 0 : index
    %451 = vector.load %arg8[%450, %c0_160] : memref<64x128xf32, #tpu.memory_space<vmem>>, vector<8x128xf32>
    tpu.vector_store %arg8[%450, %c0_160], %449 {strides = array<i32>} : memref<64x128xf32, #tpu.memory_space<vmem>>, vector<8x128xf32>,
    %c3_i32_161 = arith.constant 3 : i32
    %c8_i32_162 = arith.constant 8 : i32
    %452 = arith.muli %c3_i32_161, %c8_i32_162 : i32
    %453 = tpu.assume_multiple %452, 8 : i32
    %454 = arith.index_cast %453 : i32 to index
    %c0_163 = arith.constant 0 : index
    %455 = vector.load %arg9[%454, %c0_163] : memref<64x384xf32, #tpu.memory_space<vmem>>, vector<8x384xf32>
    %cst_164 = arith.constant dense<0.000000e+00> : vector<8x384xf32>
    %456 = tpu.matmul %449, %332, %cst_164 {dimension_numbers = #tpu.dot_dimension_numbers<[1], [0], [0], [1], [0, 0, 1, 1], [], []>} : vector<8x128xf32>, vector<128x384xf32>, vector<8x384xf32> -> vector<8x384xf32>
    %457 = vector.extract_strided_slice %455 {offsets = [0, 0], sizes = [8, 128], strides = [1, 1]} : vector<8x384xf32> to vector<8x128xf32>
    %458 = vector.extract_strided_slice %456 {offsets = [0, 0], sizes = [8, 128], strides = [1, 1]} : vector<8x384xf32> to vector<8x128xf32>
    %459 = arith.addf %457, %458 : vector<8x128xf32>
    %cst_165 = arith.constant 5.000000e-01 : f32
    %460 = vector.broadcast %cst_165 : f32 to vector<8x128xf32>
    %461 = arith.mulf %460, %459 : vector<8x128xf32>
    %462 = math.tanh %461 : vector<8x128xf32>
    %cst_166 = arith.constant 1.000000e+00 : f32
    %463 = vector.broadcast %cst_166 : f32 to vector<8x128xf32>
    %464 = arith.addf %463, %462 : vector<8x128xf32>
    %cst_167 = arith.constant 5.000000e-01 : f32
    %465 = vector.broadcast %cst_167 : f32 to vector<8x128xf32>
    %466 = arith.mulf %465, %464 : vector<8x128xf32>
    %467 = vector.extract_strided_slice %455 {offsets = [0, 128], sizes = [8, 128], strides = [1, 1]} : vector<8x384xf32> to vector<8x128xf32>
    %468 = vector.extract_strided_slice %456 {offsets = [0, 128], sizes = [8, 128], strides = [1, 1]} : vector<8x384xf32> to vector<8x128xf32>
    %469 = arith.addf %467, %468 : vector<8x128xf32>
    %cst_168 = arith.constant 5.000000e-01 : f32
    %470 = vector.broadcast %cst_168 : f32 to vector<8x128xf32>
    %471 = arith.mulf %470, %469 : vector<8x128xf32>
    %472 = math.tanh %471 : vector<8x128xf32>
    %cst_169 = arith.constant 1.000000e+00 : f32
    %473 = vector.broadcast %cst_169 : f32 to vector<8x128xf32>
    %474 = arith.addf %473, %472 : vector<8x128xf32>
    %cst_170 = arith.constant 5.000000e-01 : f32
    %475 = vector.broadcast %cst_170 : f32 to vector<8x128xf32>
    %476 = arith.mulf %475, %474 : vector<8x128xf32>
    %477 = vector.extract_strided_slice %455 {offsets = [0, 256], sizes = [8, 128], strides = [1, 1]} : vector<8x384xf32> to vector<8x128xf32>
    %478 = vector.extract_strided_slice %456 {offsets = [0, 256], sizes = [8, 128], strides = [1, 1]} : vector<8x384xf32> to vector<8x128xf32>
    %479 = arith.addf %478, %336 : vector<8x128xf32>
    %480 = arith.mulf %466, %479 : vector<8x128xf32>
    %481 = arith.addf %477, %480 : vector<8x128xf32>
    %482 = math.tanh %481 : vector<8x128xf32>
    %cst_171 = arith.constant 1.000000e+00 : f32
    %483 = vector.broadcast %cst_171 : f32 to vector<8x128xf32>
    %484 = arith.subf %483, %476 : vector<8x128xf32>
    %485 = arith.mulf %484, %482 : vector<8x128xf32>
    %486 = arith.mulf %476, %449 : vector<8x128xf32>
    %487 = arith.addf %485, %486 : vector<8x128xf32>
    %488 = arith.index_cast %453 : i32 to index
    %c0_172 = arith.constant 0 : index
    %489 = vector.load %arg8[%488, %c0_172] : memref<64x128xf32, #tpu.memory_space<vmem>>, vector<8x128xf32>
    tpu.vector_store %arg8[%488, %c0_172], %487 {strides = array<i32>} : memref<64x128xf32, #tpu.memory_space<vmem>>, vector<8x128xf32>,
    %c4_i32_173 = arith.constant 4 : i32
    %c8_i32_174 = arith.constant 8 : i32
    %490 = arith.muli %c4_i32_173, %c8_i32_174 : i32
    %491 = tpu.assume_multiple %490, 8 : i32
    %492 = arith.index_cast %491 : i32 to index
    %c0_175 = arith.constant 0 : index
    %493 = vector.load %arg9[%492, %c0_175] : memref<64x384xf32, #tpu.memory_space<vmem>>, vector<8x384xf32>
    %cst_176 = arith.constant dense<0.000000e+00> : vector<8x384xf32>
    %494 = tpu.matmul %487, %332, %cst_176 {dimension_numbers = #tpu.dot_dimension_numbers<[1], [0], [0], [1], [0, 0, 1, 1], [], []>} : vector<8x128xf32>, vector<128x384xf32>, vector<8x384xf32> -> vector<8x384xf32>
    %495 = vector.extract_strided_slice %493 {offsets = [0, 0], sizes = [8, 128], strides = [1, 1]} : vector<8x384xf32> to vector<8x128xf32>
    %496 = vector.extract_strided_slice %494 {offsets = [0, 0], sizes = [8, 128], strides = [1, 1]} : vector<8x384xf32> to vector<8x128xf32>
    %497 = arith.addf %495, %496 : vector<8x128xf32>
    %cst_177 = arith.constant 5.000000e-01 : f32
    %498 = vector.broadcast %cst_177 : f32 to vector<8x128xf32>
    %499 = arith.mulf %498, %497 : vector<8x128xf32>
    %500 = math.tanh %499 : vector<8x128xf32>
    %cst_178 = arith.constant 1.000000e+00 : f32
    %501 = vector.broadcast %cst_178 : f32 to vector<8x128xf32>
    %502 = arith.addf %501, %500 : vector<8x128xf32>
    %cst_179 = arith.constant 5.000000e-01 : f32
    %503 = vector.broadcast %cst_179 : f32 to vector<8x128xf32>
    %504 = arith.mulf %503, %502 : vector<8x128xf32>
    %505 = vector.extract_strided_slice %493 {offsets = [0, 128], sizes = [8, 128], strides = [1, 1]} : vector<8x384xf32> to vector<8x128xf32>
    %506 = vector.extract_strided_slice %494 {offsets = [0, 128], sizes = [8, 128], strides = [1, 1]} : vector<8x384xf32> to vector<8x128xf32>
    %507 = arith.addf %505, %506 : vector<8x128xf32>
    %cst_180 = arith.constant 5.000000e-01 : f32
    %508 = vector.broadcast %cst_180 : f32 to vector<8x128xf32>
    %509 = arith.mulf %508, %507 : vector<8x128xf32>
    %510 = math.tanh %509 : vector<8x128xf32>
    %cst_181 = arith.constant 1.000000e+00 : f32
    %511 = vector.broadcast %cst_181 : f32 to vector<8x128xf32>
    %512 = arith.addf %511, %510 : vector<8x128xf32>
    %cst_182 = arith.constant 5.000000e-01 : f32
    %513 = vector.broadcast %cst_182 : f32 to vector<8x128xf32>
    %514 = arith.mulf %513, %512 : vector<8x128xf32>
    %515 = vector.extract_strided_slice %493 {offsets = [0, 256], sizes = [8, 128], strides = [1, 1]} : vector<8x384xf32> to vector<8x128xf32>
    %516 = vector.extract_strided_slice %494 {offsets = [0, 256], sizes = [8, 128], strides = [1, 1]} : vector<8x384xf32> to vector<8x128xf32>
    %517 = arith.addf %516, %336 : vector<8x128xf32>
    %518 = arith.mulf %504, %517 : vector<8x128xf32>
    %519 = arith.addf %515, %518 : vector<8x128xf32>
    %520 = math.tanh %519 : vector<8x128xf32>
    %cst_183 = arith.constant 1.000000e+00 : f32
    %521 = vector.broadcast %cst_183 : f32 to vector<8x128xf32>
    %522 = arith.subf %521, %514 : vector<8x128xf32>
    %523 = arith.mulf %522, %520 : vector<8x128xf32>
    %524 = arith.mulf %514, %487 : vector<8x128xf32>
    %525 = arith.addf %523, %524 : vector<8x128xf32>
    %526 = arith.index_cast %491 : i32 to index
    %c0_184 = arith.constant 0 : index
    %527 = vector.load %arg8[%526, %c0_184] : memref<64x128xf32, #tpu.memory_space<vmem>>, vector<8x128xf32>
    tpu.vector_store %arg8[%526, %c0_184], %525 {strides = array<i32>} : memref<64x128xf32, #tpu.memory_space<vmem>>, vector<8x128xf32>,
    %c5_i32_185 = arith.constant 5 : i32
    %c8_i32_186 = arith.constant 8 : i32
    %528 = arith.muli %c5_i32_185, %c8_i32_186 : i32
    %529 = tpu.assume_multiple %528, 8 : i32
    %530 = arith.index_cast %529 : i32 to index
    %c0_187 = arith.constant 0 : index
    %531 = vector.load %arg9[%530, %c0_187] : memref<64x384xf32, #tpu.memory_space<vmem>>, vector<8x384xf32>
    %cst_188 = arith.constant dense<0.000000e+00> : vector<8x384xf32>
    %532 = tpu.matmul %525, %332, %cst_188 {dimension_numbers = #tpu.dot_dimension_numbers<[1], [0], [0], [1], [0, 0, 1, 1], [], []>} : vector<8x128xf32>, vector<128x384xf32>, vector<8x384xf32> -> vector<8x384xf32>
    %533 = vector.extract_strided_slice %531 {offsets = [0, 0], sizes = [8, 128], strides = [1, 1]} : vector<8x384xf32> to vector<8x128xf32>
    %534 = vector.extract_strided_slice %532 {offsets = [0, 0], sizes = [8, 128], strides = [1, 1]} : vector<8x384xf32> to vector<8x128xf32>
    %535 = arith.addf %533, %534 : vector<8x128xf32>
    %cst_189 = arith.constant 5.000000e-01 : f32
    %536 = vector.broadcast %cst_189 : f32 to vector<8x128xf32>
    %537 = arith.mulf %536, %535 : vector<8x128xf32>
    %538 = math.tanh %537 : vector<8x128xf32>
    %cst_190 = arith.constant 1.000000e+00 : f32
    %539 = vector.broadcast %cst_190 : f32 to vector<8x128xf32>
    %540 = arith.addf %539, %538 : vector<8x128xf32>
    %cst_191 = arith.constant 5.000000e-01 : f32
    %541 = vector.broadcast %cst_191 : f32 to vector<8x128xf32>
    %542 = arith.mulf %541, %540 : vector<8x128xf32>
    %543 = vector.extract_strided_slice %531 {offsets = [0, 128], sizes = [8, 128], strides = [1, 1]} : vector<8x384xf32> to vector<8x128xf32>
    %544 = vector.extract_strided_slice %532 {offsets = [0, 128], sizes = [8, 128], strides = [1, 1]} : vector<8x384xf32> to vector<8x128xf32>
    %545 = arith.addf %543, %544 : vector<8x128xf32>
    %cst_192 = arith.constant 5.000000e-01 : f32
    %546 = vector.broadcast %cst_192 : f32 to vector<8x128xf32>
    %547 = arith.mulf %546, %545 : vector<8x128xf32>
    %548 = math.tanh %547 : vector<8x128xf32>
    %cst_193 = arith.constant 1.000000e+00 : f32
    %549 = vector.broadcast %cst_193 : f32 to vector<8x128xf32>
    %550 = arith.addf %549, %548 : vector<8x128xf32>
    %cst_194 = arith.constant 5.000000e-01 : f32
    %551 = vector.broadcast %cst_194 : f32 to vector<8x128xf32>
    %552 = arith.mulf %551, %550 : vector<8x128xf32>
    %553 = vector.extract_strided_slice %531 {offsets = [0, 256], sizes = [8, 128], strides = [1, 1]} : vector<8x384xf32> to vector<8x128xf32>
    %554 = vector.extract_strided_slice %532 {offsets = [0, 256], sizes = [8, 128], strides = [1, 1]} : vector<8x384xf32> to vector<8x128xf32>
    %555 = arith.addf %554, %336 : vector<8x128xf32>
    %556 = arith.mulf %542, %555 : vector<8x128xf32>
    %557 = arith.addf %553, %556 : vector<8x128xf32>
    %558 = math.tanh %557 : vector<8x128xf32>
    %cst_195 = arith.constant 1.000000e+00 : f32
    %559 = vector.broadcast %cst_195 : f32 to vector<8x128xf32>
    %560 = arith.subf %559, %552 : vector<8x128xf32>
    %561 = arith.mulf %560, %558 : vector<8x128xf32>
    %562 = arith.mulf %552, %525 : vector<8x128xf32>
    %563 = arith.addf %561, %562 : vector<8x128xf32>
    %564 = arith.index_cast %529 : i32 to index
    %c0_196 = arith.constant 0 : index
    %565 = vector.load %arg8[%564, %c0_196] : memref<64x128xf32, #tpu.memory_space<vmem>>, vector<8x128xf32>
    tpu.vector_store %arg8[%564, %c0_196], %563 {strides = array<i32>} : memref<64x128xf32, #tpu.memory_space<vmem>>, vector<8x128xf32>,
    %c6_i32_197 = arith.constant 6 : i32
    %c8_i32_198 = arith.constant 8 : i32
    %566 = arith.muli %c6_i32_197, %c8_i32_198 : i32
    %567 = tpu.assume_multiple %566, 8 : i32
    %568 = arith.index_cast %567 : i32 to index
    %c0_199 = arith.constant 0 : index
    %569 = vector.load %arg9[%568, %c0_199] : memref<64x384xf32, #tpu.memory_space<vmem>>, vector<8x384xf32>
    %cst_200 = arith.constant dense<0.000000e+00> : vector<8x384xf32>
    %570 = tpu.matmul %563, %332, %cst_200 {dimension_numbers = #tpu.dot_dimension_numbers<[1], [0], [0], [1], [0, 0, 1, 1], [], []>} : vector<8x128xf32>, vector<128x384xf32>, vector<8x384xf32> -> vector<8x384xf32>
    %571 = vector.extract_strided_slice %569 {offsets = [0, 0], sizes = [8, 128], strides = [1, 1]} : vector<8x384xf32> to vector<8x128xf32>
    %572 = vector.extract_strided_slice %570 {offsets = [0, 0], sizes = [8, 128], strides = [1, 1]} : vector<8x384xf32> to vector<8x128xf32>
    %573 = arith.addf %571, %572 : vector<8x128xf32>
    %cst_201 = arith.constant 5.000000e-01 : f32
    %574 = vector.broadcast %cst_201 : f32 to vector<8x128xf32>
    %575 = arith.mulf %574, %573 : vector<8x128xf32>
    %576 = math.tanh %575 : vector<8x128xf32>
    %cst_202 = arith.constant 1.000000e+00 : f32
    %577 = vector.broadcast %cst_202 : f32 to vector<8x128xf32>
    %578 = arith.addf %577, %576 : vector<8x128xf32>
    %cst_203 = arith.constant 5.000000e-01 : f32
    %579 = vector.broadcast %cst_203 : f32 to vector<8x128xf32>
    %580 = arith.mulf %579, %578 : vector<8x128xf32>
    %581 = vector.extract_strided_slice %569 {offsets = [0, 128], sizes = [8, 128], strides = [1, 1]} : vector<8x384xf32> to vector<8x128xf32>
    %582 = vector.extract_strided_slice %570 {offsets = [0, 128], sizes = [8, 128], strides = [1, 1]} : vector<8x384xf32> to vector<8x128xf32>
    %583 = arith.addf %581, %582 : vector<8x128xf32>
    %cst_204 = arith.constant 5.000000e-01 : f32
    %584 = vector.broadcast %cst_204 : f32 to vector<8x128xf32>
    %585 = arith.mulf %584, %583 : vector<8x128xf32>
    %586 = math.tanh %585 : vector<8x128xf32>
    %cst_205 = arith.constant 1.000000e+00 : f32
    %587 = vector.broadcast %cst_205 : f32 to vector<8x128xf32>
    %588 = arith.addf %587, %586 : vector<8x128xf32>
    %cst_206 = arith.constant 5.000000e-01 : f32
    %589 = vector.broadcast %cst_206 : f32 to vector<8x128xf32>
    %590 = arith.mulf %589, %588 : vector<8x128xf32>
    %591 = vector.extract_strided_slice %569 {offsets = [0, 256], sizes = [8, 128], strides = [1, 1]} : vector<8x384xf32> to vector<8x128xf32>
    %592 = vector.extract_strided_slice %570 {offsets = [0, 256], sizes = [8, 128], strides = [1, 1]} : vector<8x384xf32> to vector<8x128xf32>
    %593 = arith.addf %592, %336 : vector<8x128xf32>
    %594 = arith.mulf %580, %593 : vector<8x128xf32>
    %595 = arith.addf %591, %594 : vector<8x128xf32>
    %596 = math.tanh %595 : vector<8x128xf32>
    %cst_207 = arith.constant 1.000000e+00 : f32
    %597 = vector.broadcast %cst_207 : f32 to vector<8x128xf32>
    %598 = arith.subf %597, %590 : vector<8x128xf32>
    %599 = arith.mulf %598, %596 : vector<8x128xf32>
    %600 = arith.mulf %590, %563 : vector<8x128xf32>
    %601 = arith.addf %599, %600 : vector<8x128xf32>
    %602 = arith.index_cast %567 : i32 to index
    %c0_208 = arith.constant 0 : index
    %603 = vector.load %arg8[%602, %c0_208] : memref<64x128xf32, #tpu.memory_space<vmem>>, vector<8x128xf32>
    tpu.vector_store %arg8[%602, %c0_208], %601 {strides = array<i32>} : memref<64x128xf32, #tpu.memory_space<vmem>>, vector<8x128xf32>,
    %c7_i32_209 = arith.constant 7 : i32
    %c8_i32_210 = arith.constant 8 : i32
    %604 = arith.muli %c7_i32_209, %c8_i32_210 : i32
    %605 = tpu.assume_multiple %604, 8 : i32
    %606 = arith.index_cast %605 : i32 to index
    %c0_211 = arith.constant 0 : index
    %607 = vector.load %arg9[%606, %c0_211] : memref<64x384xf32, #tpu.memory_space<vmem>>, vector<8x384xf32>
    %cst_212 = arith.constant dense<0.000000e+00> : vector<8x384xf32>
    %608 = tpu.matmul %601, %332, %cst_212 {dimension_numbers = #tpu.dot_dimension_numbers<[1], [0], [0], [1], [0, 0, 1, 1], [], []>} : vector<8x128xf32>, vector<128x384xf32>, vector<8x384xf32> -> vector<8x384xf32>
    %609 = vector.extract_strided_slice %607 {offsets = [0, 0], sizes = [8, 128], strides = [1, 1]} : vector<8x384xf32> to vector<8x128xf32>
    %610 = vector.extract_strided_slice %608 {offsets = [0, 0], sizes = [8, 128], strides = [1, 1]} : vector<8x384xf32> to vector<8x128xf32>
    %611 = arith.addf %609, %610 : vector<8x128xf32>
    %cst_213 = arith.constant 5.000000e-01 : f32
    %612 = vector.broadcast %cst_213 : f32 to vector<8x128xf32>
    %613 = arith.mulf %612, %611 : vector<8x128xf32>
    %614 = math.tanh %613 : vector<8x128xf32>
    %cst_214 = arith.constant 1.000000e+00 : f32
    %615 = vector.broadcast %cst_214 : f32 to vector<8x128xf32>
    %616 = arith.addf %615, %614 : vector<8x128xf32>
    %cst_215 = arith.constant 5.000000e-01 : f32
    %617 = vector.broadcast %cst_215 : f32 to vector<8x128xf32>
    %618 = arith.mulf %617, %616 : vector<8x128xf32>
    %619 = vector.extract_strided_slice %607 {offsets = [0, 128], sizes = [8, 128], strides = [1, 1]} : vector<8x384xf32> to vector<8x128xf32>
    %620 = vector.extract_strided_slice %608 {offsets = [0, 128], sizes = [8, 128], strides = [1, 1]} : vector<8x384xf32> to vector<8x128xf32>
    %621 = arith.addf %619, %620 : vector<8x128xf32>
    %cst_216 = arith.constant 5.000000e-01 : f32
    %622 = vector.broadcast %cst_216 : f32 to vector<8x128xf32>
    %623 = arith.mulf %622, %621 : vector<8x128xf32>
    %624 = math.tanh %623 : vector<8x128xf32>
    %cst_217 = arith.constant 1.000000e+00 : f32
    %625 = vector.broadcast %cst_217 : f32 to vector<8x128xf32>
    %626 = arith.addf %625, %624 : vector<8x128xf32>
    %cst_218 = arith.constant 5.000000e-01 : f32
    %627 = vector.broadcast %cst_218 : f32 to vector<8x128xf32>
    %628 = arith.mulf %627, %626 : vector<8x128xf32>
    %629 = vector.extract_strided_slice %607 {offsets = [0, 256], sizes = [8, 128], strides = [1, 1]} : vector<8x384xf32> to vector<8x128xf32>
    %630 = vector.extract_strided_slice %608 {offsets = [0, 256], sizes = [8, 128], strides = [1, 1]} : vector<8x384xf32> to vector<8x128xf32>
    %631 = arith.addf %630, %336 : vector<8x128xf32>
    %632 = arith.mulf %618, %631 : vector<8x128xf32>
    %633 = arith.addf %629, %632 : vector<8x128xf32>
    %634 = math.tanh %633 : vector<8x128xf32>
    %cst_219 = arith.constant 1.000000e+00 : f32
    %635 = vector.broadcast %cst_219 : f32 to vector<8x128xf32>
    %636 = arith.subf %635, %628 : vector<8x128xf32>
    %637 = arith.mulf %636, %634 : vector<8x128xf32>
    %638 = arith.mulf %628, %601 : vector<8x128xf32>
    %639 = arith.addf %637, %638 : vector<8x128xf32>
    %640 = arith.index_cast %605 : i32 to index
    %c0_220 = arith.constant 0 : index
    %641 = vector.load %arg8[%640, %c0_220] : memref<64x128xf32, #tpu.memory_space<vmem>>, vector<8x128xf32>
    tpu.vector_store %arg8[%640, %c0_220], %639 {strides = array<i32>} : memref<64x128xf32, #tpu.memory_space<vmem>>, vector<8x128xf32>,
    %c8_i32_221 = arith.constant 8 : i32
    %c0_222 = arith.constant 0 : index
    %c0_223 = arith.constant 0 : index
    %642 = vector.load %arg5[%c0_222, %c0_223] : memref<128x128xf32, #tpu.memory_space<vmem>>, vector<128x128xf32>
    %cst_224 = arith.constant dense<0.000000e+00> : vector<8x128xf32>
    %643 = tpu.matmul %639, %642, %cst_224 {dimension_numbers = #tpu.dot_dimension_numbers<[1], [0], [0], [1], [0, 0, 1, 1], [], []>} : vector<8x128xf32>, vector<128x128xf32>, vector<8x128xf32> -> vector<8x128xf32>
    %c0_225 = arith.constant 0 : index
    %c0_226 = arith.constant 0 : index
    %644 = vector.load %arg6[%c0_225, %c0_226] : memref<1x128xf32, #tpu.memory_space<vmem>>, vector<1x128xf32>
    %645 = vector.broadcast %644 : vector<1x128xf32> to vector<8x128xf32>
    %646 = arith.addf %643, %645 : vector<8x128xf32>
    %c0_227 = arith.constant 0 : index
    %c0_228 = arith.constant 0 : index
    %647 = vector.load %arg7[%c0_227, %c0_228] : memref<8x128xf32, #tpu.memory_space<vmem>>, vector<8x128xf32>
    tpu.vector_store %arg7[%c0_227, %c0_228], %646 {strides = array<i32>} : memref<8x128xf32, #tpu.memory_space<vmem>>, vector<8x128xf32>,
    return
  }
}

</mosaic_0001>

<bundles_post_ra>
// kernel: tpu_custom_call.1
= control target key start
LH: loop header
LB: loop body
LE: loop exit
PB: predicated region body
PF: predicated region fallthrough
CT: control target
= control target key end

     0   :  { %12 = vsyncpa [#allocation5], 0  ;;  %s6987_s0 = inlined_call_operand.hbm [shape: f32[64,128], index: 0, kind: input, shape index: {}]   ;;  %s6988_s1 = inlined_call_operand.hbm [shape: f32[2,128,384], index: 1, kind: input, shape index: {}]   ;;  %s6989_s2 = inlined_call_operand.hbm [shape: f32[2,128,384], index: 2, kind: input, shape index: {}]   ;;  %s6990_s3 = inlined_call_operand.vmem [shape: f32[2,1,384], index: 3, kind: input, shape index: {}]   ;;  %s6991_s4 = inlined_call_operand.vmem [shape: f32[2,1,128], index: 4, kind: input, shape index: {}]   ;;  %s6992_s5 = inlined_call_operand.hbm [shape: f32[128,128], index: 5, kind: input, shape index: {}]   ;;  %s6993_s6 = inlined_call_operand.vmem [shape: f32[1,128], index: 6, kind: input, shape index: {}]   ;;  %s6994_s7 = inlined_call_operand.hbm [shape: f32[8,128], index: 7, kind: output, shape index: {}]  }
   0x1   :  { %13 = vsyncpa [#allocation8], 0 }
   0x2   :  { %14 = vsyncpa [#allocation11], 0 }
   0x3   :  { %15 = vsyncpa [#allocation6], 0  ;;  %s5963_s24 = smov [#allocation7]   ;;  %s5845_s28 = scalar_lea.hbm %s6988_s1, 12288 }
   0x4   :  { %s33_s25 = sshll.u32 %s5963_s24, 4  ;;  %p5846_p0 = scmp.ne.s32.totalorder %s6988_s1, %s5845_s28  ;;  %s34_s25 = int_to_ptr.vmem [resolvable:$true] %s33_s25 }
   0x5   :  { %p5849_p1 = scmp.lt.u32.totalorder %s5845_s28, %s6988_s1 }
   0x7   :  { %p5851_p2 = pnand %p5849_p1, %p5846_p0 }
   0x9   :  { %5854 = shalt.err (!%p5851_p2)
}
   0xa   :  { %s5855_s10 = scalar_lea.vmem %s34_s25, 12288  ;;  %p5860_p4 = scmp.lt.s32.totalorder %s34_s25, %s34_s25 }
   0xb   :  { %p5856_p3 = scmp.ne.s32.totalorder %s34_s25, %s5855_s10  ;;  %p5861_p5 = scmp.lt.s32.totalorder %s5855_s10, %s5855_s10 }
   0xd   :  { %p5862_p6 = por %p5861_p5, %p5860_p4 }
   0xf   :  { %p5863_p7 = pnand %p5862_p6, %p5856_p3 }
  0x11   :  { %5866 = shalt.err (!%p5863_p7)
}
  0x12   :  { %s5964_s11 = smov 384   ;;  %s5965_s12 = smov 24  }
  0x13   :  { %39 = dma.hbm_to_vmem [thread:$0]  %s6988_s1, 12288, %s34_s25, [#allocation8], %s5964_s11, %s5964_s11, %s5965_s12  }
  0x14   :  { %s5966_s15 = smov [#allocation4]   ;;  %s5867_s19 = scalar_lea.hbm %s6987_s0, 1024 }
  0x15   :  { %s21_s16 = sshll.u32 %s5966_s15, 4  ;;  %p5868_p8 = scmp.ne.s32.totalorder %s6987_s0, %s5867_s19  ;;  %s22_s16 = int_to_ptr.vmem [resolvable:$true] %s21_s16 }
  0x16   :  { %p5871_p9 = scmp.lt.u32.totalorder %s5867_s19, %s6987_s0 }
  0x18   :  { %p5873_p10 = pnand %p5871_p9, %p5868_p8 }
  0x1a   :  { %5876 = shalt.err (!%p5873_p10)
}
  0x1b   :  { %s5877_s24 = scalar_lea.vmem %s22_s16, 1024  ;;  %p5882_p12 = scmp.lt.s32.totalorder %s22_s16, %s22_s16 }
  0x1c   :  { %p5878_p11 = scmp.ne.s32.totalorder %s22_s16, %s5877_s24  ;;  %p5883_p13 = scmp.lt.s32.totalorder %s5877_s24, %s5877_s24 }
  0x1e   :  { %p5884_p0 = por %p5883_p13, %p5882_p12 }
  0x20   :  { %p5885_p1 = pnand %p5884_p0, %p5878_p11 }
  0x22   :  { %5888 = shalt.err (!%p5885_p1)
}
  0x23   :  { %s5967_s1 = smov 128   ;;  %s5968_s25 = smov 8  }
  0x24   :  { %27 = dma.hbm_to_vmem [thread:$0]  %s6987_s0, 1024, %s22_s16, [#allocation5], %s5967_s1, %s5967_s1, %s5968_s25  }
  0x25   :  { %s5969_s28 = smov [#allocation9]   ;;  %s5970_s30 = smov [#allocation10]  }
  0x26   :  { %s45_s29 = sshll.u32 %s5969_s28, 4  ;;  %s61_s8 = sshll.u32 %s5970_s30, 4  ;;  %s46_s29 = int_to_ptr.vmem [resolvable:$true] %s45_s29  ;;  %s6045_s8 = int_to_ptr.vmem [resolvable:$true] %s61_s8 }
  0x27   :  { %s5889_s13 = scalar_lea.hbm %s6989_s2, 12288 }
  0x28   :  { %p5890_p2 = scmp.ne.s32.totalorder %s6989_s2, %s5889_s13  ;;  %p5893_p3 = scmp.lt.u32.totalorder %s5889_s13, %s6989_s2 }
  0x2a   :  { %p5895_p4 = pnand %p5893_p3, %p5890_p2 }
  0x2c   :  { %5898 = shalt.err (!%p5895_p4)
}
  0x2d   :  { %s5899_s0 = scalar_lea.vmem %s46_s29, 12288  ;;  %p5904_p6 = scmp.lt.s32.totalorder %s46_s29, %s46_s29 }
  0x2e   :  { %p5900_p5 = scmp.ne.s32.totalorder %s46_s29, %s5899_s0  ;;  %p5905_p7 = scmp.lt.s32.totalorder %s5899_s0, %s5899_s0 }
  0x30   :  { %p5906_p8 = por %p5905_p7, %p5904_p6 }
  0x32   :  { %p5907_p9 = pnand %p5906_p8, %p5900_p5 }
  0x34   :  { %5910 = shalt.err (!%p5907_p9)
}
  0x35   :  { %51 = dma.hbm_to_vmem [thread:$0]  %s6989_s2, 12288, %s46_s29, [#allocation8], %s5964_s11, %s5964_s11, %s5965_s12  }
  0x36   :  { %s5911_s22 = scalar_lea.hbm %s6992_s5, 2048 }
  0x37   :  { %p5912_p10 = scmp.ne.s32.totalorder %s6992_s5, %s5911_s22  ;;  %p5915_p11 = scmp.lt.u32.totalorder %s5911_s22, %s6992_s5 }
  0x39   :  { %p5917_p12 = pnand %p5915_p11, %p5912_p10 }
  0x3b   :  { %5920 = shalt.err (!%p5917_p12)
}
  0x3c   :  { %s5921_s28 = scalar_lea.vmem %s6045_s8, 2048  ;;  %p5926_p0 = scmp.lt.s32.totalorder %s6045_s8, %s6045_s8 }
  0x3d   :  { %p5922_p13 = scmp.ne.s32.totalorder %s6045_s8, %s5921_s28  ;;  %p5927_p1 = scmp.lt.s32.totalorder %s5921_s28, %s5921_s28 }
  0x3f   :  { %p5928_p2 = por %p5927_p1, %p5926_p0 }
  0x41   :  { %p5929_p3 = pnand %p5928_p2, %p5922_p13 }
  0x43   :  { %5932 = shalt.err (!%p5929_p3)
}
  0x44   :  { %67 = dma.hbm_to_vmem [thread:$0]  %s6992_s5, 2048, %s6045_s8, [#allocation11], %s5967_s1, %s5967_s1, %s5968_s25  }
  0x45   :  { %5955 = dma.done.wait [#allocation5], 1024  }
  0x46   :  { %5956 = vsyncadd [#allocation5], 4294966272 }
  0x47   :  { %5957 = dma.done.wait [#allocation8], 24576  }
  0x48   :  { %5958 = vsyncadd [#allocation8], 4294942720 }
  0x49   :  { %5959 = dma.done.wait [#allocation11], 2048  }
  0x4a   :  { %5960 = vsyncadd [#allocation11], 4294965248  ;;  %v5971_v0 = vmov 0.0   ;;  %v107_v1 = vld [vmem:[#allocation7 + $0x8] sm:$0xff]  ;;  %v110_v2 = vld [vmem:[#allocation7 + $0x20] sm:$0xff]  ;;  %vm5973_vm0 = vmmov 0  }
  0x4b   :  { %235 = vmatprep.mubr.f32.mxu0 %v5971_v0  ;;  %v106_v3 = vld [vmem:[#allocation7] sm:$0xff]  ;;  %v4624_v4 = vpack.c.bf16 %v110_v2, %v107_v1  ;;  %v109_v5 = vld [vmem:[#allocation7 + $0x18] sm:$0xff]  ;;  %v116_v7 = vld [vmem:[#allocation7 + $0x50] sm:$0xff]  ;;  %s5974_s14 = smov [#allocation12]  }
  0x4c   :  { %v113_v6 = vld [vmem:[#allocation7 + $0x38] sm:$0xff]  ;;  %v4626_v8 = vpack.c.bf16 %v109_v5, %v106_v3  ;;  %v112_v10 = vld [vmem:[#allocation7 + $0x30] sm:$0xff]  ;;  %v115_v11 = vld [vmem:[#allocation7 + $0x48] sm:$0xff]  ;;  %s3581_s15 = sshll.u32 %s5974_s14, 4  ;;  %s3582_s15 = int_to_ptr.vmem [resolvable:$true] %s3581_s15 }
  0x4d   :  { %v4628_v9 = vpack.c.bf16 %v116_v7, %v113_v6  ;;  %v119_v12 = vld [vmem:[#allocation7 + $0x68] sm:$0xff]  ;;  %4625 = vmatprep.subr.bf16.mxu0 %v4624_v4  ;;  %v122_v13 = vld [vmem:[#allocation7 + $0x80] sm:$0xff]  ;;  %v4630_v14 = vpack.c.bf16 %v115_v11, %v112_v10  ;;  %v121_v17 = vld [vmem:[#allocation7 + $0x78] sm:$0xff]  ;;  %s5933_s17 = scalar_lea.vmem %s3582_s15, 128  ;;  %p5938_p5 = scmp.lt.s32.totalorder %s3582_s15, %s3582_s15 }
  0x4e   :  { %4627 = vmatpush1.bf16.msra.mxu0 %v4626_v8  ;;  %v4632_v15 = vpack.c.bf16 %v122_v13, %v119_v12  ;;  %v118_v16 = vld [vmem:[#allocation7 + $0x60] sm:$0xff]  ;;  %v125_v18 = vld [vmem:[#allocation7 + $0x98] sm:$0xff]  ;;  %v128_v19 = vld [vmem:[#allocation7 + $0xb0] sm:$0xff]  ;;  %p5934_p4 = scmp.ne.s32.totalorder %s3582_s15, %s5933_s17  ;;  %p5939_p6 = scmp.lt.s32.totalorder %s5933_s17, %s5933_s17 }
  0x4f   :  { %4629 = vmatprep.subr.bf16.mxu0 %v4628_v9  ;;  %v108_v20 = vld [vmem:[#allocation7 + $0x10] sm:$0xff]  ;;  %v111_v21 = vld [vmem:[#allocation7 + $0x28] sm:$0xff]  ;;  %v4634_v22 = vpack.c.bf16 %v121_v17, %v118_v16  ;;  %v114_v24 = vld [vmem:[#allocation7 + $0x40] sm:$0xff]  ;;  %v4636_v25 = vpack.c.bf16 %v128_v19, %v125_v18 }
  0x50   :  { %v4656_v23 = vpack.c.bf16 %v111_v21, %v108_v20  ;;  %v124_v26 = vld [vmem:[#allocation7 + $0x90] sm:$0xff]  ;;  %v127_v27 = vld [vmem:[#allocation7 + $0xa8] sm:$0xff]  ;;  %v117_v28 = vld [vmem:[#allocation7 + $0x58] sm:$0xff]  ;;  %p5940_p7 = por %p5939_p6, %p5938_p5 }
  0x51   :  { %v131_v29 = vld [vmem:[#allocation7 + $0xc8] sm:$0xff]  ;;  %v134_v30 = vld [vmem:[#allocation7 + $0xe0] sm:$0xff]  ;;  %v4660_v31 = vpack.c.bf16 %v117_v28, %v114_v24  ;;  %v120_v32 = vld [vmem:[#allocation7 + $0x70] sm:$0xff]  ;;  %v4638_v34 = vpack.c.bf16 %v127_v27, %v124_v26 }
  0x52   :  { %4631 = vmatpush1.bf16.msra.mxu0 %v4630_v14  ;;  %4657 = vmatprep.subr.bf16.mxu1 %v4656_v23  ;;  %v123_v33 = vld [vmem:[#allocation7 + $0x88] sm:$0xff]  ;;  %v130_v35 = vld [vmem:[#allocation7 + $0xc0] sm:$0xff]  ;;  %v133_v36 = vld [vmem:[#allocation7 + $0xd8] sm:$0xff]  ;;  %v4640_v38 = vpack.c.bf16 %v134_v30, %v131_v29  ;;  %p5941_p8 = pnand %p5940_p7, %p5934_p4 }
  0x53   :  { %4633 = vmatprep.subr.bf16.mxu0 %v4632_v15  ;;  %4659 = vmatpush3.bf16.msra.mxu1 %v4656_v23  ;;  %v4664_v37 = vpack.c.bf16 %v123_v33, %v120_v32  ;;  %v126_v39 = vld [vmem:[#allocation7 + $0xa0] sm:$0xff]  ;;  %v129_v40 = vld [vmem:[#allocation7 + $0xb8] sm:$0xff]  ;;  %v140_v43 = vld [vmem:[#allocation7 + $0x110] sm:$0xff]  ;;  %v4642_v44 = vpack.c.bf16 %v133_v36, %v130_v35 }
  0x54   :  { %4661 = vmatprep.subr.bf16.mxu1 %v4660_v31  ;;  %v6083_v41 = vld [vmem:[#allocation4] sm:$0xff]  ;;  %v137_v42 = vld [vmem:[#allocation7 + $0xf8] sm:$0xff]  ;;  %v136_v45 = vld [vmem:[#allocation7 + $0xf0] sm:$0xff]  ;;  %v4668_v46 = vpack.c.bf16 %v129_v40, %v126_v39 }
  0x55   :  { %3973 = vmatprep.mubr.f32.mxu1 %v6083_v41  ;;  %v4644_v47 = vpack.c.bf16 %v140_v43, %v137_v42  ;;  %v139_v48 = vld [vmem:[#allocation7 + $0x108] sm:$0xff]  ;;  %v132_v49 = vld [vmem:[#allocation7 + $0xd0] sm:$0xff]  ;;  %v146_v52 = vld [vmem:[#allocation7 + $0x140] sm:$0xff] }
  0x56   :  { %4635 = vmatpush1.bf16.msra.mxu0 %v4634_v22  ;;  %v135_v50 = vld [vmem:[#allocation7 + $0xe8] sm:$0xff]  ;;  %v4646_v53 = vpack.c.bf16 %v139_v48, %v136_v45  ;;  %v142_v54 = vld [vmem:[#allocation7 + $0x120] sm:$0xff]  ;;  %v145_v57 = vld [vmem:[#allocation7 + $0x138] sm:$0xff] }
  0x57   :  { %4637 = vmatprep.subr.bf16.mxu0 %v4636_v25  ;;  %4663 = vmatpush3.bf16.msra.mxu1 %v4660_v31  ;;  %v143_v51 = vld [vmem:[#allocation7 + $0x128] sm:$0xff]  ;;  %v4672_v55 = vpack.c.bf16 %v135_v50, %v132_v49  ;;  %v138_v58 = vld [vmem:[#allocation7 + $0x100] sm:$0xff]  ;;  %v141_v59 = vld [vmem:[#allocation7 + $0x118] sm:$0xff]  ;;  %v4650_v62 = vpack.c.bf16 %v145_v57, %v142_v54 }
  0x58   :  { %4665 = vmatprep.subr.bf16.mxu1 %v4664_v37  ;;  %v4648_v56 = vpack.c.bf16 %v146_v52, %v143_v51  ;;  %v149_v60 = vld [vmem:[#allocation7 + $0x158] sm:$0xff]  ;;  %v152_v61 = vld [vmem:[#allocation7 + $0x170] sm:$0xff]  ;;  %v4676_v1 = vpack.c.bf16 %v141_v59, %v138_v58  ;;  %v151_v3 = vld [vmem:[#allocation7 + $0x168] sm:$0xff] }
  0x59   :  { %v148_v63 = vld [vmem:[#allocation7 + $0x150] sm:$0xff]  ;;  %v4652_v2 = vpack.c.bf16 %v152_v61, %v149_v60  ;;  %v147_v5 = vld [vmem:[#allocation7 + $0x148] sm:$0xff]  ;;  %v417_v7 = vld [vmem:[#allocation9 + $0x20] sm:$0xff] }
  0x5a   :  { %4639 = vmatpush1.bf16.msra.mxu0 %v4638_v34  ;;  %v144_v4 = vld [vmem:[#allocation7 + $0x130] sm:$0xff]  ;;  %v414_v6 = vld [vmem:[#allocation9 + $0x8] sm:$0xff]  ;;  %v4654_v8 = vpack.c.bf16 %v151_v3, %v148_v63  ;;  %v413_v11 = vld [vmem:[#allocation9] sm:$0xff] }
  0x5b   :  { %4641 = vmatprep.subr.bf16.mxu0 %v4640_v38  ;;  %4667 = vmatpush3.bf16.msra.mxu1 %v4664_v37  ;;  %v4680_v9 = vpack.c.bf16 %v147_v5, %v144_v4  ;;  %v6086_v10 = vpack.c.bf16 %v417_v7, %v414_v6  ;;  %v416_v12 = vld [vmem:[#allocation9 + $0x18] sm:$0xff]  ;;  %v423_v14 = vld [vmem:[#allocation9 + $0x50] sm:$0xff]  ;;  %v150_v15 = vld [vmem:[#allocation7 + $0x160] sm:$0xff] }
  0x5c   :  { %4669 = vmatprep.subr.bf16.mxu1 %v4668_v46  ;;  %v420_v13 = vld [vmem:[#allocation9 + $0x38] sm:$0xff]  ;;  %v6088_v17 = vpack.c.bf16 %v416_v12, %v413_v11  ;;  %v419_v19 = vld [vmem:[#allocation9 + $0x30] sm:$0xff]  ;;  %v422_v20 = vld [vmem:[#allocation9 + $0x48] sm:$0xff] }
  0x5d   :  { %v153_v16 = vld [vmem:[#allocation7 + $0x178] sm:$0xff]  ;;  %v6091_v18 = vpack.c.bf16 %v423_v14, %v420_v13  ;;  %v426_v22 = vld [vmem:[#allocation9 + $0x68] sm:$0xff]  ;;  %v429_v23 = vld [vmem:[#allocation9 + $0x80] sm:$0xff]  ;;  %v6096_v25 = vpack.c.bf16 %v422_v20, %v419_v19 }
  0x5e   :  { %4643 = vmatpush1.bf16.msra.mxu0 %v4642_v44  ;;  %v4684_v21 = vpack.c.bf16 %v153_v16, %v150_v15  ;;  %v83_v24 = vld [vmem:[#allocation4 + $0x8] sm:$0xff]  ;;  %v415_v26 = vld [vmem:[#allocation9 + $0x10] sm:$0xff]  ;;  %v6099_v28 = vpack.c.bf16 %v429_v23, %v426_v22  ;;  %v425_v29 = vld [vmem:[#allocation9 + $0x60] sm:$0xff] }
  0x5f   :  { %4645 = vmatprep.subr.bf16.mxu0 %v4644_v47  ;;  %4671 = vmatpush3.bf16.msra.mxu1 %v4668_v46  ;;  %v418_v27 = vld [vmem:[#allocation9 + $0x28] sm:$0xff]  ;;  %v428_v30 = vld [vmem:[#allocation9 + $0x78] sm:$0xff]  ;;  %v435_v32 = vld [vmem:[#allocation9 + $0xb0] sm:$0xff] }
  0x60   :  { %4673 = vmatprep.subr.bf16.mxu1 %v4672_v55  ;;  %v432_v31 = vld [vmem:[#allocation9 + $0x98] sm:$0xff]  ;;  %v6101_v33 = vpack.c.bf16 %v418_v27, %v415_v26  ;;  %v84_v34 = vld [vmem:[#allocation4 + $0x10] sm:$0xff]  ;;  %v6105_v35 = vpack.c.bf16 %v428_v30, %v425_v29  ;;  %v421_v36 = vld [vmem:[#allocation9 + $0x40] sm:$0xff] }
  0x61   :  { %v424_v37 = vld [vmem:[#allocation9 + $0x58] sm:$0xff]  ;;  %v6108_v38 = vpack.c.bf16 %v435_v32, %v432_v31  ;;  %v431_v39 = vld [vmem:[#allocation9 + $0x90] sm:$0xff]  ;;  %v434_v40 = vld [vmem:[#allocation9 + $0xa8] sm:$0xff] }
  0x62   :  { %4647 = vmatpush1.bf16.msra.mxu0 %v4646_v53  ;;  %v438_v42 = vld [vmem:[#allocation9 + $0xc8] sm:$0xff]  ;;  %v441_v43 = vld [vmem:[#allocation9 + $0xe0] sm:$0xff]  ;;  %v6112_v44 = vpack.c.bf16 %v424_v37, %v421_v36  ;;  %v85_v45 = vld [vmem:[#allocation4 + $0x18] sm:$0xff]  ;;  %v6116_v46 = vpack.c.bf16 %v434_v40, %v431_v39 }
  0x63   :  { %4649 = vmatprep.subr.bf16.mxu0 %v4648_v56  ;;  %4675 = vmatpush3.bf16.msra.mxu1 %v4672_v55  ;;  %v427_v47 = vld [vmem:[#allocation9 + $0x70] sm:$0xff]  ;;  %v430_v48 = vld [vmem:[#allocation9 + $0x88] sm:$0xff]  ;;  %v6119_v49 = vpack.c.bf16 %v441_v43, %v438_v42  ;;  %v437_v50 = vld [vmem:[#allocation9 + $0xc0] sm:$0xff] }
  0x64   :  { %4677 = vmatprep.subr.bf16.mxu1 %v4676_v1  ;;  %v440_v51 = vld [vmem:[#allocation9 + $0xd8] sm:$0xff]  ;;  %v447_v53 = vld [vmem:[#allocation9 + $0x110] sm:$0xff]  ;;  %v6123_v54 = vpack.c.bf16 %v430_v48, %v427_v47  ;;  %v86_v55 = vld [vmem:[#allocation4 + $0x20] sm:$0xff] }
  0x65   :  { %v444_v52 = vld [vmem:[#allocation9 + $0xf8] sm:$0xff]  ;;  %v6127_v56 = vpack.c.bf16 %v440_v51, %v437_v50  ;;  %v433_v57 = vld [vmem:[#allocation9 + $0xa0] sm:$0xff]  ;;  %v443_v60 = vld [vmem:[#allocation9 + $0xf0] sm:$0xff] }
  0x66   :  { %4651 = vmatpush1.bf16.msra.mxu0 %v4650_v62  ;;  %v436_v58 = vld [vmem:[#allocation9 + $0xb8] sm:$0xff]  ;;  %v6130_v59 = vpack.c.bf16 %v447_v53, %v444_v52  ;;  %v446_v61 = vld [vmem:[#allocation9 + $0x108] sm:$0xff]  ;;  %v453_v63 = vld [vmem:[#allocation9 + $0x140] sm:$0xff] }
  0x67   :  { %4653 = vmatprep.subr.bf16.mxu0 %v4652_v2  ;;  %4679 = vmatpush3.bf16.msra.mxu1 %v4676_v1  ;;  %v450_v62 = vld [vmem:[#allocation9 + $0x128] sm:$0xff]  ;;  %v6134_v1 = vpack.c.bf16 %v436_v58, %v433_v57  ;;  %v6138_v3 = vpack.c.bf16 %v446_v61, %v443_v60  ;;  %v439_v4 = vld [vmem:[#allocation9 + $0xd0] sm:$0xff]  ;;  %v449_v7 = vld [vmem:[#allocation9 + $0x120] sm:$0xff] }
  0x68   :  { %4681 = vmatprep.subr.bf16.mxu1 %v4680_v9  ;;  %v87_v2 = vld [vmem:[#allocation4 + $0x28] sm:$0xff]  ;;  %v6141_v6 = vpack.c.bf16 %v453_v63, %v450_v62  ;;  %v459_v11 = vld [vmem:[#allocation9 + $0x170] sm:$0xff]  ;;  %v445_v15 = vld [vmem:[#allocation9 + $0x100] sm:$0xff] }
  0x69   :  { %v442_v5 = vld [vmem:[#allocation9 + $0xe8] sm:$0xff]  ;;  %v88_v13 = vld [vmem:[#allocation4 + $0x30] sm:$0xff]  ;;  %v448_v16 = vld [vmem:[#allocation9 + $0x118] sm:$0xff] }
  0x6a   :  { %4655 = vmatpush1.bf16.msra.mxu0 %v4654_v8  ;;  %v452_v8 = vld [vmem:[#allocation9 + $0x138] sm:$0xff]  ;;  %v6145_v12 = vpack.c.bf16 %v442_v5, %v439_v4  ;;  %v455_v20 = vld [vmem:[#allocation9 + $0x150] sm:$0xff]  ;;  %v6156_v22 = vpack.c.bf16 %v448_v16, %v445_v15  ;;  %v454_v27 = vld [vmem:[#allocation9 + $0x148] sm:$0xff] }
  0x6b   :  { %4689 = vmatprep.subr.bf16.mxu0 %v6086_v10  ;;  %4683 = vmatpush3.bf16.msra.mxu1 %v4680_v9  ;;  %v456_v9 = vld [vmem:[#allocation9 + $0x158] sm:$0xff]  ;;  %v6149_v14 = vpack.c.bf16 %v452_v8, %v449_v7  ;;  %v451_v26 = vld [vmem:[#allocation9 + $0x130] sm:$0xff]  ;;  %v457_v30 = vld [vmem:[#allocation9 + $0x160] sm:$0xff] }
  0x6c   :  { %4685 = vmatprep.subr.bf16.mxu1 %v4684_v21  ;;  %v6152_v19 = vpack.c.bf16 %v459_v11, %v456_v9  ;;  %v89_v23 = vld [vmem:[#allocation4 + $0x38] sm:$0xff]  ;;  %v6165_v29 = vpack.c.bf16 %v454_v27, %v451_v26  ;;  %v154_v39 = vld [vmem:[%s6990_s3] sm:$0x7] }
  0x6d   :  { %236 = vmatmul.mubr.f32.vlgmr.msra.gmra.mrb[0].mxu0 %v6083_v41  ;;  %v5972_v41 = vmov 0.0|0.0   ;;  %v460_v31 = vld [vmem:[#allocation9 + $0x178] sm:$0xff] }
  0x6e   :  { %4691 = vmatpush1.bf16.msra.mxu0 %v6088_v17  ;;  %241 = vmatprep.mubr.f32.mxu0 %v5971_v0  ;;  %v6175_v32 = vpack.c.bf16 %v460_v31, %v457_v30 }
  0x6f   :  { %4693 = vmatprep.subr.bf16.mxu0 %v6091_v18  ;;  %4687 = vmatpush3.bf16.msra.mxu1 %v4684_v21  ;;  %v458_v21 = vld [vmem:[#allocation9 + $0x168] sm:$0xff] }
  0x70   :  { %4720 = vmatprep.subr.bf16.mxu1 %v5972_v41 }
  0x71   :  { %242 = vmatmul.mubr.f32.gmra.mrb[2].mxu0 %v83_v24 }
  0x72   :  { %4695 = vmatpush1.bf16.msra.mxu0 %v6096_v25  ;;  %247 = vmatprep.mubr.f32.mxu0 %v5971_v0 }
  0x73   :  { %4697 = vmatprep.subr.bf16.mxu0 %v6099_v28  ;;  %3974 = vmatmul.mubr.f32.vlgmr.msra.gmra.mrb[0].mxu1 %v83_v24  ;;  %v6160_v24 = vpack.c.bf16 %v458_v21, %v455_v20  ;;  %v6253_v21 = vld [vmem:[%s6991_s4] ss:$0 sm:$0xff] }
  0x74   :  { %4722 = vmatpush3.bf16.msra.mxu1 %v6101_v33  ;;  %3976 = vmatprep.mubr.f32.mxu1 %v84_v34 }
  0x75   :  { %248 = vmatmul.mubr.f32.gmra.mrb[4].mxu0 %v84_v34  ;;  %4723 = vmatprep.subr.bf16.mxu1 %v5972_v41  ;;  %v156_v34 = vlaneseq }
  0x76   :  { %4699 = vmatpush1.bf16.msra.mxu0 %v6105_v35  ;;  %253 = vmatprep.mubr.f32.mxu0 %v5971_v0 }
  0x77   :  { %4701 = vmatprep.subr.bf16.mxu0 %v6108_v38  ;;  %3977 = vmatmul.mubr.f32.gmra.mrb[2].mxu1 %v85_v45  ;;  %v6216_v36 = vshrl.u32 %v156_v34, 7 }
  0x78   :  { %4725 = vmatpush3.bf16.msra.mxu1 %v6112_v44  ;;  %3979 = vmatprep.mubr.f32.mxu1 %v86_v55 }
  0x79   :  { %254 = vmatmul.mubr.f32.gmra.mrb[6].mxu0 %v85_v45  ;;  %4726 = vmatprep.subr.bf16.mxu1 %v5972_v41  ;;  %v166_v37 = vsub.s32 2, %v6216_v36  ;;  %v158_v57 = vsub.s32 0, %v6216_v36  ;;  %v162_v60 = vsub.s32 1, %v6216_v36 }
  0x7a   :  { %4703 = vmatpush1.bf16.msra.mxu0 %v6116_v46  ;;  %259 = vmatprep.mubr.f32.mxu0 %v5971_v0 }
  0x7b   :  { %4705 = vmatprep.subr.bf16.mxu0 %v6119_v49  ;;  %3980 = vmatmul.mubr.f32.gmra.mrb[4].mxu1 %v87_v2  ;;  %v167_v40 = vrot.slane %v154_v39, %v166_v37  ;;  %v6238_v61 = vrot.slane %v154_v39, %v158_v57  ;;  %v6244_v5 = vrot.slane %v154_v39, %v162_v60 }
  0x7c   :  { %4728 = vmatpush3.bf16.msra.mxu1 %v6123_v54  ;;  %3982 = vmatprep.mubr.f32.mxu1 %v88_v13 }
  0x7d   :  { %260 = vmatmul.mubr.f32.gmra.mrb[8].mxu0 %v86_v55  ;;  %4729 = vmatprep.subr.bf16.mxu1 %v5972_v41 }
  0x7e   :  { %4707 = vmatpush1.bf16.msra.mxu0 %v6127_v56  ;;  %265 = vmatprep.mubr.f32.mxu0 %v5971_v0 }
  0x7f   :  { %4709 = vmatprep.subr.bf16.mxu0 %v6130_v59  ;;  %3983 = vmatmul.mubr.f32.gmra.mrb[6].mxu1 %v89_v23 }
  0x80   :  { %4731 = vmatpush3.bf16.msra.mxu1 %v6134_v1  ;;  %4017 = vmatprep.mubr.msk.f32.mxu1 %vm5973_vm0, %v5971_v0 }
  0x81   :  { %266 = vmatmul.mubr.f32.gmra.mrb[10].mxu0 %v87_v2  ;;  %4732 = vmatprep.subr.bf16.mxu1 %v5972_v41 }
  0x82   :  { %4711 = vmatpush1.bf16.msra.mxu0 %v6138_v3  ;;  %271 = vmatprep.mubr.f32.mxu0 %v5971_v0 }
  0x83   :  { %4713 = vmatprep.subr.bf16.mxu0 %v6141_v6 }
  0x84   :  { %4734 = vmatpush3.bf16.msra.mxu1 %v6145_v12 }
  0x85   :  { %272 = vmatmul.mubr.f32.gmra.mrb[12].mxu0 %v88_v13  ;;  %4735 = vmatprep.subr.bf16.mxu1 %v5972_v41 }
  0x86   :  { %4715 = vmatpush1.bf16.msra.mxu0 %v6149_v14  ;;  %277 = vmatprep.mubr.f32.mxu0 %v5971_v0 }
  0x87   :  { %4717 = vmatprep.subr.bf16.mxu0 %v6152_v19 }
  0x88   :  { %4737 = vmatpush3.bf16.msra.mxu1 %v6156_v22 }
  0x89   :  { %278 = vmatmul.mubr.f32.gmra.mrb[14].mxu0 %v89_v23  ;;  %4738 = vmatprep.subr.bf16.mxu1 %v5972_v41 }
  0x8a   :  { %4719 = vmatpush1.bf16.msra.mxu0 %v6160_v24  ;;  %538 = vmatprep.mubr.f32.mxu0 %v5971_v0 }
  0x8b   :  { %4745 = vmatprep.subr.bf16.mxu0 %v6086_v10 }
  0x8c   :  { %4740 = vmatpush3.bf16.msra.mxu1 %v6165_v29 }
  0x8d   :  { %539 = vmatmul.mubr.f32.vlgmr.msra.gmra.mrb[0].mxu0 %v5971_v0  ;;  %4741 = vmatprep.subr.bf16.mxu1 %v5972_v41 }
  0x8e   :  { %4747 = vmatpush1.bf16.msra.mxu0 %v6088_v17  ;;  %704 = vmatprep.mubr.f32.mxu0 %v5971_v0 }
  0x8f   :  { %4749 = vmatprep.subr.bf16.mxu0 %v6091_v18 }
  0x90   :  { %4743 = vmatpush3.bf16.msra.mxu1 %v6175_v32 }
  0x91   :  { %4776 = vmatprep.subr.bf16.mxu1 %v5972_v41 }
  0x92   :  { %4751 = vmatpush1.bf16.msra.mxu0 %v6096_v25 }
  0x93   :  { %4753 = vmatprep.subr.bf16.mxu0 %v6099_v28  ;;  %4018 = vmatmul.mubr.f32.vlgmr.msra.gmra.mrb[8].mxu1 %v5971_v0 }
  0x94   :  { %4778 = vmatpush3.bf16.msra.mxu1 %v6101_v33  ;;  %4052 = vmatprep.mubr.msk.f32.mxu1 %vm5973_vm0, %v5971_v0 }
  0x95   :  { %4779 = vmatprep.subr.bf16.mxu1 %v5972_v41 }
  0x96   :  { %4755 = vmatpush1.bf16.msra.mxu0 %v6105_v35 }
  0x97   :  { %4757 = vmatprep.subr.bf16.mxu0 %v6108_v38 }
  0x98   :  { %4781 = vmatpush3.bf16.msra.mxu1 %v6112_v44 }
  0x99   :  { %4782 = vmatprep.subr.bf16.mxu1 %v5972_v41 }
  0x9a   :  { %4759 = vmatpush1.bf16.msra.mxu0 %v6116_v46 }
  0x9b   :  { %4761 = vmatprep.subr.bf16.mxu0 %v6119_v49 }
  0x9c   :  { %4784 = vmatpush3.bf16.msra.mxu1 %v6123_v54 }
  0x9d   :  { %4785 = vmatprep.subr.bf16.mxu1 %v5972_v41 }
  0x9e   :  { %4763 = vmatpush1.bf16.msra.mxu0 %v6127_v56 }
  0x9f   :  { %4765 = vmatprep.subr.bf16.mxu0 %v6130_v59 }
  0xa0   :  { %4787 = vmatpush3.bf16.msra.mxu1 %v6134_v1 }
  0xa1   :  { %4788 = vmatprep.subr.bf16.mxu1 %v5972_v41 }
  0xa2   :  { %4767 = vmatpush1.bf16.msra.mxu0 %v6138_v3 }
  0xa3   :  { %4769 = vmatprep.subr.bf16.mxu0 %v6141_v6 }
  0xa4   :  { %4790 = vmatpush3.bf16.msra.mxu1 %v6145_v12 }
  0xa5   :  { %4791 = vmatprep.subr.bf16.mxu1 %v5972_v41 }
  0xa6   :  { %4771 = vmatpush1.bf16.msra.mxu0 %v6149_v14 }
  0xa7   :  { %4773 = vmatprep.subr.bf16.mxu0 %v6152_v19 }
  0xa8   :  { %4793 = vmatpush3.bf16.msra.mxu1 %v6156_v22 }
  0xa9   :  { %4794 = vmatprep.subr.bf16.mxu1 %v5972_v41 }
  0xaa   :  { %4775 = vmatpush1.bf16.msra.mxu0 %v6160_v24 }
  0xab   :  { %4801 = vmatprep.subr.bf16.mxu0 %v6086_v10 }
  0xac   :  { %4796 = vmatpush3.bf16.msra.mxu1 %v6165_v29 }
  0xad   :  { %4797 = vmatprep.subr.bf16.mxu1 %v5972_v41 }
  0xb0   :  { %4799 = vmatpush3.bf16.msra.mxu1 %v6175_v32 }
  0xb1   :  { %4832 = vmatprep.subr.bf16.mxu1 %v5972_v41 }
 0x146   :  { %v3975_v42 = vpop.f32.mrb[0].mxu1 }
 0x147   :  { %v6224_v43 = vadd.f32 %v3975_v42, %v167_v40  ;;  %v350_v45 = vpop.f32.mrb[1].mxu1 }
 0x148   :  { %v351_v31 = vadd.f32 %v350_v45, %v167_v40 }
 0x14a   :  { %v3978_v47 = vpop.f32.mrb[2].mxu1 }
 0x14b   :  { %v6226_v48 = vadd.f32 %v3978_v47, %v167_v40  ;;  %v360_v50 = vpop.f32.mrb[3].mxu1 }
 0x14c   :  { %v6228_v51 = vadd.f32 %v360_v50, %v167_v40 }
 0x14e   :  { %v3981_v52 = vpop.f32.mrb[4].mxu1 }
 0x14f   :  { %v6230_v53 = vadd.f32 %v3981_v52, %v167_v40  ;;  %v370_v55 = vpop.f32.mrb[5].mxu1 }
 0x150   :  { %v6233_v58 = vadd.f32 %v370_v55, %v167_v40 }
 0x152   :  { %v3984_v62 = vpop.f32.mrb[6].mxu1 }
 0x153   :  { %v6240_v63 = vadd.f32 %v3984_v62, %v167_v40  ;;  %v380_v2 = vpop.f32.mrb[7].mxu1 }
 0x154   :  { %v6246_v7 = vadd.f32 %v380_v2, %v167_v40 }
 0x160   :  { %v540_v4 = vpop.f32.mrb[0].mxu0 }
 0x161   :  { %v5672_v8 = vadd.f32 %v540_v4, %v6238_v61  ;;  %v542_v9 = vpop.f32.mrb[1].mxu0 }
 0x162   :  { %v5673_v13 = vadd.f32 %v542_v9, %v6244_v5 }
 0x163   :  { %v616_v11 = vmul.f32 0.5, %v5672_v8 }
 0x164   :  { %v621_v16 = vmul.f32 0.5, %v5673_v13 }
 0x165   :  { %5748 = vtanh.f32 %v616_v11 }
 0x166   :  { %v611_v15 = vpop.f32.mrb[8].mxu1  ;;  %5750 = vtanh.f32 %v621_v16 }
 0x167   :  { %v4019_v20 = vpop.f32.mrb[9].mxu1  ;;  %v625_v27 = vadd.f32 %v6253_v21, %v611_v15 }
 0x16f   :  { %v5749_v23 = vpop.eup %5748 }
 0x170   :  { %v618_v26 = vadd.f32 1.0, %v5749_v23  ;;  %v5751_v39 = vpop.eup %5750 }
 0x171   :  { %v623_v47 = vadd.f32 1.0, %v5751_v39 }
 0x172   :  { %v619_v30 = vmul.f32 0.5, %v618_v26 }
 0x173   :  { %v624_v50 = vmul.f32 0.5, %v623_v47 }
 0x174   :  { %v626_v34 = vmul.f32 %v625_v27, %v619_v30 }
 0x175   :  { %v629_v52 = vsub.f32 1.0, %v624_v50  ;;  %v631_v62 = vmul.f32 0.0, %v624_v50 }
 0x176   :  { %v627_v42 = vadd.f32 %v626_v34, %v351_v31 }
 0x178   :  { %5752 = vtanh.f32 %v627_v42 }
 0x182   :  { %v5753_v55 = vpop.eup %5752 }
 0x183   :  { %v630_v2 = vmul.f32 %v5753_v55, %v629_v52 }
 0x185   :  { %v6256_v4 = vadd.f32 %v631_v62, %v630_v2 }
 0x187   :  { %705 = vmatmul.mubr.f32.vlgmr.msra.gmra.mrb[2].mxu0 %v6256_v4  ;;  %4053 = vmatmul.mubr.f32.vlgmr.msra.gmra.mrb[10].mxu1 %v6256_v4 }
 0x188   :  { %4803 = vmatpush1.bf16.msra.mxu0 %v6088_v17  ;;  %4834 = vmatpush3.bf16.msra.mxu1 %v6101_v33 }
 0x189   :  { %4805 = vmatprep.subr.bf16.mxu0 %v6091_v18  ;;  %4835 = vmatprep.subr.bf16.mxu1 %v5972_v41 }
 0x18a   :  { %871 = vmatprep.mubr.f32.mxu0 %v5971_v0  ;;  %4087 = vmatprep.mubr.msk.f32.mxu1 %vm5973_vm0, %v5971_v0 }
 0x18c   :  { %4807 = vmatpush1.bf16.msra.mxu0 %v6096_v25  ;;  %4837 = vmatpush3.bf16.msra.mxu1 %v6112_v44 }
 0x18d   :  { %4809 = vmatprep.subr.bf16.mxu0 %v6099_v28  ;;  %4838 = vmatprep.subr.bf16.mxu1 %v5972_v41 }
 0x190   :  { %4811 = vmatpush1.bf16.msra.mxu0 %v6105_v35  ;;  %4840 = vmatpush3.bf16.msra.mxu1 %v6123_v54 }
 0x191   :  { %4813 = vmatprep.subr.bf16.mxu0 %v6108_v38  ;;  %4841 = vmatprep.subr.bf16.mxu1 %v5972_v41 }
 0x194   :  { %4815 = vmatpush1.bf16.msra.mxu0 %v6116_v46  ;;  %4843 = vmatpush3.bf16.msra.mxu1 %v6134_v1 }
 0x195   :  { %4817 = vmatprep.subr.bf16.mxu0 %v6119_v49  ;;  %4844 = vmatprep.subr.bf16.mxu1 %v5972_v41 }
 0x198   :  { %4819 = vmatpush1.bf16.msra.mxu0 %v6127_v56  ;;  %4846 = vmatpush3.bf16.msra.mxu1 %v6145_v12 }
 0x199   :  { %4821 = vmatprep.subr.bf16.mxu0 %v6130_v59  ;;  %4847 = vmatprep.subr.bf16.mxu1 %v5972_v41 }
 0x19c   :  { %4823 = vmatpush1.bf16.msra.mxu0 %v6138_v3  ;;  %4849 = vmatpush3.bf16.msra.mxu1 %v6156_v22 }
 0x19d   :  { %4825 = vmatprep.subr.bf16.mxu0 %v6141_v6  ;;  %4850 = vmatprep.subr.bf16.mxu1 %v5972_v41 }
 0x1a0   :  { %4827 = vmatpush1.bf16.msra.mxu0 %v6149_v14  ;;  %4852 = vmatpush3.bf16.msra.mxu1 %v6165_v29 }
 0x1a1   :  { %4829 = vmatprep.subr.bf16.mxu0 %v6152_v19  ;;  %4853 = vmatprep.subr.bf16.mxu1 %v5972_v41 }
 0x1a4   :  { %4831 = vmatpush1.bf16.msra.mxu0 %v6160_v24  ;;  %4855 = vmatpush3.bf16.msra.mxu1 %v6175_v32 }
 0x1a5   :  { %4857 = vmatprep.subr.bf16.mxu0 %v6086_v10  ;;  %4888 = vmatprep.subr.bf16.mxu1 %v5972_v41 }
 0x25a   :  { %v706_v40 = vpop.f32.mrb[2].mxu0  ;;  %v777_v45 = vpop.f32.mrb[10].mxu1 }
 0x25b   :  { %v5674_v8 = vadd.f32 %v706_v40, %v6238_v61  ;;  %v708_v9 = vpop.f32.mrb[3].mxu0  ;;  %v4054_v11 = vpop.f32.mrb[11].mxu1  ;;  %v791_v27 = vadd.f32 %v6253_v21, %v777_v45 }
 0x25c   :  { %v5675_v15 = vadd.f32 %v708_v9, %v6244_v5 }
 0x25d   :  { %v782_v13 = vmul.f32 0.5, %v5674_v8 }
 0x25e   :  { %v787_v16 = vmul.f32 0.5, %v5675_v15 }
 0x25f   :  { %5754 = vtanh.f32 %v782_v13 }
 0x260   :  { %5756 = vtanh.f32 %v787_v16 }
 0x269   :  { %v5755_v20 = vpop.eup %5754 }
 0x26a   :  { %v784_v23 = vadd.f32 1.0, %v5755_v20  ;;  %v5757_v31 = vpop.eup %5756 }
 0x26b   :  { %v789_v39 = vadd.f32 1.0, %v5757_v31 }
 0x26c   :  { %v785_v26 = vmul.f32 0.5, %v784_v23 }
 0x26d   :  { %v790_v42 = vmul.f32 0.5, %v789_v39 }
 0x26e   :  { %v792_v30 = vmul.f32 %v791_v27, %v785_v26 }
 0x26f   :  { %v795_v47 = vsub.f32 1.0, %v790_v42  ;;  %v797_v55 = vmul.f32 %v790_v42, %v6256_v4 }
 0x270   :  { %v793_v34 = vadd.f32 %v792_v30, %v6224_v43 }
 0x272   :  { %5758 = vtanh.f32 %v793_v34 }
 0x27c   :  { %v5759_v50 = vpop.eup %5758 }
 0x27d   :  { %v796_v52 = vmul.f32 %v5759_v50, %v795_v47 }
 0x27f   :  { %v6300_v62 = vadd.f32 %v797_v55, %v796_v52 }
 0x281   :  { %872 = vmatmul.mubr.f32.vlgmr.msra.gmra.mrb[4].mxu0 %v6300_v62  ;;  %4088 = vmatmul.mubr.f32.vlgmr.msra.gmra.mrb[12].mxu1 %v6300_v62 }
 0x282   :  { %4859 = vmatpush1.bf16.msra.mxu0 %v6088_v17  ;;  %4890 = vmatpush3.bf16.msra.mxu1 %v6101_v33 }
 0x283   :  { %4861 = vmatprep.subr.bf16.mxu0 %v6091_v18  ;;  %4891 = vmatprep.subr.bf16.mxu1 %v5972_v41 }
 0x284   :  { %1038 = vmatprep.mubr.f32.mxu0 %v5971_v0  ;;  %4122 = vmatprep.mubr.msk.f32.mxu1 %vm5973_vm0, %v5971_v0 }
 0x286   :  { %4863 = vmatpush1.bf16.msra.mxu0 %v6096_v25  ;;  %4893 = vmatpush3.bf16.msra.mxu1 %v6112_v44 }
 0x287   :  { %4865 = vmatprep.subr.bf16.mxu0 %v6099_v28  ;;  %4894 = vmatprep.subr.bf16.mxu1 %v5972_v41 }
 0x28a   :  { %4867 = vmatpush1.bf16.msra.mxu0 %v6105_v35  ;;  %4896 = vmatpush3.bf16.msra.mxu1 %v6123_v54 }
 0x28b   :  { %4869 = vmatprep.subr.bf16.mxu0 %v6108_v38  ;;  %4897 = vmatprep.subr.bf16.mxu1 %v5972_v41 }
 0x28e   :  { %4871 = vmatpush1.bf16.msra.mxu0 %v6116_v46  ;;  %4899 = vmatpush3.bf16.msra.mxu1 %v6134_v1 }
 0x28f   :  { %4873 = vmatprep.subr.bf16.mxu0 %v6119_v49  ;;  %4900 = vmatprep.subr.bf16.mxu1 %v5972_v41 }
 0x292   :  { %4875 = vmatpush1.bf16.msra.mxu0 %v6127_v56  ;;  %4902 = vmatpush3.bf16.msra.mxu1 %v6145_v12 }
 0x293   :  { %4877 = vmatprep.subr.bf16.mxu0 %v6130_v59  ;;  %4903 = vmatprep.subr.bf16.mxu1 %v5972_v41 }
 0x296   :  { %4879 = vmatpush1.bf16.msra.mxu0 %v6138_v3  ;;  %4905 = vmatpush3.bf16.msra.mxu1 %v6156_v22 }
 0x297   :  { %4881 = vmatprep.subr.bf16.mxu0 %v6141_v6  ;;  %4906 = vmatprep.subr.bf16.mxu1 %v5972_v41 }
 0x29a   :  { %4883 = vmatpush1.bf16.msra.mxu0 %v6149_v14  ;;  %4908 = vmatpush3.bf16.msra.mxu1 %v6165_v29 }
 0x29b   :  { %4885 = vmatprep.subr.bf16.mxu0 %v6152_v19  ;;  %4909 = vmatprep.subr.bf16.mxu1 %v5972_v41 }
 0x29e   :  { %4887 = vmatpush1.bf16.msra.mxu0 %v6160_v24  ;;  %4911 = vmatpush3.bf16.msra.mxu1 %v6175_v32 }
 0x29f   :  { %4913 = vmatprep.subr.bf16.mxu0 %v6086_v10  ;;  %4944 = vmatprep.subr.bf16.mxu1 %v5972_v41 }
 0x354   :  { %v873_v43 = vpop.f32.mrb[4].mxu0  ;;  %v944_v2 = vpop.f32.mrb[12].mxu1 }
 0x355   :  { %v5676_v40 = vadd.f32 %v873_v43, %v6238_v61  ;;  %v875_v45 = vpop.f32.mrb[5].mxu0  ;;  %v4089_v8 = vpop.f32.mrb[13].mxu1  ;;  %v958_v23 = vadd.f32 %v6253_v21, %v944_v2 }
 0x356   :  { %v5677_v11 = vadd.f32 %v875_v45, %v6244_v5 }
 0x357   :  { %v949_v9 = vmul.f32 0.5, %v5676_v40 }
 0x358   :  { %v954_v13 = vmul.f32 0.5, %v5677_v11 }
 0x359   :  { %5760 = vtanh.f32 %v949_v9 }
 0x35a   :  { %5762 = vtanh.f32 %v954_v13 }
 0x363   :  { %v5761_v15 = vpop.eup %5760 }
 0x364   :  { %v951_v16 = vadd.f32 1.0, %v5761_v15  ;;  %v5763_v27 = vpop.eup %5762 }
 0x365   :  { %v956_v31 = vadd.f32 1.0, %v5763_v27 }
 0x366   :  { %v952_v20 = vmul.f32 0.5, %v951_v16 }
 0x367   :  { %v957_v34 = vmul.f32 0.5, %v956_v31 }
 0x368   :  { %v959_v26 = vmul.f32 %v958_v23, %v952_v20 }
 0x369   :  { %v962_v39 = vsub.f32 1.0, %v957_v34  ;;  %v964_v50 = vmul.f32 %v957_v34, %v6300_v62 }
 0x36a   :  { %v960_v30 = vadd.f32 %v959_v26, %v6228_v51 }
 0x36c   :  { %5764 = vtanh.f32 %v960_v30 }
 0x376   :  { %v5765_v42 = vpop.eup %5764 }
 0x377   :  { %v963_v47 = vmul.f32 %v5765_v42, %v962_v39 }
 0x379   :  { %v6344_v52 = vadd.f32 %v964_v50, %v963_v47 }
 0x37b   :  { %1039 = vmatmul.mubr.f32.vlgmr.msra.gmra.mrb[6].mxu0 %v6344_v52  ;;  %4123 = vmatmul.mubr.f32.vlgmr.msra.gmra.mrb[14].mxu1 %v6344_v52 }
 0x37c   :  { %4915 = vmatpush1.bf16.msra.mxu0 %v6088_v17  ;;  %4946 = vmatpush3.bf16.msra.mxu1 %v6101_v33 }
 0x37d   :  { %4917 = vmatprep.subr.bf16.mxu0 %v6091_v18  ;;  %4947 = vmatprep.subr.bf16.mxu1 %v5972_v41 }
 0x37e   :  { %1205 = vmatprep.mubr.f32.mxu0 %v5971_v0  ;;  %4157 = vmatprep.mubr.msk.f32.mxu1 %vm5973_vm0, %v5971_v0 }
 0x380   :  { %4919 = vmatpush1.bf16.msra.mxu0 %v6096_v25  ;;  %4949 = vmatpush3.bf16.msra.mxu1 %v6112_v44 }
 0x381   :  { %4921 = vmatprep.subr.bf16.mxu0 %v6099_v28  ;;  %4950 = vmatprep.subr.bf16.mxu1 %v5972_v41 }
 0x384   :  { %4923 = vmatpush1.bf16.msra.mxu0 %v6105_v35  ;;  %4952 = vmatpush3.bf16.msra.mxu1 %v6123_v54 }
 0x385   :  { %4925 = vmatprep.subr.bf16.mxu0 %v6108_v38  ;;  %4953 = vmatprep.subr.bf16.mxu1 %v5972_v41 }
 0x388   :  { %4927 = vmatpush1.bf16.msra.mxu0 %v6116_v46  ;;  %4955 = vmatpush3.bf16.msra.mxu1 %v6134_v1 }
 0x389   :  { %4929 = vmatprep.subr.bf16.mxu0 %v6119_v49  ;;  %4956 = vmatprep.subr.bf16.mxu1 %v5972_v41 }
 0x38c   :  { %4931 = vmatpush1.bf16.msra.mxu0 %v6127_v56  ;;  %4958 = vmatpush3.bf16.msra.mxu1 %v6145_v12 }
 0x38d   :  { %4933 = vmatprep.subr.bf16.mxu0 %v6130_v59  ;;  %4959 = vmatprep.subr.bf16.mxu1 %v5972_v41 }
 0x390   :  { %4935 = vmatpush1.bf16.msra.mxu0 %v6138_v3  ;;  %4961 = vmatpush3.bf16.msra.mxu1 %v6156_v22 }
 0x391   :  { %4937 = vmatprep.subr.bf16.mxu0 %v6141_v6  ;;  %4962 = vmatprep.subr.bf16.mxu1 %v5972_v41 }
 0x394   :  { %4939 = vmatpush1.bf16.msra.mxu0 %v6149_v14  ;;  %4964 = vmatpush3.bf16.msra.mxu1 %v6165_v29 }
 0x395   :  { %4941 = vmatprep.subr.bf16.mxu0 %v6152_v19  ;;  %4965 = vmatprep.subr.bf16.mxu1 %v5972_v41 }
 0x398   :  { %4943 = vmatpush1.bf16.msra.mxu0 %v6160_v24  ;;  %4967 = vmatpush3.bf16.msra.mxu1 %v6175_v32 }
 0x399   :  { %4969 = vmatprep.subr.bf16.mxu0 %v6086_v10  ;;  %5000 = vmatprep.subr.bf16.mxu1 %v5972_v41 }
 0x44e   :  { %v1040_v51 = vpop.f32.mrb[6].mxu0  ;;  %v1111_v55 = vpop.f32.mrb[14].mxu1 }
 0x44f   :  { %v5678_v43 = vadd.f32 %v1040_v51, %v6238_v61  ;;  %v1042_v2 = vpop.f32.mrb[7].mxu0  ;;  %v4124_v40 = vpop.f32.mrb[15].mxu1  ;;  %v1125_v16 = vadd.f32 %v6253_v21, %v1111_v55 }
 0x450   :  { %v5679_v8 = vadd.f32 %v1042_v2, %v6244_v5 }
 0x451   :  { %v1116_v45 = vmul.f32 0.5, %v5678_v43 }
 0x452   :  { %v1121_v9 = vmul.f32 0.5, %v5679_v8 }
 0x453   :  { %5766 = vtanh.f32 %v1116_v45 }
 0x454   :  { %5768 = vtanh.f32 %v1121_v9 }
 0x45d   :  { %v5767_v11 = vpop.eup %5766 }
 0x45e   :  { %v1118_v13 = vadd.f32 1.0, %v5767_v11  ;;  %v5769_v23 = vpop.eup %5768 }
 0x45f   :  { %v1123_v27 = vadd.f32 1.0, %v5769_v23 }
 0x460   :  { %v1119_v15 = vmul.f32 0.5, %v1118_v13 }
 0x461   :  { %v1124_v30 = vmul.f32 0.5, %v1123_v27 }
 0x462   :  { %v1126_v20 = vmul.f32 %v1125_v16, %v1119_v15 }
 0x463   :  { %v1129_v31 = vsub.f32 1.0, %v1124_v30  ;;  %v1131_v42 = vmul.f32 %v1124_v30, %v6344_v52 }
 0x464   :  { %v1127_v26 = vadd.f32 %v1126_v20, %v6226_v48 }
 0x466   :  { %5770 = vtanh.f32 %v1127_v26 }
 0x470   :  { %v5771_v34 = vpop.eup %5770 }
 0x471   :  { %v1130_v39 = vmul.f32 %v5771_v34, %v1129_v31 }
 0x473   :  { %v6388_v47 = vadd.f32 %v1131_v42, %v1130_v39 }
 0x475   :  { %1206 = vmatmul.mubr.f32.vlgmr.msra.gmra.mrb[8].mxu0 %v6388_v47  ;;  %4158 = vmatmul.mubr.f32.vlgmr.msra.gmra.mrb[16].mxu1 %v6388_v47 }
 0x476   :  { %4971 = vmatpush1.bf16.msra.mxu0 %v6088_v17  ;;  %5002 = vmatpush3.bf16.msra.mxu1 %v6101_v33 }
 0x477   :  { %4973 = vmatprep.subr.bf16.mxu0 %v6091_v18  ;;  %5003 = vmatprep.subr.bf16.mxu1 %v5972_v41 }
 0x478   :  { %1372 = vmatprep.mubr.f32.mxu0 %v5971_v0  ;;  %4192 = vmatprep.mubr.msk.f32.mxu1 %vm5973_vm0, %v5971_v0 }
 0x47a   :  { %4975 = vmatpush1.bf16.msra.mxu0 %v6096_v25  ;;  %5005 = vmatpush3.bf16.msra.mxu1 %v6112_v44 }
 0x47b   :  { %4977 = vmatprep.subr.bf16.mxu0 %v6099_v28  ;;  %5006 = vmatprep.subr.bf16.mxu1 %v5972_v41 }
 0x47e   :  { %4979 = vmatpush1.bf16.msra.mxu0 %v6105_v35  ;;  %5008 = vmatpush3.bf16.msra.mxu1 %v6123_v54 }
 0x47f   :  { %4981 = vmatprep.subr.bf16.mxu0 %v6108_v38  ;;  %5009 = vmatprep.subr.bf16.mxu1 %v5972_v41 }
 0x482   :  { %4983 = vmatpush1.bf16.msra.mxu0 %v6116_v46  ;;  %5011 = vmatpush3.bf16.msra.mxu1 %v6134_v1 }
 0x483   :  { %4985 = vmatprep.subr.bf16.mxu0 %v6119_v49  ;;  %5012 = vmatprep.subr.bf16.mxu1 %v5972_v41 }
 0x486   :  { %4987 = vmatpush1.bf16.msra.mxu0 %v6127_v56  ;;  %5014 = vmatpush3.bf16.msra.mxu1 %v6145_v12 }
 0x487   :  { %4989 = vmatprep.subr.bf16.mxu0 %v6130_v59  ;;  %5015 = vmatprep.subr.bf16.mxu1 %v5972_v41 }
 0x48a   :  { %4991 = vmatpush1.bf16.msra.mxu0 %v6138_v3  ;;  %5017 = vmatpush3.bf16.msra.mxu1 %v6156_v22 }
 0x48b   :  { %4993 = vmatprep.subr.bf16.mxu0 %v6141_v6  ;;  %5018 = vmatprep.subr.bf16.mxu1 %v5972_v41 }
 0x48e   :  { %4995 = vmatpush1.bf16.msra.mxu0 %v6149_v14  ;;  %5020 = vmatpush3.bf16.msra.mxu1 %v6165_v29 }
 0x48f   :  { %4997 = vmatprep.subr.bf16.mxu0 %v6152_v19  ;;  %5021 = vmatprep.subr.bf16.mxu1 %v5972_v41 }
 0x492   :  { %4999 = vmatpush1.bf16.msra.mxu0 %v6160_v24  ;;  %5023 = vmatpush3.bf16.msra.mxu1 %v6175_v32 }
 0x493   :  { %5025 = vmatprep.subr.bf16.mxu0 %v6086_v10  ;;  %5056 = vmatprep.subr.bf16.mxu1 %v5972_v41 }
 0x548   :  { %v1207_v48 = vpop.f32.mrb[8].mxu0  ;;  %v1278_v50 = vpop.f32.mrb[16].mxu1 }
 0x549   :  { %v5680_v51 = vadd.f32 %v1207_v48, %v6238_v61  ;;  %v1209_v55 = vpop.f32.mrb[9].mxu0  ;;  %v4159_v43 = vpop.f32.mrb[17].mxu1  ;;  %v1292_v13 = vadd.f32 %v6253_v21, %v1278_v50 }
 0x54a   :  { %v5681_v40 = vadd.f32 %v1209_v55, %v6244_v5 }
 0x54b   :  { %v1283_v2 = vmul.f32 0.5, %v5680_v51 }
 0x54c   :  { %v1288_v45 = vmul.f32 0.5, %v5681_v40 }
 0x54d   :  { %5772 = vtanh.f32 %v1283_v2 }
 0x54e   :  { %5774 = vtanh.f32 %v1288_v45 }
 0x557   :  { %v5773_v8 = vpop.eup %5772 }
 0x558   :  { %v1285_v9 = vadd.f32 1.0, %v5773_v8  ;;  %v5775_v16 = vpop.eup %5774 }
 0x559   :  { %v1290_v23 = vadd.f32 1.0, %v5775_v16 }
 0x55a   :  { %v1286_v11 = vmul.f32 0.5, %v1285_v9 }
 0x55b   :  { %v1291_v26 = vmul.f32 0.5, %v1290_v23 }
 0x55c   :  { %v1293_v15 = vmul.f32 %v1292_v13, %v1286_v11 }
 0x55d   :  { %v1296_v27 = vsub.f32 1.0, %v1291_v26  ;;  %v1298_v34 = vmul.f32 %v1291_v26, %v6388_v47 }
 0x55e   :  { %v1294_v20 = vadd.f32 %v1293_v15, %v6233_v58 }
 0x560   :  { %5776 = vtanh.f32 %v1294_v20 }
 0x56a   :  { %v5777_v30 = vpop.eup %5776 }
 0x56b   :  { %v1297_v31 = vmul.f32 %v5777_v30, %v1296_v27 }
 0x56d   :  { %v6432_v39 = vadd.f32 %v1298_v34, %v1297_v31  ;;  %v1812_v31 = vld [vmem:[#allocation7 + $0x180] sm:$0xff]  ;;  %v1815_v34 = vld [vmem:[#allocation7 + $0x198] sm:$0xff] }
 0x56f   :  { %1373 = vmatmul.mubr.f32.vlgmr.msra.gmra.mrb[10].mxu0 %v6432_v39  ;;  %4193 = vmatmul.mubr.f32.vlgmr.msra.gmra.mrb[18].mxu1 %v6432_v39 }
 0x570   :  { %5027 = vmatpush1.bf16.msra.mxu0 %v6088_v17  ;;  %5058 = vmatpush3.bf16.msra.mxu1 %v6101_v33 }
 0x571   :  { %5029 = vmatprep.subr.bf16.mxu0 %v6091_v18  ;;  %5059 = vmatprep.subr.bf16.mxu1 %v5972_v41 }
 0x572   :  { %1539 = vmatprep.mubr.f32.mxu0 %v5971_v0  ;;  %4227 = vmatprep.mubr.msk.f32.mxu1 %vm5973_vm0, %v5971_v0 }
 0x574   :  { %5031 = vmatpush1.bf16.msra.mxu0 %v6096_v25  ;;  %5061 = vmatpush3.bf16.msra.mxu1 %v6112_v44 }
 0x575   :  { %5033 = vmatprep.subr.bf16.mxu0 %v6099_v28  ;;  %5062 = vmatprep.subr.bf16.mxu1 %v5972_v41 }
 0x578   :  { %5035 = vmatpush1.bf16.msra.mxu0 %v6105_v35  ;;  %5064 = vmatpush3.bf16.msra.mxu1 %v6123_v54 }
 0x579   :  { %5037 = vmatprep.subr.bf16.mxu0 %v6108_v38  ;;  %5065 = vmatprep.subr.bf16.mxu1 %v5972_v41 }
 0x57c   :  { %5039 = vmatpush1.bf16.msra.mxu0 %v6116_v46  ;;  %5067 = vmatpush3.bf16.msra.mxu1 %v6134_v1 }
 0x57d   :  { %5041 = vmatprep.subr.bf16.mxu0 %v6119_v49  ;;  %5068 = vmatprep.subr.bf16.mxu1 %v5972_v41 }
 0x580   :  { %5043 = vmatpush1.bf16.msra.mxu0 %v6127_v56  ;;  %5070 = vmatpush3.bf16.msra.mxu1 %v6145_v12 }
 0x581   :  { %5045 = vmatprep.subr.bf16.mxu0 %v6130_v59  ;;  %5071 = vmatprep.subr.bf16.mxu1 %v5972_v41 }
 0x584   :  { %5047 = vmatpush1.bf16.msra.mxu0 %v6138_v3  ;;  %5073 = vmatpush3.bf16.msra.mxu1 %v6156_v22 }
 0x585   :  { %5049 = vmatprep.subr.bf16.mxu0 %v6141_v6  ;;  %5074 = vmatprep.subr.bf16.mxu1 %v5972_v41 }
 0x588   :  { %5051 = vmatpush1.bf16.msra.mxu0 %v6149_v14  ;;  %5076 = vmatpush3.bf16.msra.mxu1 %v6165_v29 }
 0x589   :  { %5053 = vmatprep.subr.bf16.mxu0 %v6152_v19  ;;  %5077 = vmatprep.subr.bf16.mxu1 %v5972_v41 }
 0x58c   :  { %5055 = vmatpush1.bf16.msra.mxu0 %v6160_v24  ;;  %5079 = vmatpush3.bf16.msra.mxu1 %v6175_v32 }
 0x58d   :  { %5081 = vmatprep.subr.bf16.mxu0 %v6086_v10  ;;  %5112 = vmatprep.subr.bf16.mxu1 %v5972_v41 }
 0x642   :  { %v1374_v58 = vpop.f32.mrb[10].mxu0  ;;  %v1445_v42 = vpop.f32.mrb[18].mxu1 }
 0x643   :  { %v5682_v48 = vadd.f32 %v1374_v58, %v6238_v61  ;;  %v1376_v50 = vpop.f32.mrb[11].mxu0  ;;  %v4194_v51 = vpop.f32.mrb[19].mxu1  ;;  %v1459_v9 = vadd.f32 %v6253_v21, %v1445_v42  ;;  %v1819_v42 = vld [vmem:[#allocation7 + $0x1b8] sm:$0xff] }
 0x644   :  { %v5683_v43 = vadd.f32 %v1376_v50, %v6244_v5 }
 0x645   :  { %v1450_v55 = vmul.f32 0.5, %v5682_v48  ;;  %v1822_v48 = vld [vmem:[#allocation7 + $0x1d0] sm:$0xff] }
 0x646   :  { %v1455_v2 = vmul.f32 0.5, %v5683_v43  ;;  %v1823_v43 = vld [vmem:[#allocation7 + $0x1d8] sm:$0xff] }
 0x647   :  { %5778 = vtanh.f32 %v1450_v55  ;;  %v1820_v55 = vld [vmem:[#allocation7 + $0x1c0] sm:$0xff] }
 0x648   :  { %5780 = vtanh.f32 %v1455_v2  ;;  %v5138_v2 = vpack.c.bf16 %v1815_v34, %v1812_v31  ;;  %v1842_v31 = vld [vmem:[#allocation7 + $0x270] sm:$0xff]  ;;  %v1845_v34 = vld [vmem:[#allocation7 + $0x288] sm:$0xff] }
 0x651   :  { %v5779_v40 = vpop.eup %5778 }
 0x652   :  { %v1452_v45 = vadd.f32 1.0, %v5779_v40  ;;  %v5781_v11 = vpop.eup %5780  ;;  %v5140_v40 = vpack.c.bf16 %v1822_v48, %v1819_v42  ;;  %v1852_v42 = vld [vmem:[#allocation7 + $0x2c0] sm:$0xff]  ;;  %v1850_v48 = vld [vmem:[#allocation7 + $0x2b0] sm:$0xff] }
 0x653   :  { %v1457_v15 = vadd.f32 1.0, %v5781_v11  ;;  %v1826_v11 = vld [vmem:[#allocation7 + $0x1f0] sm:$0xff] }
 0x654   :  { %v1453_v8 = vmul.f32 0.5, %v1452_v45  ;;  %v1818_v45 = vld [vmem:[#allocation7 + $0x1b0] sm:$0xff] }
 0x655   :  { %v1458_v16 = vmul.f32 0.5, %v1457_v15 }
 0x656   :  { %v1460_v10 = vmul.f32 %v1459_v9, %v1453_v8  ;;  %v1825_v8 = vld [vmem:[#allocation7 + $0x1e8] sm:$0xff]  ;;  %v5172_v9 = vpack.c.bf16 %v1823_v43, %v1820_v55 }
 0x657   :  { %v1463_v20 = vsub.f32 1.0, %v1458_v16  ;;  %v1465_v27 = vmul.f32 %v1458_v16, %v6432_v39 }
 0x658   :  { %v1461_v13 = vadd.f32 %v1460_v10, %v6230_v53  ;;  %v1828_v10 = vld [vmem:[#allocation7 + $0x200] sm:$0xff] }
 0x659   :  { %v5144_v16 = vpack.c.bf16 %v1828_v10, %v1825_v8  ;;  %v1856_v8 = vld [vmem:[#allocation7 + $0x2e0] sm:$0xff] }
 0x65a   :  { %5782 = vtanh.f32 %v1461_v13  ;;  %v1829_v13 = vld [vmem:[#allocation7 + $0x208] sm:$0xff] }
 0x664   :  { %v5783_v23 = vpop.eup %5782 }
 0x665   :  { %v1464_v26 = vmul.f32 %v5783_v23, %v1463_v20  ;;  %v5176_v20 = vpack.c.bf16 %v1829_v13, %v1826_v11  ;;  %v1824_v23 = vld [vmem:[#allocation7 + $0x1e0] sm:$0xff] }
 0x667   :  { %v6476_v30 = vadd.f32 %v1465_v27, %v1464_v26  ;;  %v1827_v26 = vld [vmem:[#allocation7 + $0x1f8] sm:$0xff] }
 0x668   :  { %v1831_v27 = vld [vmem:[#allocation7 + $0x218] sm:$0xff] }
 0x669   :  { %1540 = vmatmul.mubr.f32.vlgmr.msra.gmra.mrb[12].mxu0 %v6476_v30  ;;  %4228 = vmatmul.mubr.f32.vlgmr.msra.gmra.mrb[20].mxu1 %v6476_v30 }
 0x66a   :  { %5083 = vmatpush1.bf16.msra.mxu0 %v6088_v17  ;;  %5114 = vmatpush3.bf16.msra.mxu1 %v6101_v33  ;;  %v1813_v17 = vld [vmem:[#allocation7 + $0x188] sm:$0xff] }
 0x66b   :  { %5085 = vmatprep.subr.bf16.mxu0 %v6091_v18  ;;  %5115 = vmatprep.subr.bf16.mxu1 %v5972_v41  ;;  %v1816_v18 = vld [vmem:[#allocation7 + $0x1a0] sm:$0xff]  ;;  %v1817_v33 = vld [vmem:[#allocation7 + $0x1a8] sm:$0xff] }
 0x66c   :  { %1706 = vmatprep.mubr.f32.mxu0 %v5971_v0  ;;  %4262 = vmatprep.mubr.msk.f32.mxu1 %vm5973_vm0, %v5971_v0 }
 0x66e   :  { %5087 = vmatpush1.bf16.msra.mxu0 %v6096_v25  ;;  %5117 = vmatpush3.bf16.msra.mxu1 %v6112_v44  ;;  %v1814_v25 = vld [vmem:[#allocation7 + $0x190] sm:$0xff] }
 0x66f   :  { %5089 = vmatprep.subr.bf16.mxu0 %v6099_v28  ;;  %5118 = vmatprep.subr.bf16.mxu1 %v5972_v41  ;;  %v5136_v28 = vpack.c.bf16 %v1816_v18, %v1813_v17  ;;  %v1834_v17 = vld [vmem:[#allocation7 + $0x230] sm:$0xff]  ;;  %v1832_v18 = vld [vmem:[#allocation7 + $0x220] sm:$0xff] }
 0x672   :  { %5091 = vmatpush1.bf16.msra.mxu0 %v6105_v35  ;;  %5120 = vmatpush3.bf16.msra.mxu1 %v6123_v54  ;;  %v5168_v35 = vpack.c.bf16 %v1817_v33, %v1814_v25  ;;  %v1835_v25 = vld [vmem:[#allocation7 + $0x238] sm:$0xff]  ;;  %v5148_v33 = vpack.c.bf16 %v1834_v17, %v1831_v27  ;;  %v2127_v17 = vld [vmem:[#allocation9 + $0x1b0] sm:$0xff] }
 0x673   :  { %5093 = vmatprep.subr.bf16.mxu0 %v6108_v38  ;;  %5121 = vmatprep.subr.bf16.mxu1 %v5972_v41 }
 0x676   :  { %5095 = vmatpush1.bf16.msra.mxu0 %v6116_v46  ;;  %5123 = vmatpush3.bf16.msra.mxu1 %v6134_v1 }
 0x677   :  { %5097 = vmatprep.subr.bf16.mxu0 %v6119_v49  ;;  %5124 = vmatprep.subr.bf16.mxu1 %v5972_v41 }
 0x67a   :  { %5099 = vmatpush1.bf16.msra.mxu0 %v6127_v56  ;;  %5126 = vmatpush3.bf16.msra.mxu1 %v6145_v12 }
 0x67b   :  { %5101 = vmatprep.subr.bf16.mxu0 %v6130_v59  ;;  %5127 = vmatprep.subr.bf16.mxu1 %v5972_v41 }
 0x67e   :  { %5103 = vmatpush1.bf16.msra.mxu0 %v6138_v3  ;;  %5129 = vmatpush3.bf16.msra.mxu1 %v6156_v22 }
 0x67f   :  { %5105 = vmatprep.subr.bf16.mxu0 %v6141_v6  ;;  %5130 = vmatprep.subr.bf16.mxu1 %v5972_v41 }
 0x682   :  { %5107 = vmatpush1.bf16.msra.mxu0 %v6149_v14  ;;  %5132 = vmatpush3.bf16.msra.mxu1 %v6165_v29 }
 0x683   :  { %5109 = vmatprep.subr.bf16.mxu0 %v6152_v19  ;;  %5133 = vmatprep.subr.bf16.mxu1 %v5972_v41 }
 0x686   :  { %5111 = vmatpush1.bf16.msra.mxu0 %v6160_v24  ;;  %5135 = vmatpush3.bf16.msra.mxu1 %v6175_v32 }
 0x687   :  { %5137 = vmatprep.subr.bf16.mxu0 %v5136_v28  ;;  %5169 = vmatprep.subr.bf16.mxu1 %v5168_v35  ;;  %v5146_v28 = vpack.c.bf16 %v1827_v26, %v1824_v23  ;;  %v2121_v23 = vld [vmem:[#allocation9 + $0x180] sm:$0xff] }
 0x73c   :  { %v1541_v38 = vpop.f32.mrb[12].mxu0  ;;  %v1612_v44 = vpop.f32.mrb[20].mxu1 }
 0x73d   :  { %v5684_v46 = vadd.f32 %v1541_v38, %v6238_v61  ;;  %v1543_v49 = vpop.f32.mrb[13].mxu0  ;;  %v4229_v54 = vpop.f32.mrb[21].mxu1  ;;  %v1626_v14 = vadd.f32 %v6253_v21, %v1612_v44  ;;  %v1830_v38 = vld [vmem:[#allocation7 + $0x210] sm:$0xff]  ;;  %v1833_v44 = vld [vmem:[#allocation7 + $0x228] sm:$0xff] }
 0x73e   :  { %v5685_v59 = vadd.f32 %v1543_v49, %v6244_v5  ;;  %v1840_v49 = vld [vmem:[#allocation7 + $0x260] sm:$0xff]  ;;  %v1838_v54 = vld [vmem:[#allocation7 + $0x250] sm:$0xff] }
 0x73f   :  { %v1617_v56 = vmul.f32 0.5, %v5684_v46  ;;  %v1837_v46 = vld [vmem:[#allocation7 + $0x248] sm:$0xff] }
 0x740   :  { %v1622_v1 = vmul.f32 0.5, %v5685_v59  ;;  %v5150_v59 = vpack.c.bf16 %v1833_v44, %v1830_v38  ;;  %v2133_v38 = vld [vmem:[#allocation9 + $0x1e0] sm:$0xff]  ;;  %v2136_v44 = vld [vmem:[#allocation9 + $0x1f8] sm:$0xff] }
 0x741   :  { %5784 = vtanh.f32 %v1617_v56  ;;  %v1841_v56 = vld [vmem:[#allocation7 + $0x268] sm:$0xff] }
 0x742   :  { %5786 = vtanh.f32 %v1622_v1  ;;  %v5152_v1 = vpack.c.bf16 %v1840_v49, %v1837_v46  ;;  %v6559_v46 = vpack.c.bf16 %v2136_v44, %v2133_v38  ;;  %v2140_v49 = vld [vmem:[#allocation9 + $0x218] sm:$0xff] }
 0x743   :  { %v2156_v38 = vld [vmem:[#allocation9 + $0x298] sm:$0xff] }
 0x74b   :  { %v5785_v3 = vpop.eup %5784 }
 0x74c   :  { %v1619_v6 = vadd.f32 1.0, %v5785_v3  ;;  %v5787_v22 = vpop.eup %5786  ;;  %v5184_v3 = vpack.c.bf16 %v1841_v56, %v1838_v54  ;;  %v2143_v54 = vld [vmem:[#allocation9 + $0x230] sm:$0xff] }
 0x74d   :  { %v1624_v29 = vadd.f32 1.0, %v5787_v22  ;;  %v1844_v22 = vld [vmem:[#allocation7 + $0x280] sm:$0xff]  ;;  %v6563_v56 = vpack.c.bf16 %v2143_v54, %v2140_v49  ;;  %v2159_v49 = vld [vmem:[#allocation9 + $0x2b0] sm:$0xff]  ;;  %v2162_v54 = vld [vmem:[#allocation9 + $0x2c8] sm:$0xff] }
 0x74e   :  { %v1620_v12 = vmul.f32 0.5, %v1619_v6  ;;  %v1836_v6 = vld [vmem:[#allocation7 + $0x240] sm:$0xff] }
 0x74f   :  { %v1625_v32 = vmul.f32 0.5, %v1624_v29 }
 0x750   :  { %v1627_v19 = vmul.f32 %v1626_v14, %v1620_v12  ;;  %v1839_v12 = vld [vmem:[#allocation7 + $0x258] sm:$0xff] }
 0x751   :  { %v1630_v53 = vsub.f32 1.0, %v1625_v32  ;;  %v1632_v51 = vmul.f32 %v1625_v32, %v6476_v30  ;;  %v1843_v14 = vld [vmem:[#allocation7 + $0x278] sm:$0xff]  ;;  %v5154_v29 = vpack.c.bf16 %v1839_v12, %v1836_v6  ;;  %v2146_v6 = vld [vmem:[#allocation9 + $0x248] sm:$0xff]  ;;  %v2149_v12 = vld [vmem:[#allocation9 + $0x260] sm:$0xff] }
 0x752   :  { %v1628_v24 = vadd.f32 %v1627_v19, %v6246_v7  ;;  %v1821_v7 = vld [vmem:[#allocation7 + $0x1c8] sm:$0xff]  ;;  %v1846_v19 = vld [vmem:[#allocation7 + $0x290] sm:$0xff] }
 0x753   :  { %v5142_v15 = vpack.c.bf16 %v1821_v7, %v1818_v45  ;;  %v5156_v32 = vpack.c.bf16 %v1846_v19, %v1843_v14  ;;  %v1855_v45 = vld [vmem:[#allocation7 + $0x2d8] sm:$0xff]  ;;  %v1858_v7 = vld [vmem:[#allocation7 + $0x2f0] sm:$0xff]  ;;  %v2145_v14 = vld [vmem:[#allocation9 + $0x240] sm:$0xff]  ;;  %v6569_v19 = vpack.c.bf16 %v2149_v12, %v2146_v6 }
 0x754   :  { %5788 = vtanh.f32 %v1628_v24  ;;  %v1847_v24 = vld [vmem:[#allocation7 + $0x298] sm:$0xff]  ;;  %v5164_v11 = vpack.c.bf16 %v1858_v7, %v1855_v45  ;;  %v2157_v7 = vld [vmem:[#allocation9 + $0x2a0] sm:$0xff] }
 0x755   :  { %v2168_v6 = vld [vmem:[#allocation9 + $0x2f8] sm:$0xff] }
 0x75e   :  { %v5789_v58 = vpop.eup %5788 }
 0x75f   :  { %v1631_v50 = vmul.f32 %v5789_v58, %v1630_v53  ;;  %v5188_v53 = vpack.c.bf16 %v1847_v24, %v1844_v22  ;;  %v1849_v58 = vld [vmem:[#allocation7 + $0x2a8] sm:$0xff]  ;;  %v2148_v22 = vld [vmem:[#allocation9 + $0x258] sm:$0xff]  ;;  %v2123_v24 = vld [vmem:[#allocation9 + $0x190] sm:$0xff] }
 0x760   :  { %v5160_v55 = vpack.c.bf16 %v1852_v42, %v1849_v58  ;;  %v2151_v42 = vld [vmem:[#allocation9 + $0x270] sm:$0xff] }
 0x761   :  { %v6518_v21 = vadd.f32 %v1632_v51, %v1631_v50  ;;  %v1853_v50 = vld [vmem:[#allocation7 + $0x2c8] sm:$0xff]  ;;  %v5158_v51 = vpack.c.bf16 %v1845_v34, %v1842_v31  ;;  %v2152_v31 = vld [vmem:[#allocation9 + $0x278] sm:$0xff]  ;;  %v2155_v34 = vld [vmem:[#allocation9 + $0x290] sm:$0xff] }
 0x762   :  { %v5192_v43 = vpack.c.bf16 %v1853_v50, %v1850_v48  ;;  %v6579_v58 = vpack.c.bf16 %v2155_v34, %v2152_v31  ;;  %v2154_v48 = vld [vmem:[#allocation9 + $0x288] sm:$0xff]  ;;  %v2129_v50 = vld [vmem:[#allocation9 + $0x1c0] sm:$0xff] }
 0x763   :  { %1707 = vmatmul.mubr.f32.vlgmr.msra.gmra.mrb[14].mxu0 %v6518_v21  ;;  %4263 = vmatmul.mubr.f32.vlgmr.msra.gmra.mrb[22].mxu1 %v6518_v21 }
 0x764   :  { %5139 = vmatpush1.bf16.msra.mxu0 %v5138_v2  ;;  %5171 = vmatpush3.bf16.msra.mxu1 %v5168_v35  ;;  %v5180_v35 = vpack.c.bf16 %v1835_v25, %v1832_v18  ;;  %v1848_v2 = vld [vmem:[#allocation7 + $0x2a0] sm:$0xff]  ;;  %v2130_v18 = vld [vmem:[#allocation9 + $0x1c8] sm:$0xff] }
 0x765   :  { %4297 = vmatprep.mubr.f32.mxu1 %v6256_v4  ;;  %5141 = vmatprep.subr.bf16.mxu0 %v5140_v40  ;;  %v1851_v40 = vld [vmem:[#allocation7 + $0x2b8] sm:$0xff]  ;;  %v6553_v25 = vpack.c.bf16 %v2130_v18, %v2127_v17  ;;  %v2147_v17 = vld [vmem:[#allocation9 + $0x250] sm:$0xff]  ;;  %v2150_v18 = vld [vmem:[#allocation9 + $0x268] sm:$0xff] }
 0x766   :  { %5173 = vmatprep.subr.bf16.mxu1 %v5172_v9  ;;  %1942 = vmatprep.mubr.f32.mxu0 %v5971_v0  ;;  %v5162_v10 = vpack.c.bf16 %v1851_v40, %v1848_v2  ;;  %v2158_v2 = vld [vmem:[#allocation9 + $0x2a8] sm:$0xff]  ;;  %v2161_v40 = vld [vmem:[#allocation9 + $0x2c0] sm:$0xff] }
 0x767   :  { %v6588_v45 = vpack.c.bf16 %v2161_v40, %v2158_v2  ;;  %v5844_v40 = vld [vmem:[%s6991_s4] ss:$0 sm:$0xff] }
 0x768   :  { %5143 = vmatpush1.bf16.msra.mxu0 %v5142_v15  ;;  %5175 = vmatpush3.bf16.msra.mxu1 %v5172_v9  ;;  %v1859_v9 = vld [vmem:[#allocation7 + $0x2f8] sm:$0xff]  ;;  %v1854_v15 = vld [vmem:[#allocation7 + $0x2d0] sm:$0xff] }
 0x769   :  { %5145 = vmatprep.subr.bf16.mxu0 %v5144_v16  ;;  %5177 = vmatprep.subr.bf16.mxu1 %v5176_v20  ;;  %v5196_v13 = vpack.c.bf16 %v1859_v9, %v1856_v8  ;;  %v1857_v16 = vld [vmem:[#allocation7 + $0x2e8] sm:$0xff]  ;;  %v2160_v8 = vld [vmem:[#allocation9 + $0x2b8] sm:$0xff]  ;;  %v2135_v9 = vld [vmem:[#allocation9 + $0x1f0] sm:$0xff] }
 0x76c   :  { %5147 = vmatpush1.bf16.msra.mxu0 %v5146_v28  ;;  %5179 = vmatpush3.bf16.msra.mxu1 %v5176_v20  ;;  %v5166_v20 = vpack.c.bf16 %v1857_v16, %v1854_v15  ;;  %v2134_v28 = vld [vmem:[#allocation9 + $0x1e8] sm:$0xff]  ;;  %v2164_v15 = vld [vmem:[#allocation9 + $0x2d8] sm:$0xff]  ;;  %v2167_v16 = vld [vmem:[#allocation9 + $0x2f0] sm:$0xff] }
 0x76d   :  { %5149 = vmatprep.subr.bf16.mxu0 %v5148_v33  ;;  %5181 = vmatprep.subr.bf16.mxu1 %v5180_v35  ;;  %v2137_v33 = vld [vmem:[#allocation9 + $0x200] sm:$0xff] }
 0x770   :  { %5151 = vmatpush1.bf16.msra.mxu0 %v5150_v59  ;;  %5183 = vmatpush3.bf16.msra.mxu1 %v5180_v35  ;;  %v6557_v35 = vpack.c.bf16 %v2137_v33, %v2134_v28  ;;  %v2139_v59 = vld [vmem:[#allocation9 + $0x210] sm:$0xff]  ;;  %v6610_v28 = vpack.c.bf16 %v2150_v18, %v2147_v17  ;;  %v2153_v33 = vld [vmem:[#allocation9 + $0x280] sm:$0xff] }
 0x771   :  { %5153 = vmatprep.subr.bf16.mxu0 %v5152_v1  ;;  %5185 = vmatprep.subr.bf16.mxu1 %v5184_v3  ;;  %v2142_v1 = vld [vmem:[#allocation9 + $0x228] sm:$0xff]  ;;  %v6613_v44 = vpack.c.bf16 %v2156_v38, %v2153_v33 }
 0x774   :  { %5155 = vmatpush1.bf16.msra.mxu0 %v5154_v29  ;;  %5187 = vmatpush3.bf16.msra.mxu1 %v5184_v3  ;;  %v6565_v3 = vpack.c.bf16 %v2142_v1, %v2139_v59  ;;  %v2126_v29 = vld [vmem:[#allocation9 + $0x1a8] sm:$0xff]  ;;  %v6617_v59 = vpack.c.bf16 %v2162_v54, %v2159_v49  ;;  %v2165_v1 = vld [vmem:[#allocation9 + $0x2e0] sm:$0xff] }
 0x775   :  { %5157 = vmatprep.subr.bf16.mxu0 %v5156_v32  ;;  %5189 = vmatprep.subr.bf16.mxu1 %v5188_v53  ;;  %v6571_v32 = vpack.c.bf16 %v2148_v22, %v2145_v14  ;;  %v6621_v12 = vpack.c.bf16 %v2168_v6, %v2165_v1 }
 0x778   :  { %5159 = vmatpush1.bf16.msra.mxu0 %v5158_v51  ;;  %5191 = vmatpush3.bf16.msra.mxu1 %v5188_v53  ;;  %v6573_v53 = vpack.c.bf16 %v2126_v29, %v2123_v24  ;;  %v6581_v51 = vpack.c.bf16 %v2154_v48, %v2151_v42 }
 0x779   :  { %5161 = vmatprep.subr.bf16.mxu0 %v5160_v55  ;;  %5193 = vmatprep.subr.bf16.mxu1 %v5192_v43  ;;  %v2132_v55 = vld [vmem:[#allocation9 + $0x1d8] sm:$0xff] }
 0x77c   :  { %5163 = vmatpush1.bf16.msra.mxu0 %v5162_v10  ;;  %5195 = vmatpush3.bf16.msra.mxu1 %v5192_v43  ;;  %v6584_v43 = vpack.c.bf16 %v2132_v55, %v2129_v50  ;;  %v6590_v10 = vpack.c.bf16 %v2160_v8, %v2157_v7 }
 0x77d   :  { %5165 = vmatprep.subr.bf16.mxu0 %v5164_v11  ;;  %5197 = vmatprep.subr.bf16.mxu1 %v5196_v13  ;;  %v2138_v11 = vld [vmem:[#allocation9 + $0x208] sm:$0xff] }
 0x780   :  { %5167 = vmatpush1.bf16.msra.mxu0 %v5166_v20  ;;  %5199 = vmatpush3.bf16.msra.mxu1 %v5196_v13  ;;  %v6594_v13 = vpack.c.bf16 %v2138_v11, %v2135_v9  ;;  %v6598_v20 = vpack.c.bf16 %v2167_v16, %v2164_v15 }
 0x781   :  { %5232 = vmatprep.subr.bf16.mxu1 %v5972_v41 }
 0x783   :  { %1943 = vmatmul.mubr.f32.vlgmr.msra.gmra.mrb[16].mxu0 %v6256_v4  ;;  %4298 = vmatmul.mubr.f32.vlgmr.msra.gmra.mrb[24].mxu1 %v6300_v62  ;;  %v2122_v4 = vld [vmem:[#allocation9 + $0x188] sm:$0xff] }
 0x784   :  { %4300 = vmatprep.mubr.f32.mxu1 %v6344_v52  ;;  %1948 = vmatprep.mubr.f32.mxu0 %v5971_v0 }
 0x785   :  { %5234 = vmatpush3.bf16.msra.mxu1 %v6573_v53 }
 0x786   :  { %5235 = vmatprep.subr.bf16.mxu1 %v5972_v41 }
 0x787   :  { %1949 = vmatmul.mubr.f32.gmra.mrb[18].mxu0 %v6300_v62  ;;  %4301 = vmatmul.mubr.f32.gmra.mrb[26].mxu1 %v6388_v47  ;;  %v2125_v62 = vld [vmem:[#allocation9 + $0x1a0] sm:$0xff] }
 0x788   :  { %4303 = vmatprep.mubr.f32.mxu1 %v6432_v39  ;;  %1954 = vmatprep.mubr.f32.mxu0 %v5971_v0 }
 0x789   :  { %5237 = vmatpush3.bf16.msra.mxu1 %v6584_v43 }
 0x78a   :  { %5238 = vmatprep.subr.bf16.mxu1 %v5972_v41 }
 0x78b   :  { %1955 = vmatmul.mubr.f32.gmra.mrb[20].mxu0 %v6344_v52  ;;  %4304 = vmatmul.mubr.f32.gmra.mrb[28].mxu1 %v6476_v30  ;;  %v6545_v52 = vpack.c.bf16 %v2125_v62, %v2122_v4  ;;  %v2163_v4 = vld [vmem:[#allocation9 + $0x2d0] sm:$0xff]  ;;  %v2166_v62 = vld [vmem:[#allocation9 + $0x2e8] sm:$0xff] }
 0x78c   :  { %4306 = vmatprep.mubr.f32.mxu1 %v6518_v21  ;;  %1960 = vmatprep.mubr.f32.mxu0 %v5971_v0 }
 0x78d   :  { %5201 = vmatprep.subr.bf16.mxu0 %v6545_v52  ;;  %5240 = vmatpush3.bf16.msra.mxu1 %v6594_v13 }
 0x78e   :  { %5241 = vmatprep.subr.bf16.mxu1 %v5972_v41 }
 0x78f   :  { %1961 = vmatmul.mubr.f32.gmra.mrb[22].mxu0 %v6388_v47  ;;  %v2124_v47 = vld [vmem:[#allocation9 + $0x198] sm:$0xff] }
 0x790   :  { %1966 = vmatprep.mubr.f32.mxu0 %v5971_v0  ;;  %v6547_v26 = vpack.c.bf16 %v2124_v47, %v2121_v23  ;;  %v2141_v23 = vld [vmem:[#allocation9 + $0x220] sm:$0xff]  ;;  %v6600_v47 = vpack.c.bf16 %v2166_v62, %v2163_v4 }
 0x792   :  { %5203 = vmatpush1.bf16.msra.mxu0 %v6547_v26 }
 0x793   :  { %1967 = vmatmul.mubr.f32.gmra.mrb[24].mxu0 %v6432_v39  ;;  %v2128_v39 = vld [vmem:[#allocation9 + $0x1b8] sm:$0xff] }
 0x794   :  { %1972 = vmatprep.mubr.f32.mxu0 %v5971_v0 }
 0x797   :  { %1973 = vmatmul.mubr.f32.gmra.mrb[26].mxu0 %v6476_v30  ;;  %v2131_v30 = vld [vmem:[#allocation9 + $0x1d0] sm:$0xff] }
 0x798   :  { %1978 = vmatprep.mubr.f32.mxu0 %v5971_v0  ;;  %v6551_v27 = vpack.c.bf16 %v2131_v30, %v2128_v39  ;;  %v2144_v39 = vld [vmem:[#allocation9 + $0x238] sm:$0xff] }
 0x799   :  { %v6604_v30 = vpack.c.bf16 %v2144_v39, %v2141_v23 }
 0x79a   :  { %5205 = vmatprep.subr.bf16.mxu0 %v6551_v27 }
 0x79b   :  { %1979 = vmatmul.mubr.f32.gmra.mrb[28].mxu0 %v6518_v21  ;;  %5243 = vmatpush3.bf16.msra.mxu1 %v6604_v30 }
 0x79c   :  { %1984 = vmatprep.mubr.f32.mxu0 %v5971_v0  ;;  %5207 = vmatpush1.bf16.msra.mxu0 %v6553_v25 }
 0x79d   :  { %5209 = vmatprep.subr.bf16.mxu0 %v6557_v35  ;;  %5244 = vmatprep.subr.bf16.mxu1 %v5972_v41 }
 0x79f   :  { %5246 = vmatpush3.bf16.msra.mxu1 %v6610_v28 }
 0x7a0   :  { %5211 = vmatpush1.bf16.msra.mxu0 %v6559_v46  ;;  %5247 = vmatprep.subr.bf16.mxu1 %v5972_v41 }
 0x7a1   :  { %5213 = vmatprep.subr.bf16.mxu0 %v6563_v56 }
 0x7a3   :  { %5249 = vmatpush3.bf16.msra.mxu1 %v6613_v44 }
 0x7a4   :  { %5215 = vmatpush1.bf16.msra.mxu0 %v6565_v3  ;;  %5250 = vmatprep.subr.bf16.mxu1 %v5972_v41 }
 0x7a5   :  { %5217 = vmatprep.subr.bf16.mxu0 %v6569_v19 }
 0x7a7   :  { %5252 = vmatpush3.bf16.msra.mxu1 %v6617_v59 }
 0x7a8   :  { %5219 = vmatpush1.bf16.msra.mxu0 %v6571_v32  ;;  %5253 = vmatprep.subr.bf16.mxu1 %v5972_v41 }
 0x7a9   :  { %5221 = vmatprep.subr.bf16.mxu0 %v6579_v58 }
 0x7ab   :  { %5255 = vmatpush3.bf16.msra.mxu1 %v6621_v12 }
 0x7ac   :  { %5223 = vmatpush1.bf16.msra.mxu0 %v6581_v51  ;;  %5288 = vmatprep.subr.bf16.mxu1 %v5972_v41 }
 0x7ad   :  { %5225 = vmatprep.subr.bf16.mxu0 %v6588_v45 }
 0x7b0   :  { %5227 = vmatpush1.bf16.msra.mxu0 %v6590_v10 }
 0x7b1   :  { %5229 = vmatprep.subr.bf16.mxu0 %v6598_v20 }
 0x7b4   :  { %5231 = vmatpush1.bf16.msra.mxu0 %v6600_v47 }
 0x7b5   :  { %5257 = vmatprep.subr.bf16.mxu0 %v6545_v52 }
 0x836   :  { %v1708_v14 = vpop.f32.mrb[14].mxu0  ;;  %v1779_v22 = vpop.f32.mrb[22].mxu1 }
 0x837   :  { %v5686_v24 = vadd.f32 %v1708_v14, %v6238_v61  ;;  %v1710_v29 = vpop.f32.mrb[15].mxu0  ;;  %v4264_v31 = vpop.f32.mrb[23].mxu1  ;;  %v1793_v7 = vadd.f32 %v5844_v40, %v1779_v22 }
 0x838   :  { %v5687_v42 = vadd.f32 %v1710_v29, %v6244_v5 }
 0x839   :  { %v1784_v34 = vmul.f32 0.5, %v5686_v24 }
 0x83a   :  { %v1789_v48 = vmul.f32 0.5, %v5687_v42 }
 0x83b   :  { %5790 = vtanh.f32 %v1784_v34 }
 0x83c   :  { %5792 = vtanh.f32 %v1789_v48 }
 0x845   :  { %v5791_v50 = vpop.eup %5790 }
 0x846   :  { %v1786_v55 = vadd.f32 1.0, %v5791_v50  ;;  %v5793_v9 = vpop.eup %5792 }
 0x847   :  { %v1791_v11 = vadd.f32 1.0, %v5793_v9 }
 0x848   :  { %v1787_v2 = vmul.f32 0.5, %v1786_v55 }
 0x849   :  { %v1792_v15 = vmul.f32 0.5, %v1791_v11 }
 0x84a   :  { %v1794_v8 = vmul.f32 %v1793_v7, %v1787_v2 }
 0x84b   :  { %v1797_v5 = vsub.f32 1.0, %v1792_v15  ;;  %v1799_v39 = vmul.f32 %v1792_v15, %v6518_v21  ;;  %v3600_v21 = vld [vmem:[%s6990_s3 + $0x3] sm:$0x7] }
 0x84c   :  { %v1795_v61 = vadd.f32 %v1794_v8, %v6240_v63  ;;  %v6694_v1 = vrot.slane %v3600_v21, %v158_v57  ;;  %v6698_v14 = vrot.slane %v3600_v21, %v162_v60  ;;  %v6705_v57 = vld [vmem:[%s6991_s4 + $0x1] ss:$0 sm:$0xff]  ;;  %v6709_v60 = vrot.slane %v3600_v21, %v166_v37 }
 0x84e   :  { %5794 = vtanh.f32 %v1795_v61 }
 0x856   :  { %v6632_v16 = vpop.f32.mrb[24].mxu1 }
 0x857   :  { %v6634_v4 = vpop.f32.mrb[25].mxu1 }
 0x858   :  { %v5795_v62 = vpop.eup %5794  ;;  %v2058_v7 = vadd.f32 %v6634_v4, %v6709_v60 }
 0x859   :  { %v1798_v23 = vmul.f32 %v5795_v62, %v1797_v5 }
 0x85a   :  { %v6637_v17 = vpop.f32.mrb[26].mxu1 }
 0x85b   :  { %v6639_v18 = vpop.f32.mrb[27].mxu1  ;;  %v1800_v33 = vadd.f32 %v1799_v39, %v1798_v23 }
 0x85d   :  { %1985 = vmatmul.mubr.f32.gmra.mrb[30].mxu0 %v1800_v33  ;;  %4307 = vmatmul.mubr.f32.gmra.mrb[30].mxu1 %v1800_v33 }
 0x85e   :  { %v6641_v63 = vpop.f32.mrb[28].mxu1  ;;  %2244 = vmatprep.mubr.f32.mxu0 %v5971_v0  ;;  %4341 = vmatprep.mubr.msk.f32.mxu1 %vm5973_vm0, %v5971_v0 }
 0x85f   :  { %v6646_v38 = vpop.f32.mrb[29].mxu1 }
 0x861   :  { %2245 = vmatmul.mubr.f32.vlgmr.msra.gmra.mrb[16].mxu0 %v5971_v0  ;;  %4342 = vmatmul.mubr.f32.vlgmr.msra.gmra.mrb[32].mxu1 %v5971_v0 }
 0x862   :  { %5259 = vmatpush1.bf16.msra.mxu0 %v6547_v26  ;;  %5290 = vmatpush3.bf16.msra.mxu1 %v6573_v53 }
 0x863   :  { %5261 = vmatprep.subr.bf16.mxu0 %v6551_v27  ;;  %5291 = vmatprep.subr.bf16.mxu1 %v5972_v41 }
 0x864   :  { %2407 = vmatprep.mubr.f32.mxu0 %v5971_v0  ;;  %4376 = vmatprep.mubr.msk.f32.mxu1 %vm5973_vm0, %v5971_v0 }
 0x866   :  { %5263 = vmatpush1.bf16.msra.mxu0 %v6553_v25  ;;  %5293 = vmatpush3.bf16.msra.mxu1 %v6584_v43 }
 0x867   :  { %5265 = vmatprep.subr.bf16.mxu0 %v6557_v35  ;;  %5294 = vmatprep.subr.bf16.mxu1 %v5972_v41 }
 0x86a   :  { %5267 = vmatpush1.bf16.msra.mxu0 %v6559_v46  ;;  %5296 = vmatpush3.bf16.msra.mxu1 %v6594_v13 }
 0x86b   :  { %5269 = vmatprep.subr.bf16.mxu0 %v6563_v56  ;;  %5297 = vmatprep.subr.bf16.mxu1 %v5972_v41 }
 0x86e   :  { %5271 = vmatpush1.bf16.msra.mxu0 %v6565_v3  ;;  %5299 = vmatpush3.bf16.msra.mxu1 %v6604_v30 }
 0x86f   :  { %5273 = vmatprep.subr.bf16.mxu0 %v6569_v19  ;;  %5300 = vmatprep.subr.bf16.mxu1 %v5972_v41 }
 0x872   :  { %5275 = vmatpush1.bf16.msra.mxu0 %v6571_v32  ;;  %5302 = vmatpush3.bf16.msra.mxu1 %v6610_v28 }
 0x873   :  { %5277 = vmatprep.subr.bf16.mxu0 %v6579_v58  ;;  %5303 = vmatprep.subr.bf16.mxu1 %v5972_v41 }
 0x876   :  { %5279 = vmatpush1.bf16.msra.mxu0 %v6581_v51  ;;  %5305 = vmatpush3.bf16.msra.mxu1 %v6613_v44 }
 0x877   :  { %5281 = vmatprep.subr.bf16.mxu0 %v6588_v45  ;;  %5306 = vmatprep.subr.bf16.mxu1 %v5972_v41 }
 0x87a   :  { %5283 = vmatpush1.bf16.msra.mxu0 %v6590_v10  ;;  %5308 = vmatpush3.bf16.msra.mxu1 %v6617_v59 }
 0x87b   :  { %5285 = vmatprep.subr.bf16.mxu0 %v6598_v20  ;;  %5309 = vmatprep.subr.bf16.mxu1 %v5972_v41 }
 0x87e   :  { %5287 = vmatpush1.bf16.msra.mxu0 %v6600_v47  ;;  %5311 = vmatpush3.bf16.msra.mxu1 %v6621_v12 }
 0x87f   :  { %5313 = vmatprep.subr.bf16.mxu0 %v6545_v52  ;;  %5344 = vmatprep.subr.bf16.mxu1 %v5972_v41 }
 0x930   :  { %v6688_v49 = vpop.f32.mrb[30].mxu1 }
 0x931   :  { %v6690_v54 = vpop.f32.mrb[31].mxu1 }
 0x934   :  { %v2246_v6 = vpop.f32.mrb[16].mxu0  ;;  %v2317_v22 = vpop.f32.mrb[32].mxu1 }
 0x935   :  { %v5688_v24 = vadd.f32 %v2246_v6, %v6694_v1  ;;  %v2248_v29 = vpop.f32.mrb[17].mxu0  ;;  %v4343_v31 = vpop.f32.mrb[33].mxu1  ;;  %v2331_v2 = vadd.f32 %v6705_v57, %v2317_v22 }
 0x936   :  { %v5689_v42 = vadd.f32 %v2248_v29, %v6698_v14 }
 0x937   :  { %v2322_v34 = vmul.f32 0.5, %v5688_v24 }
 0x938   :  { %v2327_v48 = vmul.f32 0.5, %v5689_v42 }
 0x939   :  { %5796 = vtanh.f32 %v2322_v34 }
 0x93a   :  { %5798 = vtanh.f32 %v2327_v48 }
 0x943   :  { %v5797_v50 = vpop.eup %5796 }
 0x944   :  { %v2324_v55 = vadd.f32 1.0, %v5797_v50  ;;  %v5799_v9 = vpop.eup %5798  ;;  %v2063_v50 = vadd.f32 %v6632_v16, %v6709_v60 }
 0x945   :  { %v2329_v11 = vadd.f32 1.0, %v5799_v9 }
 0x946   :  { %v2325_v40 = vmul.f32 0.5, %v2324_v55 }
 0x947   :  { %v2330_v15 = vmul.f32 0.5, %v2329_v11 }
 0x948   :  { %v2332_v8 = vmul.f32 %v2331_v2, %v2325_v40 }
 0x949   :  { %v2335_v5 = vsub.f32 1.0, %v2330_v15  ;;  %v2337_v23 = vmul.f32 0.0, %v2330_v15 }
 0x94a   :  { %v2333_v61 = vadd.f32 %v2332_v8, %v2058_v7 }
 0x94c   :  { %5800 = vtanh.f32 %v2333_v61 }
 0x956   :  { %v5801_v62 = vpop.eup %5800 }
 0x957   :  { %v2336_v39 = vmul.f32 %v5801_v62, %v2335_v5 }
 0x959   :  { %v2338_v36 = vadd.f32 %v2337_v23, %v2336_v39 }
 0x95b   :  { %2408 = vmatmul.mubr.f32.vlgmr.msra.gmra.mrb[18].mxu0 %v2338_v36  ;;  %4377 = vmatmul.mubr.f32.vlgmr.msra.gmra.mrb[34].mxu1 %v2338_v36 }
 0x95c   :  { %5315 = vmatpush1.bf16.msra.mxu0 %v6547_v26  ;;  %5346 = vmatpush3.bf16.msra.mxu1 %v6573_v53 }
 0x95d   :  { %5317 = vmatprep.subr.bf16.mxu0 %v6551_v27  ;;  %5347 = vmatprep.subr.bf16.mxu1 %v5972_v41 }
 0x95e   :  { %2570 = vmatprep.mubr.f32.mxu0 %v5971_v0  ;;  %4411 = vmatprep.mubr.msk.f32.mxu1 %vm5973_vm0, %v5971_v0 }
 0x960   :  { %5319 = vmatpush1.bf16.msra.mxu0 %v6553_v25  ;;  %5349 = vmatpush3.bf16.msra.mxu1 %v6584_v43 }
 0x961   :  { %5321 = vmatprep.subr.bf16.mxu0 %v6557_v35  ;;  %5350 = vmatprep.subr.bf16.mxu1 %v5972_v41 }
 0x964   :  { %5323 = vmatpush1.bf16.msra.mxu0 %v6559_v46  ;;  %5352 = vmatpush3.bf16.msra.mxu1 %v6594_v13 }
 0x965   :  { %5325 = vmatprep.subr.bf16.mxu0 %v6563_v56  ;;  %5353 = vmatprep.subr.bf16.mxu1 %v5972_v41 }
 0x968   :  { %5327 = vmatpush1.bf16.msra.mxu0 %v6565_v3  ;;  %5355 = vmatpush3.bf16.msra.mxu1 %v6604_v30 }
 0x969   :  { %5329 = vmatprep.subr.bf16.mxu0 %v6569_v19  ;;  %5356 = vmatprep.subr.bf16.mxu1 %v5972_v41 }
 0x96c   :  { %5331 = vmatpush1.bf16.msra.mxu0 %v6571_v32  ;;  %5358 = vmatpush3.bf16.msra.mxu1 %v6610_v28 }
 0x96d   :  { %5333 = vmatprep.subr.bf16.mxu0 %v6579_v58  ;;  %5359 = vmatprep.subr.bf16.mxu1 %v5972_v41 }
 0x970   :  { %5335 = vmatpush1.bf16.msra.mxu0 %v6581_v51  ;;  %5361 = vmatpush3.bf16.msra.mxu1 %v6613_v44 }
 0x971   :  { %5337 = vmatprep.subr.bf16.mxu0 %v6588_v45  ;;  %5362 = vmatprep.subr.bf16.mxu1 %v5972_v41 }
 0x974   :  { %5339 = vmatpush1.bf16.msra.mxu0 %v6590_v10  ;;  %5364 = vmatpush3.bf16.msra.mxu1 %v6617_v59 }
 0x975   :  { %5341 = vmatprep.subr.bf16.mxu0 %v6598_v20  ;;  %5365 = vmatprep.subr.bf16.mxu1 %v5972_v41 }
 0x978   :  { %5343 = vmatpush1.bf16.msra.mxu0 %v6600_v47  ;;  %5367 = vmatpush3.bf16.msra.mxu1 %v6621_v12 }
 0x979   :  { %5369 = vmatprep.subr.bf16.mxu0 %v6545_v52  ;;  %5400 = vmatprep.subr.bf16.mxu1 %v5972_v41 }
 0xa2e   :  { %v2409_v37 = vpop.f32.mrb[18].mxu0  ;;  %v2480_v4 = vpop.f32.mrb[34].mxu1 }
 0xa2f   :  { %v5690_v33 = vadd.f32 %v2409_v37, %v6694_v1  ;;  %v2411_v21 = vpop.f32.mrb[19].mxu0  ;;  %v4378_v6 = vpop.f32.mrb[35].mxu1  ;;  %v2494_v48 = vadd.f32 %v6705_v57, %v2480_v4 }
 0xa30   :  { %v5691_v24 = vadd.f32 %v2411_v21, %v6698_v14 }
 0xa31   :  { %v2485_v22 = vmul.f32 0.5, %v5690_v33 }
 0xa32   :  { %v2490_v29 = vmul.f32 0.5, %v5691_v24 }
 0xa33   :  { %5802 = vtanh.f32 %v2485_v22 }
 0xa34   :  { %5804 = vtanh.f32 %v2490_v29  ;;  %v2068_v29 = vadd.f32 %v6639_v18, %v6709_v60 }
 0xa3d   :  { %v5803_v31 = vpop.eup %5802 }
 0xa3e   :  { %v2487_v34 = vadd.f32 1.0, %v5803_v31  ;;  %v5805_v2 = vpop.eup %5804 }
 0xa3f   :  { %v2492_v7 = vadd.f32 1.0, %v5805_v2 }
 0xa40   :  { %v2488_v42 = vmul.f32 0.5, %v2487_v34 }
 0xa41   :  { %v2493_v8 = vmul.f32 0.5, %v2492_v7 }
 0xa42   :  { %v2495_v55 = vmul.f32 %v2494_v48, %v2488_v42 }
 0xa43   :  { %v2498_v9 = vsub.f32 1.0, %v2493_v8  ;;  %v2500_v15 = vmul.f32 %v2493_v8, %v2338_v36 }
 0xa44   :  { %v2496_v40 = vadd.f32 %v2495_v55, %v2063_v50 }
 0xa46   :  { %5806 = vtanh.f32 %v2496_v40 }
 0xa50   :  { %v5807_v61 = vpop.eup %5806 }
 0xa51   :  { %v2499_v11 = vmul.f32 %v5807_v61, %v2498_v9 }
 0xa53   :  { %v2501_v5 = vadd.f32 %v2500_v15, %v2499_v11 }
 0xa55   :  { %2571 = vmatmul.mubr.f32.vlgmr.msra.gmra.mrb[20].mxu0 %v2501_v5  ;;  %4412 = vmatmul.mubr.f32.vlgmr.msra.gmra.mrb[36].mxu1 %v2501_v5 }
 0xa56   :  { %5371 = vmatpush1.bf16.msra.mxu0 %v6547_v26  ;;  %5402 = vmatpush3.bf16.msra.mxu1 %v6573_v53 }
 0xa57   :  { %5373 = vmatprep.subr.bf16.mxu0 %v6551_v27  ;;  %5403 = vmatprep.subr.bf16.mxu1 %v5972_v41 }
 0xa58   :  { %2733 = vmatprep.mubr.f32.mxu0 %v5971_v0  ;;  %4446 = vmatprep.mubr.msk.f32.mxu1 %vm5973_vm0, %v5971_v0 }
 0xa5a   :  { %5375 = vmatpush1.bf16.msra.mxu0 %v6553_v25  ;;  %5405 = vmatpush3.bf16.msra.mxu1 %v6584_v43 }
 0xa5b   :  { %5377 = vmatprep.subr.bf16.mxu0 %v6557_v35  ;;  %5406 = vmatprep.subr.bf16.mxu1 %v5972_v41 }
 0xa5e   :  { %5379 = vmatpush1.bf16.msra.mxu0 %v6559_v46  ;;  %5408 = vmatpush3.bf16.msra.mxu1 %v6594_v13 }
 0xa5f   :  { %5381 = vmatprep.subr.bf16.mxu0 %v6563_v56  ;;  %5409 = vmatprep.subr.bf16.mxu1 %v5972_v41 }
 0xa62   :  { %5383 = vmatpush1.bf16.msra.mxu0 %v6565_v3  ;;  %5411 = vmatpush3.bf16.msra.mxu1 %v6604_v30 }
 0xa63   :  { %5385 = vmatprep.subr.bf16.mxu0 %v6569_v19  ;;  %5412 = vmatprep.subr.bf16.mxu1 %v5972_v41 }
 0xa66   :  { %5387 = vmatpush1.bf16.msra.mxu0 %v6571_v32  ;;  %5414 = vmatpush3.bf16.msra.mxu1 %v6610_v28 }
 0xa67   :  { %5389 = vmatprep.subr.bf16.mxu0 %v6579_v58  ;;  %5415 = vmatprep.subr.bf16.mxu1 %v5972_v41 }
 0xa6a   :  { %5391 = vmatpush1.bf16.msra.mxu0 %v6581_v51  ;;  %5417 = vmatpush3.bf16.msra.mxu1 %v6613_v44 }
 0xa6b   :  { %5393 = vmatprep.subr.bf16.mxu0 %v6588_v45  ;;  %5418 = vmatprep.subr.bf16.mxu1 %v5972_v41 }
 0xa6e   :  { %5395 = vmatpush1.bf16.msra.mxu0 %v6590_v10  ;;  %5420 = vmatpush3.bf16.msra.mxu1 %v6617_v59 }
 0xa6f   :  { %5397 = vmatprep.subr.bf16.mxu0 %v6598_v20  ;;  %5421 = vmatprep.subr.bf16.mxu1 %v5972_v41 }
 0xa72   :  { %5399 = vmatpush1.bf16.msra.mxu0 %v6600_v47  ;;  %5423 = vmatpush3.bf16.msra.mxu1 %v6621_v12 }
 0xa73   :  { %5425 = vmatprep.subr.bf16.mxu0 %v6545_v52  ;;  %5456 = vmatprep.subr.bf16.mxu1 %v5972_v41 }
 0xb28   :  { %v2572_v16 = vpop.f32.mrb[20].mxu0  ;;  %v2643_v62 = vpop.f32.mrb[36].mxu1 }
 0xb29   :  { %v5692_v23 = vadd.f32 %v2572_v16, %v6694_v1  ;;  %v2574_v39 = vpop.f32.mrb[21].mxu0  ;;  %v4413_v36 = vpop.f32.mrb[37].mxu1  ;;  %v2657_v24 = vadd.f32 %v6705_v57, %v2643_v62 }
 0xb2a   :  { %v5693_v4 = vadd.f32 %v2574_v39, %v6698_v14 }
 0xb2b   :  { %v2648_v37 = vmul.f32 0.5, %v5692_v23 }
 0xb2c   :  { %v2653_v33 = vmul.f32 0.5, %v5693_v4  ;;  %v2073_v4 = vadd.f32 %v6637_v17, %v6709_v60 }
 0xb2d   :  { %5808 = vtanh.f32 %v2648_v37 }
 0xb2e   :  { %5810 = vtanh.f32 %v2653_v33 }
 0xb37   :  { %v5809_v21 = vpop.eup %5808 }
 0xb38   :  { %v2650_v6 = vadd.f32 1.0, %v5809_v21  ;;  %v5811_v34 = vpop.eup %5810 }
 0xb39   :  { %v2655_v48 = vadd.f32 1.0, %v5811_v34 }
 0xb3a   :  { %v2651_v22 = vmul.f32 0.5, %v2650_v6 }
 0xb3b   :  { %v2656_v50 = vmul.f32 0.5, %v2655_v48 }
 0xb3c   :  { %v2658_v31 = vmul.f32 %v2657_v24, %v2651_v22 }
 0xb3d   :  { %v2661_v55 = vsub.f32 1.0, %v2656_v50  ;;  %v2663_v7 = vmul.f32 %v2656_v50, %v2501_v5 }
 0xb3e   :  { %v2659_v42 = vadd.f32 %v2658_v31, %v2068_v29 }
 0xb40   :  { %5812 = vtanh.f32 %v2659_v42 }
 0xb4a   :  { %v5813_v2 = vpop.eup %5812 }
 0xb4b   :  { %v2662_v40 = vmul.f32 %v5813_v2, %v2661_v55 }
 0xb4d   :  { %v2664_v8 = vadd.f32 %v2663_v7, %v2662_v40 }
 0xb4f   :  { %2734 = vmatmul.mubr.f32.vlgmr.msra.gmra.mrb[22].mxu0 %v2664_v8  ;;  %4447 = vmatmul.mubr.f32.vlgmr.msra.gmra.mrb[38].mxu1 %v2664_v8 }
 0xb50   :  { %5427 = vmatpush1.bf16.msra.mxu0 %v6547_v26  ;;  %5458 = vmatpush3.bf16.msra.mxu1 %v6573_v53 }
 0xb51   :  { %5429 = vmatprep.subr.bf16.mxu0 %v6551_v27  ;;  %5459 = vmatprep.subr.bf16.mxu1 %v5972_v41 }
 0xb52   :  { %2896 = vmatprep.mubr.f32.mxu0 %v5971_v0  ;;  %4481 = vmatprep.mubr.msk.f32.mxu1 %vm5973_vm0, %v5971_v0 }
 0xb54   :  { %5431 = vmatpush1.bf16.msra.mxu0 %v6553_v25  ;;  %5461 = vmatpush3.bf16.msra.mxu1 %v6584_v43 }
 0xb55   :  { %5433 = vmatprep.subr.bf16.mxu0 %v6557_v35  ;;  %5462 = vmatprep.subr.bf16.mxu1 %v5972_v41 }
 0xb58   :  { %5435 = vmatpush1.bf16.msra.mxu0 %v6559_v46  ;;  %5464 = vmatpush3.bf16.msra.mxu1 %v6594_v13 }
 0xb59   :  { %5437 = vmatprep.subr.bf16.mxu0 %v6563_v56  ;;  %5465 = vmatprep.subr.bf16.mxu1 %v5972_v41 }
 0xb5c   :  { %5439 = vmatpush1.bf16.msra.mxu0 %v6565_v3  ;;  %5467 = vmatpush3.bf16.msra.mxu1 %v6604_v30 }
 0xb5d   :  { %5441 = vmatprep.subr.bf16.mxu0 %v6569_v19  ;;  %5468 = vmatprep.subr.bf16.mxu1 %v5972_v41 }
 0xb60   :  { %5443 = vmatpush1.bf16.msra.mxu0 %v6571_v32  ;;  %5470 = vmatpush3.bf16.msra.mxu1 %v6610_v28 }
 0xb61   :  { %5445 = vmatprep.subr.bf16.mxu0 %v6579_v58  ;;  %5471 = vmatprep.subr.bf16.mxu1 %v5972_v41 }
 0xb64   :  { %5447 = vmatpush1.bf16.msra.mxu0 %v6581_v51  ;;  %5473 = vmatpush3.bf16.msra.mxu1 %v6613_v44 }
 0xb65   :  { %5449 = vmatprep.subr.bf16.mxu0 %v6588_v45  ;;  %5474 = vmatprep.subr.bf16.mxu1 %v5972_v41 }
 0xb68   :  { %5451 = vmatpush1.bf16.msra.mxu0 %v6590_v10  ;;  %5476 = vmatpush3.bf16.msra.mxu1 %v6617_v59 }
 0xb69   :  { %5453 = vmatprep.subr.bf16.mxu0 %v6598_v20  ;;  %5477 = vmatprep.subr.bf16.mxu1 %v5972_v41 }
 0xb6c   :  { %5455 = vmatpush1.bf16.msra.mxu0 %v6600_v47  ;;  %5479 = vmatpush3.bf16.msra.mxu1 %v6621_v12 }
 0xb6d   :  { %5481 = vmatprep.subr.bf16.mxu0 %v6545_v52  ;;  %5512 = vmatprep.subr.bf16.mxu1 %v5972_v41 }
 0xc22   :  { %v2735_v18 = vpop.f32.mrb[22].mxu0  ;;  %v2806_v9 = vpop.f32.mrb[38].mxu1 }
 0xc23   :  { %v5694_v61 = vadd.f32 %v2735_v18, %v6694_v1  ;;  %v2737_v11 = vpop.f32.mrb[23].mxu0  ;;  %v4448_v15 = vpop.f32.mrb[39].mxu1  ;;  %v2820_v37 = vadd.f32 %v6705_v57, %v2806_v9 }
 0xc24   :  { %v5695_v16 = vadd.f32 %v2737_v11, %v6698_v14 }
 0xc25   :  { %v2811_v5 = vmul.f32 0.5, %v5694_v61 }
 0xc26   :  { %v2816_v62 = vmul.f32 0.5, %v5695_v16 }
 0xc27   :  { %5814 = vtanh.f32 %v2811_v5  ;;  %v2078_v5 = vadd.f32 %v6646_v38, %v6709_v60 }
 0xc28   :  { %5816 = vtanh.f32 %v2816_v62 }
 0xc31   :  { %v5815_v23 = vpop.eup %5814 }
 0xc32   :  { %v2813_v39 = vadd.f32 1.0, %v5815_v23  ;;  %v5817_v21 = vpop.eup %5816 }
 0xc33   :  { %v2818_v22 = vadd.f32 1.0, %v5817_v21 }
 0xc34   :  { %v2814_v36 = vmul.f32 0.5, %v2813_v39 }
 0xc35   :  { %v2819_v24 = vmul.f32 0.5, %v2818_v22 }
 0xc36   :  { %v2821_v33 = vmul.f32 %v2820_v37, %v2814_v36 }
 0xc37   :  { %v2824_v29 = vsub.f32 1.0, %v2819_v24  ;;  %v2826_v42 = vmul.f32 %v2819_v24, %v2664_v8 }
 0xc38   :  { %v2822_v6 = vadd.f32 %v2821_v33, %v2073_v4 }
 0xc3a   :  { %5818 = vtanh.f32 %v2822_v6 }
 0xc44   :  { %v5819_v31 = vpop.eup %5818 }
 0xc45   :  { %v2825_v34 = vmul.f32 %v5819_v31, %v2824_v29 }
 0xc47   :  { %v2827_v48 = vadd.f32 %v2826_v42, %v2825_v34 }
 0xc49   :  { %2897 = vmatmul.mubr.f32.vlgmr.msra.gmra.mrb[24].mxu0 %v2827_v48  ;;  %4482 = vmatmul.mubr.f32.vlgmr.msra.gmra.mrb[40].mxu1 %v2827_v48 }
 0xc4a   :  { %5483 = vmatpush1.bf16.msra.mxu0 %v6547_v26  ;;  %5514 = vmatpush3.bf16.msra.mxu1 %v6573_v53 }
 0xc4b   :  { %5485 = vmatprep.subr.bf16.mxu0 %v6551_v27  ;;  %5515 = vmatprep.subr.bf16.mxu1 %v5972_v41 }
 0xc4c   :  { %3059 = vmatprep.mubr.f32.mxu0 %v5971_v0  ;;  %4516 = vmatprep.mubr.msk.f32.mxu1 %vm5973_vm0, %v5971_v0 }
 0xc4e   :  { %5487 = vmatpush1.bf16.msra.mxu0 %v6553_v25  ;;  %5517 = vmatpush3.bf16.msra.mxu1 %v6584_v43 }
 0xc4f   :  { %5489 = vmatprep.subr.bf16.mxu0 %v6557_v35  ;;  %5518 = vmatprep.subr.bf16.mxu1 %v5972_v41 }
 0xc52   :  { %5491 = vmatpush1.bf16.msra.mxu0 %v6559_v46  ;;  %5520 = vmatpush3.bf16.msra.mxu1 %v6594_v13 }
 0xc53   :  { %5493 = vmatprep.subr.bf16.mxu0 %v6563_v56  ;;  %5521 = vmatprep.subr.bf16.mxu1 %v5972_v41 }
 0xc56   :  { %5495 = vmatpush1.bf16.msra.mxu0 %v6565_v3  ;;  %5523 = vmatpush3.bf16.msra.mxu1 %v6604_v30 }
 0xc57   :  { %5497 = vmatprep.subr.bf16.mxu0 %v6569_v19  ;;  %5524 = vmatprep.subr.bf16.mxu1 %v5972_v41 }
 0xc5a   :  { %5499 = vmatpush1.bf16.msra.mxu0 %v6571_v32  ;;  %5526 = vmatpush3.bf16.msra.mxu1 %v6610_v28 }
 0xc5b   :  { %5501 = vmatprep.subr.bf16.mxu0 %v6579_v58  ;;  %5527 = vmatprep.subr.bf16.mxu1 %v5972_v41 }
 0xc5e   :  { %5503 = vmatpush1.bf16.msra.mxu0 %v6581_v51  ;;  %5529 = vmatpush3.bf16.msra.mxu1 %v6613_v44 }
 0xc5f   :  { %5505 = vmatprep.subr.bf16.mxu0 %v6588_v45  ;;  %5530 = vmatprep.subr.bf16.mxu1 %v5972_v41 }
 0xc62   :  { %5507 = vmatpush1.bf16.msra.mxu0 %v6590_v10  ;;  %5532 = vmatpush3.bf16.msra.mxu1 %v6617_v59 }
 0xc63   :  { %5509 = vmatprep.subr.bf16.mxu0 %v6598_v20  ;;  %5533 = vmatprep.subr.bf16.mxu1 %v5972_v41 }
 0xc66   :  { %5511 = vmatpush1.bf16.msra.mxu0 %v6600_v47  ;;  %5535 = vmatpush3.bf16.msra.mxu1 %v6621_v12 }
 0xc67   :  { %5537 = vmatprep.subr.bf16.mxu0 %v6545_v52  ;;  %5568 = vmatprep.subr.bf16.mxu1 %v5972_v41 }
 0xd1c   :  { %v2898_v17 = vpop.f32.mrb[24].mxu0  ;;  %v2969_v50 = vpop.f32.mrb[40].mxu1 }
 0xd1d   :  { %v5696_v55 = vadd.f32 %v2898_v17, %v6694_v1  ;;  %v2900_v2 = vpop.f32.mrb[25].mxu0  ;;  %v4483_v40 = vpop.f32.mrb[41].mxu1  ;;  %v2983_v15 = vadd.f32 %v6705_v57, %v2969_v50 }
 0xd1e   :  { %v5697_v8 = vadd.f32 %v2900_v2, %v6698_v14 }
 0xd1f   :  { %v2974_v7 = vmul.f32 0.5, %v5696_v55 }
 0xd20   :  { %v2979_v18 = vmul.f32 0.5, %v5697_v8 }
 0xd21   :  { %5820 = vtanh.f32 %v2974_v7 }
 0xd22   :  { %5822 = vtanh.f32 %v2979_v18 }
 0xd2b   :  { %v5821_v9 = vpop.eup %5820 }
 0xd2c   :  { %v2976_v61 = vadd.f32 1.0, %v5821_v9  ;;  %v5823_v62 = vpop.eup %5822 }
 0xd2d   :  { %v2981_v39 = vadd.f32 1.0, %v5823_v62 }
 0xd2e   :  { %v2977_v11 = vmul.f32 0.5, %v2976_v61 }
 0xd2f   :  { %v2982_v36 = vmul.f32 0.5, %v2981_v39  ;;  %v3484_v39 = vld [vmem:[#allocation10 + $0x18] sm:$0xff] }
 0xd30   :  { %v2984_v16 = vmul.f32 %v2983_v15, %v2977_v11 }
 0xd31   :  { %v2987_v37 = vsub.f32 1.0, %v2982_v36  ;;  %v2989_v21 = vmul.f32 %v2982_v36, %v2827_v48 }
 0xd32   :  { %v2985_v23 = vadd.f32 %v2984_v16, %v2078_v5 }
 0xd34   :  { %5824 = vtanh.f32 %v2985_v23  ;;  %v3483_v23 = vld [vmem:[#allocation10 + $0x10] sm:$0xff] }
 0xd35   :  { %v5652_v36 = vpack.c.bf16 %v3484_v39, %v3483_v23 }
 0xd3e   :  { %v5825_v4 = vpop.eup %5824 }
 0xd3f   :  { %v2988_v33 = vmul.f32 %v5825_v4, %v2987_v37  ;;  %v3485_v37 = vld [vmem:[#allocation10 + $0x20] sm:$0xff]  ;;  %v3486_v4 = vld [vmem:[#allocation10 + $0x28] sm:$0xff] }
 0xd41   :  { %v2990_v6 = vadd.f32 %v2989_v21, %v2988_v33  ;;  %v5655_v33 = vpack.c.bf16 %v3486_v4, %v3485_v37  ;;  %v3487_v21 = vld [vmem:[#allocation10 + $0x30] sm:$0xff] }
 0xd43   :  { %3060 = vmatmul.mubr.f32.vlgmr.msra.gmra.mrb[26].mxu0 %v2990_v6  ;;  %4517 = vmatmul.mubr.f32.vlgmr.msra.gmra.mrb[42].mxu1 %v2990_v6 }
 0xd44   :  { %5539 = vmatpush1.bf16.msra.mxu0 %v6547_v26  ;;  %5570 = vmatpush3.bf16.msra.mxu1 %v6573_v53 }
 0xd45   :  { %5541 = vmatprep.subr.bf16.mxu0 %v6551_v27  ;;  %5571 = vmatprep.subr.bf16.mxu1 %v5972_v41 }
 0xd46   :  { %3222 = vmatprep.mubr.f32.mxu0 %v5971_v0  ;;  %4551 = vmatprep.mubr.msk.f32.mxu1 %vm5973_vm0, %v5971_v0 }
 0xd48   :  { %5543 = vmatpush1.bf16.msra.mxu0 %v6553_v25  ;;  %5573 = vmatpush3.bf16.msra.mxu1 %v6584_v43 }
 0xd49   :  { %5545 = vmatprep.subr.bf16.mxu0 %v6557_v35  ;;  %5574 = vmatprep.subr.bf16.mxu1 %v5972_v41 }
 0xd4c   :  { %5547 = vmatpush1.bf16.msra.mxu0 %v6559_v46  ;;  %5576 = vmatpush3.bf16.msra.mxu1 %v6594_v13 }
 0xd4d   :  { %5549 = vmatprep.subr.bf16.mxu0 %v6563_v56  ;;  %5577 = vmatprep.subr.bf16.mxu1 %v5972_v41 }
 0xd50   :  { %5551 = vmatpush1.bf16.msra.mxu0 %v6565_v3  ;;  %5579 = vmatpush3.bf16.msra.mxu1 %v6604_v30 }
 0xd51   :  { %5553 = vmatprep.subr.bf16.mxu0 %v6569_v19  ;;  %5580 = vmatprep.subr.bf16.mxu1 %v5972_v41 }
 0xd54   :  { %5555 = vmatpush1.bf16.msra.mxu0 %v6571_v32  ;;  %5582 = vmatpush3.bf16.msra.mxu1 %v6610_v28 }
 0xd55   :  { %5557 = vmatprep.subr.bf16.mxu0 %v6579_v58  ;;  %5583 = vmatprep.subr.bf16.mxu1 %v5972_v41 }
 0xd58   :  { %5559 = vmatpush1.bf16.msra.mxu0 %v6581_v51  ;;  %5585 = vmatpush3.bf16.msra.mxu1 %v6613_v44 }
 0xd59   :  { %5561 = vmatprep.subr.bf16.mxu0 %v6588_v45  ;;  %5586 = vmatprep.subr.bf16.mxu1 %v5972_v41 }
 0xd5c   :  { %5563 = vmatpush1.bf16.msra.mxu0 %v6590_v10  ;;  %5588 = vmatpush3.bf16.msra.mxu1 %v6617_v59 }
 0xd5d   :  { %5565 = vmatprep.subr.bf16.mxu0 %v6598_v20  ;;  %5589 = vmatprep.subr.bf16.mxu1 %v5972_v41 }
 0xd60   :  { %5567 = vmatpush1.bf16.msra.mxu0 %v6600_v47  ;;  %5591 = vmatpush3.bf16.msra.mxu1 %v6621_v12 }
 0xd61   :  { %5593 = vmatprep.subr.bf16.mxu0 %v6545_v52  ;;  %5624 = vmatprep.subr.bf16.mxu1 %v5972_v41  ;;  %v2083_v52 = vadd.f32 %v6641_v63, %v6709_v60  ;;  %v3481_v63 = vld [vmem:[#allocation10] sm:$0xff] }
 0xe16   :  { %v3061_v38 = vpop.f32.mrb[26].mxu0  ;;  %v3132_v22 = vpop.f32.mrb[42].mxu1 }
 0xe17   :  { %v5698_v24 = vadd.f32 %v3061_v38, %v6694_v1  ;;  %v3063_v29 = vpop.f32.mrb[27].mxu0  ;;  %v4518_v31 = vpop.f32.mrb[43].mxu1  ;;  %v3146_v2 = vadd.f32 %v6705_v57, %v3132_v22  ;;  %v3489_v38 = vld [vmem:[#allocation10 + $0x40] sm:$0xff]  ;;  %v3490_v22 = vld [vmem:[#allocation10 + $0x48] sm:$0xff] }
 0xe18   :  { %v5699_v42 = vadd.f32 %v3063_v29, %v6698_v14  ;;  %v3491_v29 = vld [vmem:[#allocation10 + $0x50] sm:$0xff]  ;;  %v3492_v31 = vld [vmem:[#allocation10 + $0x58] sm:$0xff] }
 0xe19   :  { %v3137_v34 = vmul.f32 0.5, %v5698_v24  ;;  %v5661_v24 = vpack.c.bf16 %v3490_v22, %v3489_v38 }
 0xe1a   :  { %v3142_v48 = vmul.f32 0.5, %v5699_v42  ;;  %v3493_v42 = vld [vmem:[#allocation10 + $0x60] sm:$0xff] }
 0xe1b   :  { %5826 = vtanh.f32 %v3137_v34  ;;  %v5664_v34 = vpack.c.bf16 %v3492_v31, %v3491_v29 }
 0xe1c   :  { %5828 = vtanh.f32 %v3142_v48  ;;  %v3494_v48 = vld [vmem:[#allocation10 + $0x68] sm:$0xff] }
 0xe25   :  { %v5827_v17 = vpop.eup %5826 }
 0xe26   :  { %v3139_v50 = vadd.f32 1.0, %v5827_v17  ;;  %v5829_v7 = vpop.eup %5828  ;;  %v5667_v17 = vpack.c.bf16 %v3494_v48, %v3493_v42 }
 0xe27   :  { %v3144_v18 = vadd.f32 1.0, %v5829_v7 }
 0xe28   :  { %v3140_v55 = vmul.f32 0.5, %v3139_v50  ;;  %v3495_v50 = vld [vmem:[#allocation10 + $0x70] sm:$0xff] }
 0xe29   :  { %v3145_v9 = vmul.f32 0.5, %v3144_v18 }
 0xe2a   :  { %v3147_v40 = vmul.f32 %v3146_v2, %v3140_v55  ;;  %v3496_v55 = vld [vmem:[#allocation10 + $0x78] sm:$0xff] }
 0xe2b   :  { %v3150_v61 = vsub.f32 1.0, %v3145_v9  ;;  %v3152_v5 = vmul.f32 %v3145_v9, %v2990_v6  ;;  %v5670_v2 = vpack.c.bf16 %v3496_v55, %v3495_v50 }
 0xe2c   :  { %v3148_v8 = vadd.f32 %v3147_v40, %v2083_v52 }
 0xe2e   :  { %5830 = vtanh.f32 %v3148_v8 }
 0xe38   :  { %v5831_v11 = vpop.eup %5830 }
 0xe39   :  { %v3151_v15 = vmul.f32 %v5831_v11, %v3150_v61 }
 0xe3b   :  { %v3153_v16 = vadd.f32 %v3152_v5, %v3151_v15 }
 0xe3d   :  { %3223 = vmatmul.mubr.f32.vlgmr.msra.gmra.mrb[28].mxu0 %v3153_v16  ;;  %4552 = vmatmul.mubr.f32.vlgmr.msra.gmra.mrb[44].mxu1 %v3153_v16 }
 0xe3e   :  { %5595 = vmatpush1.bf16.msra.mxu0 %v6547_v26  ;;  %5626 = vmatpush3.bf16.msra.mxu1 %v6573_v53 }
 0xe3f   :  { %5597 = vmatprep.subr.bf16.mxu0 %v6551_v27  ;;  %5627 = vmatprep.subr.bf16.mxu1 %v5972_v41 }
 0xe40   :  { %3385 = vmatprep.mubr.f32.mxu0 %v5971_v0  ;;  %4586 = vmatprep.mubr.msk.f32.mxu1 %vm5973_vm0, %v5971_v0 }
 0xe42   :  { %5599 = vmatpush1.bf16.msra.mxu0 %v6553_v25  ;;  %5629 = vmatpush3.bf16.msra.mxu1 %v6584_v43  ;;  %v2088_v43 = vadd.f32 %v6690_v54, %v6709_v60  ;;  %v3482_v54 = vld [vmem:[#allocation10 + $0x8] sm:$0xff] }
 0xe43   :  { %5601 = vmatprep.subr.bf16.mxu0 %v6557_v35  ;;  %5630 = vmatprep.subr.bf16.mxu1 %v5972_v41  ;;  %v5649_v62 = vpack.c.bf16 %v3482_v54, %v3481_v63 }
 0xe46   :  { %5603 = vmatpush1.bf16.msra.mxu0 %v6559_v46  ;;  %5632 = vmatpush3.bf16.msra.mxu1 %v6594_v13 }
 0xe47   :  { %5605 = vmatprep.subr.bf16.mxu0 %v6563_v56  ;;  %5633 = vmatprep.subr.bf16.mxu1 %v5972_v41 }
 0xe4a   :  { %5607 = vmatpush1.bf16.msra.mxu0 %v6565_v3  ;;  %5635 = vmatpush3.bf16.msra.mxu1 %v6604_v30 }
 0xe4b   :  { %5609 = vmatprep.subr.bf16.mxu0 %v6569_v19  ;;  %5636 = vmatprep.subr.bf16.mxu1 %v5972_v41 }
 0xe4e   :  { %5611 = vmatpush1.bf16.msra.mxu0 %v6571_v32  ;;  %5638 = vmatpush3.bf16.msra.mxu1 %v6610_v28 }
 0xe4f   :  { %5613 = vmatprep.subr.bf16.mxu0 %v6579_v58  ;;  %5639 = vmatprep.subr.bf16.mxu1 %v5972_v41 }
 0xe52   :  { %5615 = vmatpush1.bf16.msra.mxu0 %v6581_v51  ;;  %5641 = vmatpush3.bf16.msra.mxu1 %v6613_v44 }
 0xe53   :  { %5617 = vmatprep.subr.bf16.mxu0 %v6588_v45  ;;  %5642 = vmatprep.subr.bf16.mxu1 %v5972_v41 }
 0xe56   :  { %5619 = vmatpush1.bf16.msra.mxu0 %v6590_v10  ;;  %5644 = vmatpush3.bf16.msra.mxu1 %v6617_v59 }
 0xe57   :  { %5621 = vmatprep.subr.bf16.mxu0 %v6598_v20  ;;  %5645 = vmatprep.subr.bf16.mxu1 %v5972_v41 }
 0xe5a   :  { %5623 = vmatpush1.bf16.msra.mxu0 %v6600_v47  ;;  %5647 = vmatpush3.bf16.msra.mxu1 %v6621_v12 }
 0xe5b   :  { %5648 = vmatprep.subr.bf16.mxu0 %v5972_v41 }
 0xf10   :  { %v3224_v26 = vpop.f32.mrb[28].mxu0  ;;  %v3295_v27 = vpop.f32.mrb[44].mxu1 }
 0xf11   :  { %v5700_v25 = vadd.f32 %v3224_v26, %v6694_v1  ;;  %v3226_v35 = vpop.f32.mrb[29].mxu0  ;;  %v4553_v46 = vpop.f32.mrb[45].mxu1  ;;  %v3309_v51 = vadd.f32 %v6705_v57, %v3295_v27  ;;  %v2093_v26 = vadd.f32 %v6688_v49, %v6709_v60 }
 0xf12   :  { %v5701_v3 = vadd.f32 %v3226_v35, %v6698_v14 }
 0xf13   :  { %v3300_v56 = vmul.f32 0.5, %v5700_v25 }
 0xf14   :  { %v3305_v19 = vmul.f32 0.5, %v5701_v3 }
 0xf15   :  { %5832 = vtanh.f32 %v3300_v56 }
 0xf16   :  { %5834 = vtanh.f32 %v3305_v19 }
 0xf1f   :  { %v5833_v32 = vpop.eup %5832 }
 0xf20   :  { %v3302_v53 = vadd.f32 1.0, %v5833_v32  ;;  %v5835_v10 = vpop.eup %5834 }
 0xf21   :  { %v3307_v20 = vadd.f32 1.0, %v5835_v10 }
 0xf22   :  { %v3303_v58 = vmul.f32 0.5, %v3302_v53 }
 0xf23   :  { %v3308_v47 = vmul.f32 0.5, %v3307_v20 }
 0xf24   :  { %v3310_v45 = vmul.f32 %v3309_v51, %v3303_v58 }
 0xf25   :  { %v3313_v30 = vsub.f32 1.0, %v3308_v47  ;;  %v3315_v59 = vmul.f32 %v3308_v47, %v3153_v16 }
 0xf26   :  { %v3311_v13 = vadd.f32 %v3310_v45, %v2088_v43 }
 0xf28   :  { %5836 = vtanh.f32 %v3311_v13 }
 0xf32   :  { %v5837_v28 = vpop.eup %5836 }
 0xf33   :  { %v3314_v44 = vmul.f32 %v5837_v28, %v3313_v30 }
 0xf35   :  { %v6953_v12 = vadd.f32 %v3315_v59, %v3314_v44 }
 0xf37   :  { %3386 = vmatmul.mubr.f32.vlgmr.msra.gmra.mrb[30].mxu0 %v6953_v12  ;;  %4587 = vmatmul.mubr.f32.vlgmr.msra.gmra.mrb[46].mxu1 %v6953_v12 }
 0xf38   :  { %4621 = vmatprep.mubr.msk.f32.mxu0 %vm5973_vm0, %v5971_v0  ;;  %5650 = vmatpush3.bf16.msra.mxu0 %v5649_v62  ;;  %v3488_v0 = vld [vmem:[#allocation10 + $0x38] sm:$0xff] }
 0xf39   :  { %5651 = vmatprep.subr.bf16.mxu0 %v5972_v41  ;;  %v5658_v6 = vpack.c.bf16 %v3488_v0, %v3487_v21 }
 0xf3c   :  { %5653 = vmatpush3.bf16.msra.mxu0 %v5652_v36 }
 0xf3d   :  { %5654 = vmatprep.subr.bf16.mxu0 %v5972_v41 }
 0xf40   :  { %5656 = vmatpush3.bf16.msra.mxu0 %v5655_v33 }
 0xf41   :  { %5657 = vmatprep.subr.bf16.mxu0 %v5972_v41 }
 0xf44   :  { %5659 = vmatpush3.bf16.msra.mxu0 %v5658_v6 }
 0xf45   :  { %5660 = vmatprep.subr.bf16.mxu0 %v5972_v41 }
 0xf48   :  { %5662 = vmatpush3.bf16.msra.mxu0 %v5661_v24 }
 0xf49   :  { %5663 = vmatprep.subr.bf16.mxu0 %v5972_v41 }
 0xf4c   :  { %5665 = vmatpush3.bf16.msra.mxu0 %v5664_v34 }
 0xf4d   :  { %5666 = vmatprep.subr.bf16.mxu0 %v5972_v41 }
 0xf50   :  { %5668 = vmatpush3.bf16.msra.mxu0 %v5667_v17 }
 0xf51   :  { %5669 = vmatprep.subr.bf16.mxu0 %v5972_v41 }
 0xf54   :  { %5671 = vmatpush3.bf16.msra.mxu0 %v5670_v2 }
0x100a   :  { %v3387_v52 = vpop.f32.mrb[30].mxu0  ;;  %v3458_v40 = vpop.f32.mrb[46].mxu1 }
0x100b   :  { %v5702_v7 = vadd.f32 %v3387_v52, %v6694_v1  ;;  %v3389_v8 = vpop.f32.mrb[31].mxu0  ;;  %v4588_v18 = vpop.f32.mrb[47].mxu1  ;;  %v3472_v41 = vadd.f32 %v6705_v57, %v3458_v40  ;;  %v3603_v57 = vld [vmem:[%s6993_s6] ss:$0 sm:$0xff] }
0x100c   :  { %v5703_v61 = vadd.f32 %v3389_v8, %v6698_v14 }
0x100d   :  { %v3463_v9 = vmul.f32 0.5, %v5702_v7 }
0x100e   :  { %v3468_v11 = vmul.f32 0.5, %v5703_v61 }
0x100f   :  { %5838 = vtanh.f32 %v3463_v9 }
0x1010   :  { %5840 = vtanh.f32 %v3468_v11 }
0x1019   :  { %v5839_v15 = vpop.eup %5838 }
0x101a   :  { %v3465_v5 = vadd.f32 1.0, %v5839_v15  ;;  %v5841_v25 = vpop.eup %5840 }
0x101b   :  { %v3470_v1 = vadd.f32 1.0, %v5841_v25 }
0x101c   :  { %v3466_v16 = vmul.f32 0.5, %v3465_v5 }
0x101d   :  { %v3471_v46 = vmul.f32 0.5, %v3470_v1 }
0x101e   :  { %v3473_v27 = vmul.f32 %v3472_v41, %v3466_v16 }
0x101f   :  { %v3476_v56 = vsub.f32 1.0, %v3471_v46  ;;  %v3478_v19 = vmul.f32 %v3471_v46, %v6953_v12 }
0x1020   :  { %v3474_v35 = vadd.f32 %v3473_v27, %v2093_v26 }
0x1022   :  { %5842 = vtanh.f32 %v3474_v35 }
0x102c   :  { %v5843_v3 = vpop.eup %5842 }
0x102d   :  { %v3477_v14 = vmul.f32 %v5843_v3, %v3476_v56 }
0x102f   :  { %v3479_v32 = vadd.f32 %v3478_v19, %v3477_v14 }
0x1031   :  { %4622 = vmatmul.mubr.f32.vlgmr.msra.gmra.mrb[32].mxu0 %v3479_v32 }
0x1104   :  { %v3570_v49 = vpop.f32.mrb[32].mxu0 }
0x1105   :  { %v3571_v60 = vadd.f32 %v3603_v57, %v3570_v49  ;;  %v4623_v53 = vpop.f32.mrb[33].mxu0 }
0x1107   :  { %3574 = vst [vmem:[#allocation12] sm:$0xff] %v3571_v60 }
0x1108   :  { %5944 = shalt.err (!%p5941_p8)
}
0x1109   :  { %s5945_s16 = scalar_lea.hbm %s6994_s7, 128 }
0x110a   :  { %p5946_p9 = scmp.ne.s32.totalorder %s6994_s7, %s5945_s16  ;;  %p5949_p10 = scmp.lt.u32.totalorder %s5945_s16, %s6994_s7 }
0x110c   :  { %p5951_p11 = pnand %p5949_p10, %p5946_p9 }
0x110e   :  { %5954 = shalt.err (!%p5951_p11)
}
0x110f   :  { %3584 = dma.vmem_to_hbm [thread:$0]  %s3582_s15, 128, %s6994_s7, [#allocation6]  }
0x1110   :  { %5961 = dma.done.wait [#allocation6], 128  }
0x1111   :  { %5962 = vsyncadd [#allocation6], 4294967168 }
0x1112   :  { %3588 = vsyncpa [#allocation5], 1 }
0x1113   :  { %3589 = vsyncpa [#allocation8], 1 }
0x1114   :  { %3590 = vsyncpa [#allocation11], 1 }
0x1115   :  { %3591 = vsyncpa [#allocation6], 1 }

</bundles_post_ra>
